<compile_context>
chip_gen: v6e
topology: v6e:2x2x1
jax: 0.10.0
libtpu: 0.0.40
codegen_flags: <defaults>
</compile_context>

<pallas_src>
import functools

import numpy as np
import jax
import jax.numpy as jnp
from jax.experimental import pallas as pl
from jax.experimental.pallas import tpu as pltpu

# ----------------------------- configuration -------------------------------
CHW = (1, 16, 16)          # (c, h, w) -- small config
N_PATCHES = 4
N_BLOCKS = 2
HIDDEN_D = 16
N_HEADS = 2
OUT_D = 10                 # present in __init__ (self.mlp) but unused in forward
PATCH = CHW[1] // N_PATCHES
INPUT_D = CHW[0] * PATCH * PATCH
MLP_RATIO = 4
LN_EPS = 1e-5
NEG_INF = -1e30

N_TOKENS = N_PATCHES ** 2              # 16 patch tokens
T_ENC = N_TOKENS + 1                   # 17 = cls + patches
T_ENC_PAD = ((T_ENC + 7) // 8) * 8     # 24, sublane-aligned encoder length
MAX_IMGS_PER_STEP = 8                  # caps O(B^2) masked-score waste

# vec_tab row indices (misc constant table, shape (8, HIDDEN_D))
VT_LM2_B, VT_MLP1_W, VT_MLP1_B, VT_MLP4_W, VT_MLP4_B, VT_HEAD0 = 0, 1, 2, 3, 4, 5
# blk_vec row indices (per-block vector table, shape (4, 8, HIDDEN_D))
BV_LN1W, BV_LN1B, BV_BQ, BV_BK, BV_BV, BV_LN2W, BV_LN2B, BV_B2 = range(8)


# ------------------------------ small helpers ------------------------------
def _gelu_exact(x):
    # PyTorch nn.GELU() default = exact erf-based GELU
    return 0.5 * x * (1.0 + jax.lax.erf(x / np.sqrt(2.0)))


def get_positional_embeddings(seq_len, d):
    i = np.arange(seq_len, dtype=np.float64)[:, None]
    j = np.arange(d, dtype=np.float64)[None, :]
    angle = i / (10000.0 ** ((j - (j % 2)) / d))
    pe = np.where(j % 2 == 0, np.sin(angle), np.cos(angle))
    return jnp.asarray(pe, jnp.float32)


def patchify_jax(images, P):
    # matches torch patchify: patch index = i*P + j, flatten order (c, ph, pw)
    n, c, h, w = images.shape
    ps = h // P
    x = images.reshape(n, c, P, ps, P, ps)
    x = x.transpose(0, 2, 4, 1, 3, 5)            # (n, Pi, Pj, c, ps, ps)
    return x.reshape(n, P * P, c * ps * ps)


def depatchify_jax(patches, P):
    # matches torch depatchify (reference formula implies c == 1)
    n, np2, sp2 = patches.shape
    ps = int(np.sqrt(sp2))
    x = patches.reshape(n, P, P, 1, ps, ps)
    x = x.transpose(0, 3, 1, 4, 2, 5)            # (n, c, Pi, ps, Pj, ps)
    return x.reshape(n, 1, P * ps, P * ps)


# --------------------------- fused Pallas kernel -----------------------------
def fused_vit_kernel(patches_ref, enc_base_ref, enc_mask_ref,
                     dec_pos_ref, dec_mask_ref,
                     lm_w_ref, lm2_w_ref, vec_tab_ref,
                     wqkv_ref, w1_ref, w2_ref, b1_ref, blk_vec_ref,
                     lat_ref, out_ref,
                     *, n_heads, n_blocks, imgs_per_step, n_tokens, t_enc_pad,
                     hidden_d):
    f32 = jnp.float32

    def row(tab, r):                              # (1, D) view of a table row
        return tab[r:r + 1, :]

    vt = vec_tab_ref[...]                         # (8, D) misc constant table
    head_masks = [row(vt, VT_HEAD0 + h) for h in range(n_heads)]   # (1, D) 0/1

    def layer_norm(x, w, b):
        mu = jnp.mean(x, axis=-1, keepdims=True)
        var = jnp.mean(jnp.square(x - mu), axis=-1, keepdims=True)
        return (x - mu) * jax.lax.rsqrt(var + LN_EPS) * w + b

    def vit_block(x, i, attn_mask):
        """One MyViTBlock on a (M, D) slab of imgs_per_step stacked sequences."""
        blk = blk_vec_ref[i]                      # (8, D)
        wqkv = wqkv_ref[i]                        # (3, D, D) block-diag per head
        xn = layer_norm(x, row(blk, BV_LN1W), row(blk, BV_LN1B))
        # Fused block-diagonal QKV projections; 1/sqrt(d_head) folded into Wq/bq.
        q = jnp.dot(xn, wqkv[0], preferred_element_type=f32) + row(blk, BV_BQ)
        k = jnp.dot(xn, wqkv[1], preferred_element_type=f32) + row(blk, BV_BK)
        v = jnp.dot(xn, wqkv[2], preferred_element_type=f32) + row(blk, BV_BV)
        attn = None
        for h in range(n_heads):                  # static; full-width masked dots
            hm = head_masks[h]
            # attn_mask is the precomputed additive block-diag / padding mask.
            s = jnp.dot(q, (k * hm).T, preferred_element_type=f32) + attn_mask
            s = s - jnp.max(s, axis=-1, keepdims=True)
            p = jnp.exp(s)
            p = p * pl.reciprocal(jnp.sum(p, axis=-1, keepdims=True), approx=True)
            o = jnp.dot(p, v * hm, preferred_element_type=f32)
            attn = o if attn is None else attn + o
        out1 = x + attn                                         # residual 1
        y = layer_norm(out1, row(blk, BV_LN2W), row(blk, BV_LN2B))
        hdn = _gelu_exact(jnp.dot(y, w1_ref[i], preferred_element_type=f32)
                          + b1_ref[i])
        return out1 + (jnp.dot(hdn, w2_ref[i], preferred_element_type=f32)
                       + row(blk, BV_B2))                       # residual 2

    # ---- patch embedding + cls token + positional embedding -------------------
    # linear_mapper bias and the row-validity handling are folded into enc_base
    # host-side (cls / padded rows of `patches` are zero and get no bias).
    x = (jnp.dot(patches_ref[...], lm_w_ref[...], preferred_element_type=f32)
         + enc_base_ref[...])                     # (B*T_ENC_PAD, D)

    enc_mask = enc_mask_ref[...]
    for i in range(n_blocks):                     # encoder blocks
        x = vit_block(x, i, enc_mask)

    # drop per-image cls + sublane-padding rows -> (B*N_TOKENS, D)
    if imgs_per_step == 1:
        enc_tok = x[1:1 + n_tokens, :]
    else:
        enc_tok = jnp.concatenate(
            [x[b * t_enc_pad + 1:b * t_enc_pad + 1 + n_tokens, :]
             for b in range(imgs_per_step)], axis=0)

    # mlp1: Linear(D -> 1) + GELU.
    #  * column form (feeds mlp4): lane reduction; bias/D is folded into the
    #    summand so no scalar extraction is needed.
    #  * row form (lane-dense `lat` output): (1,D) @ (D,M) matmul — no relayout.
    w1_row = row(vt, VT_MLP1_W)                   # (1, D)
    bias_over_d = row(vt, VT_MLP1_B)              # (1, D), each lane = b/D
    lat_col = _gelu_exact(jnp.sum(enc_tok * w1_row + bias_over_d,
                                  axis=-1, keepdims=True))          # (M, 1)
    lat_row = _gelu_exact(jnp.dot(w1_row, enc_tok.T, preferred_element_type=f32)
                          + vt[VT_MLP1_B:VT_MLP1_B + 1, 0:1] * hidden_d)  # (1, M)
    lat_ref[...] = lat_row.astype(lat_ref.dtype)

    # mlp4: Linear(1 -> D) + GELU == outer-product broadcast (pure VPU).
    y = _gelu_exact(lat_col * row(vt, VT_MLP4_W) + row(vt, VT_MLP4_B))  # (M, D)

    dec_mask = dec_mask_ref[...]
    for i in range(n_blocks, 2 * n_blocks):       # decoder blocks
        y = vit_block(y, i, dec_mask)

    # decoder positional embedding is added AFTER the iblocks (matches PyTorch),
    # then linear_mapper2.
    y = y + dec_pos_ref[...]
    out = (jnp.dot(y, lm2_w_ref[...], preferred_element_type=f32)
           + row(vt, VT_LM2_B))                   # (M, INPUT_D)
    out_ref[...] = out.astype(out_ref.dtype)


# ------------------------- step planning / masks ----------------------------
def _plan_steps(n):
    """(n_steps, imgs_per_step): >=2 steps when n>=2 (v7x 2 TCs), B capped at 8."""
    if n <= 1:
        return 1, 1
    imgs = min(-(-n // 2), MAX_IMGS_PER_STEP)
    return -(-n // imgs), imgs


def _build_attn_masks(imgs_per_step):
    """Additive masks: 0 within the same image (and valid key cols), -1e30 else."""
    me = imgs_per_step * T_ENC_PAD
    img = np.arange(me) // T_ENC_PAD
    col_ok = (np.arange(me) % T_ENC_PAD) < T_ENC
    enc = np.where((img[:, None] == img[None, :]) & col_ok[None, :], 0.0, NEG_INF)
    md = imgs_per_step * N_TOKENS
    imgd = np.arange(md) // N_TOKENS
    dec = np.where(imgd[:, None] == imgd[None, :], 0.0, NEG_INF)
    return (jnp.asarray(enc, jnp.float32), jnp.asarray(dec, jnp.float32))


def _fused_forward_call(patches_steps, kp, n_steps, imgs_per_step):
    """patches_steps: (n_steps, B*T_ENC_PAD, INPUT_D) ->
       lat (n_steps, 1, B*N_TOKENS), out (n_steps, B*N_TOKENS, INPUT_D)."""
    m_enc = imgs_per_step * T_ENC_PAD
    m_dec = imgs_per_step * N_TOKENS
    enc_mask, dec_mask = _build_attn_masks(imgs_per_step)
    enc_base = jnp.tile(kp['enc_base'], (imgs_per_step, 1))      # (m_enc, D)
    dec_pos = jnp.tile(kp['ipos'], (imgs_per_step, 1))           # (m_dec, D)

    weights = [enc_base, enc_mask, dec_pos, dec_mask,
               kp['lm_w'], kp['lm2_w'], kp['vec_tab'],
               kp['wqkv'], kp['w1'], kp['w2'], kp['b1'], kp['blk_vec']]

    in_specs = [pl.BlockSpec((None, m_enc, INPUT_D), lambda s: (s, 0, 0))]
    for w in weights:   # full-array blocks, constant index map -> fetched once
        in_specs.append(pl.BlockSpec(w.shape, lambda s, nd=w.ndim: (0,) * nd))
    out_specs = [
        pl.BlockSpec((None, 1, m_dec), lambda s: (s, 0, 0)),          # lane-dense
        pl.BlockSpec((None, m_dec, INPUT_D), lambda s: (s, 0, 0)),
    ]
    kern = functools.partial(
        fused_vit_kernel, n_heads=N_HEADS, n_blocks=N_BLOCKS,
        imgs_per_step=imgs_per_step, n_tokens=N_TOKENS, t_enc_pad=T_ENC_PAD,
        hidden_d=HIDDEN_D)
    lat, out = pl.pallas_call(
        kern,
        out_shape=(jax.ShapeDtypeStruct((n_steps, 1, m_dec), jnp.float32),
                   jax.ShapeDtypeStruct((n_steps, m_dec, INPUT_D), jnp.float32)),
        grid=(n_steps,),
        in_specs=in_specs,
        out_specs=out_specs,
        compiler_params=pltpu.CompilerParams(
            dimension_semantics=("parallel",)),   # both TCs on v7x
    )(patches_steps, *weights)
    return lat, out


# ----------------------------- parameter setup ------------------------------
def _init_linear(key, din, dout):
    k1, k2 = jax.random.split(key)
    bound = 1.0 / np.sqrt(din)
    w = jax.random.uniform(k1, (din, dout), jnp.float32, -bound, bound)
    b = jax.random.uniform(k2, (1, dout), jnp.float32, -bound, bound)
    return w, b


def _init_block(key, d, n_heads, mlp_ratio):
    dh = d // n_heads
    keys = jax.random.split(key, 8)
    qw = jnp.stack([_init_linear(jax.random.fold_in(keys[0], h), dh, dh)[0]
                    for h in range(n_heads)])
    qb = jnp.stack([_init_linear(jax.random.fold_in(keys[0], h), dh, dh)[1]
                    for h in range(n_heads)])
    kw = jnp.stack([_init_linear(jax.random.fold_in(keys[1], h), dh, dh)[0]
                    for h in range(n_heads)])
    kb = jnp.stack([_init_linear(jax.random.fold_in(keys[1], h), dh, dh)[1]
                    for h in range(n_heads)])
    vw = jnp.stack([_init_linear(jax.random.fold_in(keys[2], h), dh, dh)[0]
                    for h in range(n_heads)])
    vb = jnp.stack([_init_linear(jax.random.fold_in(keys[2], h), dh, dh)[1]
                    for h in range(n_heads)])
    w1, b1 = _init_linear(keys[3], d, mlp_ratio * d)
    w2, b2 = _init_linear(keys[4], mlp_ratio * d, d)
    return dict(
        ln1w=jnp.ones((1, d), jnp.float32), ln1b=jnp.zeros((1, d), jnp.float32),
        qw=qw, qb=qb, kw=kw, kb=kb, vw=vw, vb=vb,
        ln2w=jnp.ones((1, d), jnp.float32), ln2b=jnp.zeros((1, d), jnp.float32),
        w1=w1, b1=b1, w2=w2, b2=b2,
    )


def init_params(key):
    ks = jax.random.split(key, 10)
    lm_w, lm_b = _init_linear(ks[0], INPUT_D, HIDDEN_D)
    lm2_w, lm2_b = _init_linear(ks[1], HIDDEN_D, INPUT_D)
    mlp1_w, mlp1_b = _init_linear(ks[2], HIDDEN_D, 1)
    mlp4_w, mlp4_b = _init_linear(ks[3], 1, HIDDEN_D)
    class_token = jax.random.uniform(ks[4], (1, HIDDEN_D), jnp.float32)
    blocks = [_init_block(jax.random.fold_in(ks[5], i), HIDDEN_D, N_HEADS, MLP_RATIO)
              for i in range(N_BLOCKS)]
    iblocks = [_init_block(jax.random.fold_in(ks[6], i), HIDDEN_D, N_HEADS, MLP_RATIO)
               for i in range(N_BLOCKS)]
    # TODO(synk): self.mlp (Linear->GELU->Linear with out_d) is defined in
    # __init__ but never used in forward, so it is intentionally omitted here.
    return dict(
        lm_w=lm_w, lm_b=lm_b, lm2_w=lm2_w, lm2_b=lm2_b,
        mlp1_w=mlp1_w, mlp1_b=mlp1_b, mlp4_w=mlp4_w, mlp4_b=mlp4_b,
        class_token=class_token,
        pos_emb=get_positional_embeddings(T_ENC, HIDDEN_D),
        ipos_emb=get_positional_embeddings(N_TOKENS, HIDDEN_D),
        blocks=blocks, iblocks=iblocks,
    )


def _pack_block(bp, scale):
    """Per-head Q/K/V linears -> block-diag (D,D) weights + one (8, D) vector table."""
    n_heads, dh, _ = bp['qw'].shape
    d = n_heads * dh

    def bdiag(per_head):
        w = jnp.zeros((d, d), jnp.float32)
        for h in range(n_heads):
            w = w.at[h * dh:(h + 1) * dh, h * dh:(h + 1) * dh].set(per_head[h])
        return w

    def cat_bias(pb):
        return jnp.concatenate([pb[h] for h in range(n_heads)], axis=-1)[0]  # (d,)

    wqkv = jnp.stack([bdiag(bp['qw']) * scale,         # scale folded into Wq
                      bdiag(bp['kw']), bdiag(bp['vw'])])
    blk_vec = jnp.stack([
        bp['ln1w'][0], bp['ln1b'][0],
        cat_bias(bp['qb']) * scale, cat_bias(bp['kb']), cat_bias(bp['vb']),
        bp['ln2w'][0], bp['ln2b'][0], bp['b2'][0],
    ])                                                  # (8, d)
    return wqkv, bp['w1'], bp['w2'], bp['b1'], blk_vec


def pack_params(params):
    """One-time host-side packing of module params into a few kernel-ready slabs."""
    d = HIDDEN_D
    dh = d // N_HEADS
    scale = 1.0 / np.sqrt(dh)
    per_blk = [_pack_block(bp, scale)
               for bp in (params['blocks'] + params['iblocks'])]
    wqkv = jnp.stack([p[0] for p in per_blk])           # (4, 3, d, d)
    w1 = jnp.stack([p[1] for p in per_blk])              # (4, d, 4d)
    w2 = jnp.stack([p[2] for p in per_blk])              # (4, 4d, d)
    b1 = jnp.stack([p[3] for p in per_blk])              # (4, 1, 4d)
    blk_vec = jnp.stack([p[4] for p in per_blk])         # (4, 8, d)

    # enc_base: row 0 = class_token + pos[0]; rows 1..16 = pos[1:] + lm_b;
    # rows 17..23 = 0.  Folding lm_b here removes both the bias add and the
    # row-validity iota/where from the kernel.
    enc_base = jnp.zeros((T_ENC_PAD, d), jnp.float32)
    enc_base = enc_base.at[:T_ENC].set(params['pos_emb'])
    enc_base = enc_base.at[0].add(params['class_token'][0])
    enc_base = enc_base.at[1:T_ENC].add(params['lm_b'][0])

    head_masks = np.zeros((N_HEADS, d), np.float32)
    for h in range(N_HEADS):
        head_masks[h, h * dh:(h + 1) * dh] = 1.0

    vec_tab = jnp.zeros((8, d), jnp.float32)
    vec_tab = vec_tab.at[VT_LM2_B].set(params['lm2_b'][0])
    vec_tab = vec_tab.at[VT_MLP1_W].set(params['mlp1_w'][:, 0])
    vec_tab = vec_tab.at[VT_MLP1_B].set(jnp.full((d,), params['mlp1_b'][0, 0] / d))
    vec_tab = vec_tab.at[VT_MLP4_W].set(params['mlp4_w'][0])
    vec_tab = vec_tab.at[VT_MLP4_B].set(params['mlp4_b'][0])
    vec_tab = vec_tab.at[VT_HEAD0:VT_HEAD0 + N_HEADS].set(jnp.asarray(head_masks))

    return dict(
        lm_w=params['lm_w'], lm2_w=params['lm2_w'],
        enc_base=enc_base, ipos=params['ipos_emb'],
        vec_tab=vec_tab, wqkv=wqkv, w1=w1, w2=w2, b1=b1, blk_vec=blk_vec,
    )


# ------------------------------ forward pass --------------------------------
@jax.jit
def myvit_forward(images, kparams):
    n = images.shape[0]
    n_steps, imgs_per_step = _plan_steps(n)
    n_pad = n_steps * imgs_per_step

    patches = patchify_jax(images, N_PATCHES)                    # (n, Tp, input_d)
    if n_pad > n:
        patches = jnp.pad(patches, ((0, n_pad - n), (0, 0), (0, 0)))
    # per-image encoder layout: row 0 = cls slot, rows 1..16 = patch tokens,
    # rows 17..23 = sublane padding (all zero -> contribute nothing).
    patches = jnp.pad(patches, ((0, 0), (1, T_ENC_PAD - 1 - N_TOKENS), (0, 0)))
    patches_steps = patches.reshape(n_steps, imgs_per_step * T_ENC_PAD, INPUT_D)

    lat, out = _fused_forward_call(patches_steps, kparams, n_steps, imgs_per_step)

    lat = lat.reshape(n_pad, N_TOKENS)[:n, :, None]              # (n, Tp, 1)
    out = out.reshape(n_pad, N_TOKENS, INPUT_D)[:n]              # (n, Tp, input_d)
    reimage = depatchify_jax(out, N_PATCHES)
    return lat, reimage


# ---------------------------------- main -------------------------------------
if __name__ == "__main__":
    key = jax.random.PRNGKey(0)
    k_img, k_par = jax.random.split(key)

    images = jax.random.uniform(k_img, (2,) + CHW, jnp.float32)   # NCHW
    params = init_params(k_par)
    kparams = pack_params(params)                                  # one-time packing

    lat, reimage = myvit_forward(images, kparams)
    jax.block_until_ready((lat, reimage))

    assert lat.shape == (2, N_PATCHES ** 2, 1)
    assert reimage.shape == (2,) + CHW
    assert np.all(np.isfinite(np.asarray(lat)))
    assert np.all(np.isfinite(np.asarray(reimage)))
    print("KERNEL_OK")
</pallas_src>

<mosaic_0001>
module attributes {stable_mosaic.version = 11 : i64} {
  func.func @fused_vit_kernel(%arg0: i32, %arg1: memref<1x24x16xf32, #tpu.memory_space<vmem>>, %arg2: memref<24x16xf32, #tpu.memory_space<vmem>>, %arg3: memref<24x24xf32, #tpu.memory_space<vmem>>, %arg4: memref<16x16xf32, #tpu.memory_space<vmem>>, %arg5: memref<16x16xf32, #tpu.memory_space<vmem>>, %arg6: memref<16x16xf32, #tpu.memory_space<vmem>>, %arg7: memref<16x16xf32, #tpu.memory_space<vmem>>, %arg8: memref<8x16xf32, #tpu.memory_space<vmem>>, %arg9: memref<4x3x16x16xf32, #tpu.memory_space<vmem>>, %arg10: memref<4x16x64xf32, #tpu.memory_space<vmem>>, %arg11: memref<4x64x16xf32, #tpu.memory_space<vmem>>, %arg12: memref<4x1x64xf32, #tpu.memory_space<vmem>>, %arg13: memref<4x8x16xf32, #tpu.memory_space<vmem>>, %arg14: memref<1x1x16xf32, #tpu.memory_space<vmem>>, %arg15: memref<1x16x16xf32, #tpu.memory_space<vmem>>) attributes {dimension_semantics = [#tpu.dimension_semantics<parallel>], iteration_bounds = array<i64: 2>, scalar_prefetch = 0 : i64, scratch_operands = 0 : i64, tpu.core_type = #tpu.core_type<tc>, window_params = [{transform_indices = @transform_0, window_bounds = array<i64: 1, 24, 16>}, {pipeline_mode = #tpu.pipeline_mode<synchronous>, transform_indices = @transform_1, window_bounds = array<i64: 24, 16>}, {pipeline_mode = #tpu.pipeline_mode<synchronous>, transform_indices = @transform_2, window_bounds = array<i64: 24, 24>}, {pipeline_mode = #tpu.pipeline_mode<synchronous>, transform_indices = @transform_3, window_bounds = array<i64: 16, 16>}, {pipeline_mode = #tpu.pipeline_mode<synchronous>, transform_indices = @transform_4, window_bounds = array<i64: 16, 16>}, {pipeline_mode = #tpu.pipeline_mode<synchronous>, transform_indices = @transform_5, window_bounds = array<i64: 16, 16>}, {pipeline_mode = #tpu.pipeline_mode<synchronous>, transform_indices = @transform_6, window_bounds = array<i64: 16, 16>}, {pipeline_mode = #tpu.pipeline_mode<synchronous>, transform_indices = @transform_7, window_bounds = array<i64: 8, 16>}, {pipeline_mode = #tpu.pipeline_mode<synchronous>, transform_indices = @transform_8, window_bounds = array<i64: 4, 3, 16, 16>}, {pipeline_mode = #tpu.pipeline_mode<synchronous>, transform_indices = @transform_9, window_bounds = array<i64: 4, 16, 64>}, {pipeline_mode = #tpu.pipeline_mode<synchronous>, transform_indices = @transform_10, window_bounds = array<i64: 4, 64, 16>}, {pipeline_mode = #tpu.pipeline_mode<synchronous>, transform_indices = @transform_11, window_bounds = array<i64: 4, 1, 64>}, {pipeline_mode = #tpu.pipeline_mode<synchronous>, transform_indices = @transform_12, window_bounds = array<i64: 4, 8, 16>}, {transform_indices = @transform_13, window_bounds = array<i64: 1, 1, 16>}, {transform_indices = @transform_14, window_bounds = array<i64: 1, 16, 16>}]} {
    %c0 = arith.constant 0 : index
    %c0_0 = arith.constant 0 : index
    %0 = vector.load %arg8[%c0, %c0_0] : memref<8x16xf32, #tpu.memory_space<vmem>>, vector<8x16xf32>
    %1 = vector.extract_strided_slice %0 {offsets = [5, 0], sizes = [1, 16], strides = [1, 1]} : vector<8x16xf32> to vector<1x16xf32>
    %2 = vector.extract_strided_slice %0 {offsets = [6, 0], sizes = [1, 16], strides = [1, 1]} : vector<8x16xf32> to vector<1x16xf32>
    %c0_1 = arith.constant 0 : index
    %c0_2 = arith.constant 0 : index
    %c0_3 = arith.constant 0 : index
    %3 = vector.load %arg1[%c0_1, %c0_2, %c0_3] : memref<1x24x16xf32, #tpu.memory_space<vmem>>, vector<1x24x16xf32>
    %4 = vector.shape_cast %3 : vector<1x24x16xf32> to vector<24x16xf32>
    %c0_4 = arith.constant 0 : index
    %c0_5 = arith.constant 0 : index
    %5 = vector.load %arg6[%c0_4, %c0_5] : memref<16x16xf32, #tpu.memory_space<vmem>>, vector<16x16xf32>
    %cst = arith.constant dense<0.000000e+00> : vector<24x16xf32>
    %6 = tpu.matmul %4, %5, %cst {dimension_numbers = #tpu.dot_dimension_numbers<[1], [0], [0], [1], [0, 0, 1, 1], [], []>} : vector<24x16xf32>, vector<16x16xf32>, vector<24x16xf32> -> vector<24x16xf32>
    %c0_6 = arith.constant 0 : index
    %c0_7 = arith.constant 0 : index
    %7 = vector.load %arg2[%c0_6, %c0_7] : memref<24x16xf32, #tpu.memory_space<vmem>>, vector<24x16xf32>
    %8 = arith.addf %6, %7 : vector<24x16xf32>
    %c0_8 = arith.constant 0 : index
    %c0_9 = arith.constant 0 : index
    %9 = vector.load %arg3[%c0_8, %c0_9] : memref<24x24xf32, #tpu.memory_space<vmem>>, vector<24x24xf32>
    %c0_10 = arith.constant 0 : index
    %c0_11 = arith.constant 0 : index
    %c0_12 = arith.constant 0 : index
    %10 = vector.load %arg13[%c0_10, %c0_11, %c0_12] : memref<4x8x16xf32, #tpu.memory_space<vmem>>, vector<1x8x16xf32>
    %11 = vector.shape_cast %10 : vector<1x8x16xf32> to vector<8x16xf32>
    %c0_13 = arith.constant 0 : index
    %c0_14 = arith.constant 0 : index
    %c0_15 = arith.constant 0 : index
    %c0_16 = arith.constant 0 : index
    %12 = vector.load %arg9[%c0_13, %c0_14, %c0_15, %c0_16] : memref<4x3x16x16xf32, #tpu.memory_space<vmem>>, vector<1x3x16x16xf32>
    %13 = vector.shape_cast %12 : vector<1x3x16x16xf32> to vector<3x16x16xf32>
    %14 = vector.extract_strided_slice %11 {offsets = [0, 0], sizes = [1, 16], strides = [1, 1]} : vector<8x16xf32> to vector<1x16xf32>
    %15 = vector.extract_strided_slice %11 {offsets = [1, 0], sizes = [1, 16], strides = [1, 1]} : vector<8x16xf32> to vector<1x16xf32>
    %cst_17 = arith.constant dense<0.000000e+00> : vector<24xf32>
    %16 = vector.multi_reduction <add>, %8, %cst_17 [1] : vector<24x16xf32> to vector<24xf32>
    %17 = vector.shape_cast %16 : vector<24xf32> to vector<24x1xf32>
    %cst_18 = arith.constant 1.600000e+01 : f32
    %18 = vector.broadcast %cst_18 : f32 to vector<24x1xf32>
    %19 = arith.divf %17, %18 : vector<24x1xf32>
    %20 = vector.broadcast %19 : vector<24x1xf32> to vector<24x16xf32>
    %21 = arith.subf %8, %20 : vector<24x16xf32>
    %22 = arith.mulf %21, %21 : vector<24x16xf32>
    %cst_19 = arith.constant dense<0.000000e+00> : vector<24xf32>
    %23 = vector.multi_reduction <add>, %22, %cst_19 [1] : vector<24x16xf32> to vector<24xf32>
    %24 = vector.shape_cast %23 : vector<24xf32> to vector<24x1xf32>
    %cst_20 = arith.constant 1.600000e+01 : f32
    %25 = vector.broadcast %cst_20 : f32 to vector<24x1xf32>
    %26 = arith.divf %24, %25 : vector<24x1xf32>
    %27 = vector.broadcast %19 : vector<24x1xf32> to vector<24x16xf32>
    %28 = arith.subf %8, %27 : vector<24x16xf32>
    %cst_21 = arith.constant 9.99999974E-6 : f32
    %29 = vector.broadcast %cst_21 : f32 to vector<24x1xf32>
    %30 = arith.addf %26, %29 : vector<24x1xf32>
    %31 = math.rsqrt %30 : vector<24x1xf32>
    %32 = vector.broadcast %31 : vector<24x1xf32> to vector<24x16xf32>
    %33 = arith.mulf %28, %32 : vector<24x16xf32>
    %34 = vector.broadcast %14 : vector<1x16xf32> to vector<24x16xf32>
    %35 = arith.mulf %33, %34 : vector<24x16xf32>
    %36 = vector.broadcast %15 : vector<1x16xf32> to vector<24x16xf32>
    %37 = arith.addf %35, %36 : vector<24x16xf32>
    %38 = vector.extract_strided_slice %13 {offsets = [0, 0, 0], sizes = [1, 16, 16], strides = [1, 1, 1]} : vector<3x16x16xf32> to vector<1x16x16xf32>
    %39 = vector.shape_cast %38 : vector<1x16x16xf32> to vector<16x16xf32>
    %cst_22 = arith.constant dense<0.000000e+00> : vector<24x16xf32>
    %40 = tpu.matmul %37, %39, %cst_22 {dimension_numbers = #tpu.dot_dimension_numbers<[1], [0], [0], [1], [0, 0, 1, 1], [], []>} : vector<24x16xf32>, vector<16x16xf32>, vector<24x16xf32> -> vector<24x16xf32>
    %41 = vector.extract_strided_slice %11 {offsets = [2, 0], sizes = [1, 16], strides = [1, 1]} : vector<8x16xf32> to vector<1x16xf32>
    %42 = vector.broadcast %41 : vector<1x16xf32> to vector<24x16xf32>
    %43 = arith.addf %40, %42 : vector<24x16xf32>
    %44 = vector.extract_strided_slice %13 {offsets = [1, 0, 0], sizes = [1, 16, 16], strides = [1, 1, 1]} : vector<3x16x16xf32> to vector<1x16x16xf32>
    %45 = vector.shape_cast %44 : vector<1x16x16xf32> to vector<16x16xf32>
    %cst_23 = arith.constant dense<0.000000e+00> : vector<24x16xf32>
    %46 = tpu.matmul %37, %45, %cst_23 {dimension_numbers = #tpu.dot_dimension_numbers<[1], [0], [0], [1], [0, 0, 1, 1], [], []>} : vector<24x16xf32>, vector<16x16xf32>, vector<24x16xf32> -> vector<24x16xf32>
    %47 = vector.extract_strided_slice %11 {offsets = [3, 0], sizes = [1, 16], strides = [1, 1]} : vector<8x16xf32> to vector<1x16xf32>
    %48 = vector.broadcast %47 : vector<1x16xf32> to vector<24x16xf32>
    %49 = arith.addf %46, %48 : vector<24x16xf32>
    %50 = vector.extract_strided_slice %13 {offsets = [2, 0, 0], sizes = [1, 16, 16], strides = [1, 1, 1]} : vector<3x16x16xf32> to vector<1x16x16xf32>
    %51 = vector.shape_cast %50 : vector<1x16x16xf32> to vector<16x16xf32>
    %cst_24 = arith.constant dense<0.000000e+00> : vector<24x16xf32>
    %52 = tpu.matmul %37, %51, %cst_24 {dimension_numbers = #tpu.dot_dimension_numbers<[1], [0], [0], [1], [0, 0, 1, 1], [], []>} : vector<24x16xf32>, vector<16x16xf32>, vector<24x16xf32> -> vector<24x16xf32>
    %53 = vector.extract_strided_slice %11 {offsets = [4, 0], sizes = [1, 16], strides = [1, 1]} : vector<8x16xf32> to vector<1x16xf32>
    %54 = vector.broadcast %53 : vector<1x16xf32> to vector<24x16xf32>
    %55 = arith.addf %52, %54 : vector<24x16xf32>
    %56 = vector.broadcast %1 : vector<1x16xf32> to vector<24x16xf32>
    %57 = arith.mulf %49, %56 : vector<24x16xf32>
    %58 = tpu.transpose %57, [1, 0] : vector<24x16xf32> -> vector<16x24xf32>
    %cst_25 = arith.constant dense<0.000000e+00> : vector<24x24xf32>
    %59 = tpu.matmul %43, %58, %cst_25 {dimension_numbers = #tpu.dot_dimension_numbers<[1], [0], [0], [1], [0, 0, 1, 1], [], []>} : vector<24x16xf32>, vector<16x24xf32>, vector<24x24xf32> -> vector<24x24xf32>
    %60 = arith.addf %59, %9 : vector<24x24xf32>
    %cst_26 = arith.constant dense<0xFF800000> : vector<24xf32>
    %61 = vector.multi_reduction <maximumf>, %60, %cst_26 [1] : vector<24x24xf32> to vector<24xf32>
    %62 = vector.shape_cast %61 : vector<24xf32> to vector<24x1xf32>
    %63 = vector.broadcast %62 : vector<24x1xf32> to vector<24x24xf32>
    %64 = arith.subf %60, %63 : vector<24x24xf32>
    %65 = math.exp %64 : vector<24x24xf32>
    %cst_27 = arith.constant dense<0.000000e+00> : vector<24xf32>
    %66 = vector.multi_reduction <add>, %65, %cst_27 [1] : vector<24x24xf32> to vector<24xf32>
    %67 = vector.shape_cast %66 : vector<24xf32> to vector<24x1xf32>
    %68 = tpu.reciprocal %67 {approx = true} : vector<24x1xf32> -> vector<24x1xf32>
    %69 = vector.broadcast %68 : vector<24x1xf32> to vector<24x24xf32>
    %70 = arith.mulf %65, %69 : vector<24x24xf32>
    %71 = vector.broadcast %1 : vector<1x16xf32> to vector<24x16xf32>
    %72 = arith.mulf %55, %71 : vector<24x16xf32>
    %cst_28 = arith.constant dense<0.000000e+00> : vector<24x16xf32>
    %73 = tpu.matmul %70, %72, %cst_28 {dimension_numbers = #tpu.dot_dimension_numbers<[1], [0], [0], [1], [0, 0, 1, 1], [], []>} : vector<24x24xf32>, vector<24x16xf32>, vector<24x16xf32> -> vector<24x16xf32>
    %74 = vector.broadcast %2 : vector<1x16xf32> to vector<24x16xf32>
    %75 = arith.mulf %49, %74 : vector<24x16xf32>
    %76 = tpu.transpose %75, [1, 0] : vector<24x16xf32> -> vector<16x24xf32>
    %cst_29 = arith.constant dense<0.000000e+00> : vector<24x24xf32>
    %77 = tpu.matmul %43, %76, %cst_29 {dimension_numbers = #tpu.dot_dimension_numbers<[1], [0], [0], [1], [0, 0, 1, 1], [], []>} : vector<24x16xf32>, vector<16x24xf32>, vector<24x24xf32> -> vector<24x24xf32>
    %78 = arith.addf %77, %9 : vector<24x24xf32>
    %cst_30 = arith.constant dense<0xFF800000> : vector<24xf32>
    %79 = vector.multi_reduction <maximumf>, %78, %cst_30 [1] : vector<24x24xf32> to vector<24xf32>
    %80 = vector.shape_cast %79 : vector<24xf32> to vector<24x1xf32>
    %81 = vector.broadcast %80 : vector<24x1xf32> to vector<24x24xf32>
    %82 = arith.subf %78, %81 : vector<24x24xf32>
    %83 = math.exp %82 : vector<24x24xf32>
    %cst_31 = arith.constant dense<0.000000e+00> : vector<24xf32>
    %84 = vector.multi_reduction <add>, %83, %cst_31 [1] : vector<24x24xf32> to vector<24xf32>
    %85 = vector.shape_cast %84 : vector<24xf32> to vector<24x1xf32>
    %86 = tpu.reciprocal %85 {approx = true} : vector<24x1xf32> -> vector<24x1xf32>
    %87 = vector.broadcast %86 : vector<24x1xf32> to vector<24x24xf32>
    %88 = arith.mulf %83, %87 : vector<24x24xf32>
    %89 = vector.broadcast %2 : vector<1x16xf32> to vector<24x16xf32>
    %90 = arith.mulf %55, %89 : vector<24x16xf32>
    %cst_32 = arith.constant dense<0.000000e+00> : vector<24x16xf32>
    %91 = tpu.matmul %88, %90, %cst_32 {dimension_numbers = #tpu.dot_dimension_numbers<[1], [0], [0], [1], [0, 0, 1, 1], [], []>} : vector<24x24xf32>, vector<24x16xf32>, vector<24x16xf32> -> vector<24x16xf32>
    %92 = arith.addf %73, %91 : vector<24x16xf32>
    %93 = arith.addf %8, %92 : vector<24x16xf32>
    %94 = vector.extract_strided_slice %11 {offsets = [5, 0], sizes = [1, 16], strides = [1, 1]} : vector<8x16xf32> to vector<1x16xf32>
    %95 = vector.extract_strided_slice %11 {offsets = [6, 0], sizes = [1, 16], strides = [1, 1]} : vector<8x16xf32> to vector<1x16xf32>
    %cst_33 = arith.constant dense<0.000000e+00> : vector<24xf32>
    %96 = vector.multi_reduction <add>, %93, %cst_33 [1] : vector<24x16xf32> to vector<24xf32>
    %97 = vector.shape_cast %96 : vector<24xf32> to vector<24x1xf32>
    %cst_34 = arith.constant 1.600000e+01 : f32
    %98 = vector.broadcast %cst_34 : f32 to vector<24x1xf32>
    %99 = arith.divf %97, %98 : vector<24x1xf32>
    %100 = vector.broadcast %99 : vector<24x1xf32> to vector<24x16xf32>
    %101 = arith.subf %93, %100 : vector<24x16xf32>
    %102 = arith.mulf %101, %101 : vector<24x16xf32>
    %cst_35 = arith.constant dense<0.000000e+00> : vector<24xf32>
    %103 = vector.multi_reduction <add>, %102, %cst_35 [1] : vector<24x16xf32> to vector<24xf32>
    %104 = vector.shape_cast %103 : vector<24xf32> to vector<24x1xf32>
    %cst_36 = arith.constant 1.600000e+01 : f32
    %105 = vector.broadcast %cst_36 : f32 to vector<24x1xf32>
    %106 = arith.divf %104, %105 : vector<24x1xf32>
    %107 = vector.broadcast %99 : vector<24x1xf32> to vector<24x16xf32>
    %108 = arith.subf %93, %107 : vector<24x16xf32>
    %cst_37 = arith.constant 9.99999974E-6 : f32
    %109 = vector.broadcast %cst_37 : f32 to vector<24x1xf32>
    %110 = arith.addf %106, %109 : vector<24x1xf32>
    %111 = math.rsqrt %110 : vector<24x1xf32>
    %112 = vector.broadcast %111 : vector<24x1xf32> to vector<24x16xf32>
    %113 = arith.mulf %108, %112 : vector<24x16xf32>
    %114 = vector.broadcast %94 : vector<1x16xf32> to vector<24x16xf32>
    %115 = arith.mulf %113, %114 : vector<24x16xf32>
    %116 = vector.broadcast %95 : vector<1x16xf32> to vector<24x16xf32>
    %117 = arith.addf %115, %116 : vector<24x16xf32>
    %c0_38 = arith.constant 0 : index
    %c0_39 = arith.constant 0 : index
    %c0_40 = arith.constant 0 : index
    %118 = vector.load %arg10[%c0_38, %c0_39, %c0_40] : memref<4x16x64xf32, #tpu.memory_space<vmem>>, vector<1x16x64xf32>
    %119 = vector.shape_cast %118 : vector<1x16x64xf32> to vector<16x64xf32>
    %cst_41 = arith.constant dense<0.000000e+00> : vector<24x64xf32>
    %120 = tpu.matmul %117, %119, %cst_41 {dimension_numbers = #tpu.dot_dimension_numbers<[1], [0], [0], [1], [0, 0, 1, 1], [], []>} : vector<24x16xf32>, vector<16x64xf32>, vector<24x64xf32> -> vector<24x64xf32>
    %c0_42 = arith.constant 0 : index
    %c0_43 = arith.constant 0 : index
    %c0_44 = arith.constant 0 : index
    %121 = vector.load %arg12[%c0_42, %c0_43, %c0_44] : memref<4x1x64xf32, #tpu.memory_space<vmem>>, vector<1x1x64xf32>
    %122 = vector.shape_cast %121 : vector<1x1x64xf32> to vector<1x64xf32>
    %123 = vector.broadcast %122 : vector<1x64xf32> to vector<24x64xf32>
    %124 = arith.addf %120, %123 : vector<24x64xf32>
    %cst_45 = arith.constant 5.000000e-01 : f32
    %125 = vector.broadcast %cst_45 : f32 to vector<24x64xf32>
    %126 = arith.mulf %125, %124 : vector<24x64xf32>
    %cst_46 = arith.constant 1.41421354 : f32
    %127 = vector.broadcast %cst_46 : f32 to vector<24x64xf32>
    %128 = arith.divf %124, %127 : vector<24x64xf32>
    %129 = math.erf %128 : vector<24x64xf32>
    %cst_47 = arith.constant 1.000000e+00 : f32
    %130 = vector.broadcast %cst_47 : f32 to vector<24x64xf32>
    %131 = arith.addf %130, %129 : vector<24x64xf32>
    %132 = arith.mulf %126, %131 : vector<24x64xf32>
    %c0_48 = arith.constant 0 : index
    %c0_49 = arith.constant 0 : index
    %c0_50 = arith.constant 0 : index
    %133 = vector.load %arg11[%c0_48, %c0_49, %c0_50] : memref<4x64x16xf32, #tpu.memory_space<vmem>>, vector<1x64x16xf32>
    %134 = vector.shape_cast %133 : vector<1x64x16xf32> to vector<64x16xf32>
    %cst_51 = arith.constant dense<0.000000e+00> : vector<24x16xf32>
    %135 = tpu.matmul %132, %134, %cst_51 {dimension_numbers = #tpu.dot_dimension_numbers<[1], [0], [0], [1], [0, 0, 1, 1], [], []>} : vector<24x64xf32>, vector<64x16xf32>, vector<24x16xf32> -> vector<24x16xf32>
    %136 = vector.extract_strided_slice %11 {offsets = [7, 0], sizes = [1, 16], strides = [1, 1]} : vector<8x16xf32> to vector<1x16xf32>
    %137 = vector.broadcast %136 : vector<1x16xf32> to vector<24x16xf32>
    %138 = arith.addf %135, %137 : vector<24x16xf32>
    %139 = arith.addf %93, %138 : vector<24x16xf32>
    %c1 = arith.constant 1 : index
    %c0_52 = arith.constant 0 : index
    %c0_53 = arith.constant 0 : index
    %140 = vector.load %arg13[%c1, %c0_52, %c0_53] : memref<4x8x16xf32, #tpu.memory_space<vmem>>, vector<1x8x16xf32>
    %141 = vector.shape_cast %140 : vector<1x8x16xf32> to vector<8x16xf32>
    %c1_54 = arith.constant 1 : index
    %c0_55 = arith.constant 0 : index
    %c0_56 = arith.constant 0 : index
    %c0_57 = arith.constant 0 : index
    %142 = vector.load %arg9[%c1_54, %c0_55, %c0_56, %c0_57] : memref<4x3x16x16xf32, #tpu.memory_space<vmem>>, vector<1x3x16x16xf32>
    %143 = vector.shape_cast %142 : vector<1x3x16x16xf32> to vector<3x16x16xf32>
    %144 = vector.extract_strided_slice %141 {offsets = [0, 0], sizes = [1, 16], strides = [1, 1]} : vector<8x16xf32> to vector<1x16xf32>
    %145 = vector.extract_strided_slice %141 {offsets = [1, 0], sizes = [1, 16], strides = [1, 1]} : vector<8x16xf32> to vector<1x16xf32>
    %cst_58 = arith.constant dense<0.000000e+00> : vector<24xf32>
    %146 = vector.multi_reduction <add>, %139, %cst_58 [1] : vector<24x16xf32> to vector<24xf32>
    %147 = vector.shape_cast %146 : vector<24xf32> to vector<24x1xf32>
    %cst_59 = arith.constant 1.600000e+01 : f32
    %148 = vector.broadcast %cst_59 : f32 to vector<24x1xf32>
    %149 = arith.divf %147, %148 : vector<24x1xf32>
    %150 = vector.broadcast %149 : vector<24x1xf32> to vector<24x16xf32>
    %151 = arith.subf %139, %150 : vector<24x16xf32>
    %152 = arith.mulf %151, %151 : vector<24x16xf32>
    %cst_60 = arith.constant dense<0.000000e+00> : vector<24xf32>
    %153 = vector.multi_reduction <add>, %152, %cst_60 [1] : vector<24x16xf32> to vector<24xf32>
    %154 = vector.shape_cast %153 : vector<24xf32> to vector<24x1xf32>
    %cst_61 = arith.constant 1.600000e+01 : f32
    %155 = vector.broadcast %cst_61 : f32 to vector<24x1xf32>
    %156 = arith.divf %154, %155 : vector<24x1xf32>
    %157 = vector.broadcast %149 : vector<24x1xf32> to vector<24x16xf32>
    %158 = arith.subf %139, %157 : vector<24x16xf32>
    %cst_62 = arith.constant 9.99999974E-6 : f32
    %159 = vector.broadcast %cst_62 : f32 to vector<24x1xf32>
    %160 = arith.addf %156, %159 : vector<24x1xf32>
    %161 = math.rsqrt %160 : vector<24x1xf32>
    %162 = vector.broadcast %161 : vector<24x1xf32> to vector<24x16xf32>
    %163 = arith.mulf %158, %162 : vector<24x16xf32>
    %164 = vector.broadcast %144 : vector<1x16xf32> to vector<24x16xf32>
    %165 = arith.mulf %163, %164 : vector<24x16xf32>
    %166 = vector.broadcast %145 : vector<1x16xf32> to vector<24x16xf32>
    %167 = arith.addf %165, %166 : vector<24x16xf32>
    %168 = vector.extract_strided_slice %143 {offsets = [0, 0, 0], sizes = [1, 16, 16], strides = [1, 1, 1]} : vector<3x16x16xf32> to vector<1x16x16xf32>
    %169 = vector.shape_cast %168 : vector<1x16x16xf32> to vector<16x16xf32>
    %cst_63 = arith.constant dense<0.000000e+00> : vector<24x16xf32>
    %170 = tpu.matmul %167, %169, %cst_63 {dimension_numbers = #tpu.dot_dimension_numbers<[1], [0], [0], [1], [0, 0, 1, 1], [], []>} : vector<24x16xf32>, vector<16x16xf32>, vector<24x16xf32> -> vector<24x16xf32>
    %171 = vector.extract_strided_slice %141 {offsets = [2, 0], sizes = [1, 16], strides = [1, 1]} : vector<8x16xf32> to vector<1x16xf32>
    %172 = vector.broadcast %171 : vector<1x16xf32> to vector<24x16xf32>
    %173 = arith.addf %170, %172 : vector<24x16xf32>
    %174 = vector.extract_strided_slice %143 {offsets = [1, 0, 0], sizes = [1, 16, 16], strides = [1, 1, 1]} : vector<3x16x16xf32> to vector<1x16x16xf32>
    %175 = vector.shape_cast %174 : vector<1x16x16xf32> to vector<16x16xf32>
    %cst_64 = arith.constant dense<0.000000e+00> : vector<24x16xf32>
    %176 = tpu.matmul %167, %175, %cst_64 {dimension_numbers = #tpu.dot_dimension_numbers<[1], [0], [0], [1], [0, 0, 1, 1], [], []>} : vector<24x16xf32>, vector<16x16xf32>, vector<24x16xf32> -> vector<24x16xf32>
    %177 = vector.extract_strided_slice %141 {offsets = [3, 0], sizes = [1, 16], strides = [1, 1]} : vector<8x16xf32> to vector<1x16xf32>
    %178 = vector.broadcast %177 : vector<1x16xf32> to vector<24x16xf32>
    %179 = arith.addf %176, %178 : vector<24x16xf32>
    %180 = vector.extract_strided_slice %143 {offsets = [2, 0, 0], sizes = [1, 16, 16], strides = [1, 1, 1]} : vector<3x16x16xf32> to vector<1x16x16xf32>
    %181 = vector.shape_cast %180 : vector<1x16x16xf32> to vector<16x16xf32>
    %cst_65 = arith.constant dense<0.000000e+00> : vector<24x16xf32>
    %182 = tpu.matmul %167, %181, %cst_65 {dimension_numbers = #tpu.dot_dimension_numbers<[1], [0], [0], [1], [0, 0, 1, 1], [], []>} : vector<24x16xf32>, vector<16x16xf32>, vector<24x16xf32> -> vector<24x16xf32>
    %183 = vector.extract_strided_slice %141 {offsets = [4, 0], sizes = [1, 16], strides = [1, 1]} : vector<8x16xf32> to vector<1x16xf32>
    %184 = vector.broadcast %183 : vector<1x16xf32> to vector<24x16xf32>
    %185 = arith.addf %182, %184 : vector<24x16xf32>
    %186 = vector.broadcast %1 : vector<1x16xf32> to vector<24x16xf32>
    %187 = arith.mulf %179, %186 : vector<24x16xf32>
    %188 = tpu.transpose %187, [1, 0] : vector<24x16xf32> -> vector<16x24xf32>
    %cst_66 = arith.constant dense<0.000000e+00> : vector<24x24xf32>
    %189 = tpu.matmul %173, %188, %cst_66 {dimension_numbers = #tpu.dot_dimension_numbers<[1], [0], [0], [1], [0, 0, 1, 1], [], []>} : vector<24x16xf32>, vector<16x24xf32>, vector<24x24xf32> -> vector<24x24xf32>
    %190 = arith.addf %189, %9 : vector<24x24xf32>
    %cst_67 = arith.constant dense<0xFF800000> : vector<24xf32>
    %191 = vector.multi_reduction <maximumf>, %190, %cst_67 [1] : vector<24x24xf32> to vector<24xf32>
    %192 = vector.shape_cast %191 : vector<24xf32> to vector<24x1xf32>
    %193 = vector.broadcast %192 : vector<24x1xf32> to vector<24x24xf32>
    %194 = arith.subf %190, %193 : vector<24x24xf32>
    %195 = math.exp %194 : vector<24x24xf32>
    %cst_68 = arith.constant dense<0.000000e+00> : vector<24xf32>
    %196 = vector.multi_reduction <add>, %195, %cst_68 [1] : vector<24x24xf32> to vector<24xf32>
    %197 = vector.shape_cast %196 : vector<24xf32> to vector<24x1xf32>
    %198 = tpu.reciprocal %197 {approx = true} : vector<24x1xf32> -> vector<24x1xf32>
    %199 = vector.broadcast %198 : vector<24x1xf32> to vector<24x24xf32>
    %200 = arith.mulf %195, %199 : vector<24x24xf32>
    %201 = vector.broadcast %1 : vector<1x16xf32> to vector<24x16xf32>
    %202 = arith.mulf %185, %201 : vector<24x16xf32>
    %cst_69 = arith.constant dense<0.000000e+00> : vector<24x16xf32>
    %203 = tpu.matmul %200, %202, %cst_69 {dimension_numbers = #tpu.dot_dimension_numbers<[1], [0], [0], [1], [0, 0, 1, 1], [], []>} : vector<24x24xf32>, vector<24x16xf32>, vector<24x16xf32> -> vector<24x16xf32>
    %204 = vector.broadcast %2 : vector<1x16xf32> to vector<24x16xf32>
    %205 = arith.mulf %179, %204 : vector<24x16xf32>
    %206 = tpu.transpose %205, [1, 0] : vector<24x16xf32> -> vector<16x24xf32>
    %cst_70 = arith.constant dense<0.000000e+00> : vector<24x24xf32>
    %207 = tpu.matmul %173, %206, %cst_70 {dimension_numbers = #tpu.dot_dimension_numbers<[1], [0], [0], [1], [0, 0, 1, 1], [], []>} : vector<24x16xf32>, vector<16x24xf32>, vector<24x24xf32> -> vector<24x24xf32>
    %208 = arith.addf %207, %9 : vector<24x24xf32>
    %cst_71 = arith.constant dense<0xFF800000> : vector<24xf32>
    %209 = vector.multi_reduction <maximumf>, %208, %cst_71 [1] : vector<24x24xf32> to vector<24xf32>
    %210 = vector.shape_cast %209 : vector<24xf32> to vector<24x1xf32>
    %211 = vector.broadcast %210 : vector<24x1xf32> to vector<24x24xf32>
    %212 = arith.subf %208, %211 : vector<24x24xf32>
    %213 = math.exp %212 : vector<24x24xf32>
    %cst_72 = arith.constant dense<0.000000e+00> : vector<24xf32>
    %214 = vector.multi_reduction <add>, %213, %cst_72 [1] : vector<24x24xf32> to vector<24xf32>
    %215 = vector.shape_cast %214 : vector<24xf32> to vector<24x1xf32>
    %216 = tpu.reciprocal %215 {approx = true} : vector<24x1xf32> -> vector<24x1xf32>
    %217 = vector.broadcast %216 : vector<24x1xf32> to vector<24x24xf32>
    %218 = arith.mulf %213, %217 : vector<24x24xf32>
    %219 = vector.broadcast %2 : vector<1x16xf32> to vector<24x16xf32>
    %220 = arith.mulf %185, %219 : vector<24x16xf32>
    %cst_73 = arith.constant dense<0.000000e+00> : vector<24x16xf32>
    %221 = tpu.matmul %218, %220, %cst_73 {dimension_numbers = #tpu.dot_dimension_numbers<[1], [0], [0], [1], [0, 0, 1, 1], [], []>} : vector<24x24xf32>, vector<24x16xf32>, vector<24x16xf32> -> vector<24x16xf32>
    %222 = arith.addf %203, %221 : vector<24x16xf32>
    %223 = arith.addf %139, %222 : vector<24x16xf32>
    %224 = vector.extract_strided_slice %141 {offsets = [5, 0], sizes = [1, 16], strides = [1, 1]} : vector<8x16xf32> to vector<1x16xf32>
    %225 = vector.extract_strided_slice %141 {offsets = [6, 0], sizes = [1, 16], strides = [1, 1]} : vector<8x16xf32> to vector<1x16xf32>
    %cst_74 = arith.constant dense<0.000000e+00> : vector<24xf32>
    %226 = vector.multi_reduction <add>, %223, %cst_74 [1] : vector<24x16xf32> to vector<24xf32>
    %227 = vector.shape_cast %226 : vector<24xf32> to vector<24x1xf32>
    %cst_75 = arith.constant 1.600000e+01 : f32
    %228 = vector.broadcast %cst_75 : f32 to vector<24x1xf32>
    %229 = arith.divf %227, %228 : vector<24x1xf32>
    %230 = vector.broadcast %229 : vector<24x1xf32> to vector<24x16xf32>
    %231 = arith.subf %223, %230 : vector<24x16xf32>
    %232 = arith.mulf %231, %231 : vector<24x16xf32>
    %cst_76 = arith.constant dense<0.000000e+00> : vector<24xf32>
    %233 = vector.multi_reduction <add>, %232, %cst_76 [1] : vector<24x16xf32> to vector<24xf32>
    %234 = vector.shape_cast %233 : vector<24xf32> to vector<24x1xf32>
    %cst_77 = arith.constant 1.600000e+01 : f32
    %235 = vector.broadcast %cst_77 : f32 to vector<24x1xf32>
    %236 = arith.divf %234, %235 : vector<24x1xf32>
    %237 = vector.broadcast %229 : vector<24x1xf32> to vector<24x16xf32>
    %238 = arith.subf %223, %237 : vector<24x16xf32>
    %cst_78 = arith.constant 9.99999974E-6 : f32
    %239 = vector.broadcast %cst_78 : f32 to vector<24x1xf32>
    %240 = arith.addf %236, %239 : vector<24x1xf32>
    %241 = math.rsqrt %240 : vector<24x1xf32>
    %242 = vector.broadcast %241 : vector<24x1xf32> to vector<24x16xf32>
    %243 = arith.mulf %238, %242 : vector<24x16xf32>
    %244 = vector.broadcast %224 : vector<1x16xf32> to vector<24x16xf32>
    %245 = arith.mulf %243, %244 : vector<24x16xf32>
    %246 = vector.broadcast %225 : vector<1x16xf32> to vector<24x16xf32>
    %247 = arith.addf %245, %246 : vector<24x16xf32>
    %c1_79 = arith.constant 1 : index
    %c0_80 = arith.constant 0 : index
    %c0_81 = arith.constant 0 : index
    %248 = vector.load %arg10[%c1_79, %c0_80, %c0_81] : memref<4x16x64xf32, #tpu.memory_space<vmem>>, vector<1x16x64xf32>
    %249 = vector.shape_cast %248 : vector<1x16x64xf32> to vector<16x64xf32>
    %cst_82 = arith.constant dense<0.000000e+00> : vector<24x64xf32>
    %250 = tpu.matmul %247, %249, %cst_82 {dimension_numbers = #tpu.dot_dimension_numbers<[1], [0], [0], [1], [0, 0, 1, 1], [], []>} : vector<24x16xf32>, vector<16x64xf32>, vector<24x64xf32> -> vector<24x64xf32>
    %c1_83 = arith.constant 1 : index
    %c0_84 = arith.constant 0 : index
    %c0_85 = arith.constant 0 : index
    %251 = vector.load %arg12[%c1_83, %c0_84, %c0_85] : memref<4x1x64xf32, #tpu.memory_space<vmem>>, vector<1x1x64xf32>
    %252 = vector.shape_cast %251 : vector<1x1x64xf32> to vector<1x64xf32>
    %253 = vector.broadcast %252 : vector<1x64xf32> to vector<24x64xf32>
    %254 = arith.addf %250, %253 : vector<24x64xf32>
    %cst_86 = arith.constant 5.000000e-01 : f32
    %255 = vector.broadcast %cst_86 : f32 to vector<24x64xf32>
    %256 = arith.mulf %255, %254 : vector<24x64xf32>
    %cst_87 = arith.constant 1.41421354 : f32
    %257 = vector.broadcast %cst_87 : f32 to vector<24x64xf32>
    %258 = arith.divf %254, %257 : vector<24x64xf32>
    %259 = math.erf %258 : vector<24x64xf32>
    %cst_88 = arith.constant 1.000000e+00 : f32
    %260 = vector.broadcast %cst_88 : f32 to vector<24x64xf32>
    %261 = arith.addf %260, %259 : vector<24x64xf32>
    %262 = arith.mulf %256, %261 : vector<24x64xf32>
    %c1_89 = arith.constant 1 : index
    %c0_90 = arith.constant 0 : index
    %c0_91 = arith.constant 0 : index
    %263 = vector.load %arg11[%c1_89, %c0_90, %c0_91] : memref<4x64x16xf32, #tpu.memory_space<vmem>>, vector<1x64x16xf32>
    %264 = vector.shape_cast %263 : vector<1x64x16xf32> to vector<64x16xf32>
    %cst_92 = arith.constant dense<0.000000e+00> : vector<24x16xf32>
    %265 = tpu.matmul %262, %264, %cst_92 {dimension_numbers = #tpu.dot_dimension_numbers<[1], [0], [0], [1], [0, 0, 1, 1], [], []>} : vector<24x64xf32>, vector<64x16xf32>, vector<24x16xf32> -> vector<24x16xf32>
    %266 = vector.extract_strided_slice %141 {offsets = [7, 0], sizes = [1, 16], strides = [1, 1]} : vector<8x16xf32> to vector<1x16xf32>
    %267 = vector.broadcast %266 : vector<1x16xf32> to vector<24x16xf32>
    %268 = arith.addf %265, %267 : vector<24x16xf32>
    %269 = arith.addf %223, %268 : vector<24x16xf32>
    %270 = vector.extract_strided_slice %269 {offsets = [1, 0], sizes = [16, 16], strides = [1, 1]} : vector<24x16xf32> to vector<16x16xf32>
    %271 = vector.extract_strided_slice %0 {offsets = [1, 0], sizes = [1, 16], strides = [1, 1]} : vector<8x16xf32> to vector<1x16xf32>
    %272 = vector.extract_strided_slice %0 {offsets = [2, 0], sizes = [1, 16], strides = [1, 1]} : vector<8x16xf32> to vector<1x16xf32>
    %273 = vector.broadcast %271 : vector<1x16xf32> to vector<16x16xf32>
    %274 = arith.mulf %270, %273 : vector<16x16xf32>
    %275 = vector.broadcast %272 : vector<1x16xf32> to vector<16x16xf32>
    %276 = arith.addf %274, %275 : vector<16x16xf32>
    %cst_93 = arith.constant dense<0.000000e+00> : vector<16xf32>
    %277 = vector.multi_reduction <add>, %276, %cst_93 [1] : vector<16x16xf32> to vector<16xf32>
    %278 = vector.shape_cast %277 : vector<16xf32> to vector<16x1xf32>
    %cst_94 = arith.constant 5.000000e-01 : f32
    %279 = vector.broadcast %cst_94 : f32 to vector<16x1xf32>
    %280 = arith.mulf %279, %278 : vector<16x1xf32>
    %cst_95 = arith.constant 1.41421354 : f32
    %281 = vector.broadcast %cst_95 : f32 to vector<16x1xf32>
    %282 = arith.divf %278, %281 : vector<16x1xf32>
    %283 = math.erf %282 : vector<16x1xf32>
    %cst_96 = arith.constant 1.000000e+00 : f32
    %284 = vector.broadcast %cst_96 : f32 to vector<16x1xf32>
    %285 = arith.addf %284, %283 : vector<16x1xf32>
    %286 = arith.mulf %280, %285 : vector<16x1xf32>
    %287 = tpu.transpose %270, [1, 0] : vector<16x16xf32> -> vector<16x16xf32>
    %cst_97 = arith.constant dense<0.000000e+00> : vector<1x16xf32>
    %288 = tpu.matmul %271, %287, %cst_97 {dimension_numbers = #tpu.dot_dimension_numbers<[1], [0], [0], [1], [0, 0, 1, 1], [], []>} : vector<1x16xf32>, vector<16x16xf32>, vector<1x16xf32> -> vector<1x16xf32>
    %289 = vector.extract_strided_slice %0 {offsets = [2, 0], sizes = [1, 1], strides = [1, 1]} : vector<8x16xf32> to vector<1x1xf32>
    %cst_98 = arith.constant 1.600000e+01 : f32
    %290 = vector.broadcast %cst_98 : f32 to vector<1x1xf32>
    %291 = arith.mulf %289, %290 : vector<1x1xf32>
    %292 = vector.broadcast %291 : vector<1x1xf32> to vector<1x16xf32>
    %293 = arith.addf %288, %292 : vector<1x16xf32>
    %cst_99 = arith.constant 5.000000e-01 : f32
    %294 = vector.broadcast %cst_99 : f32 to vector<1x16xf32>
    %295 = arith.mulf %294, %293 : vector<1x16xf32>
    %cst_100 = arith.constant 1.41421354 : f32
    %296 = vector.broadcast %cst_100 : f32 to vector<1x16xf32>
    %297 = arith.divf %293, %296 : vector<1x16xf32>
    %298 = math.erf %297 : vector<1x16xf32>
    %cst_101 = arith.constant 1.000000e+00 : f32
    %299 = vector.broadcast %cst_101 : f32 to vector<1x16xf32>
    %300 = arith.addf %299, %298 : vector<1x16xf32>
    %301 = arith.mulf %295, %300 : vector<1x16xf32>
    %c0_102 = arith.constant 0 : index
    %c0_103 = arith.constant 0 : index
    %c0_104 = arith.constant 0 : index
    %302 = vector.load %arg14[%c0_102, %c0_103, %c0_104] : memref<1x1x16xf32, #tpu.memory_space<vmem>>, vector<1x1x16xf32>
    %303 = vector.shape_cast %302 : vector<1x1x16xf32> to vector<1x16xf32>
    %304 = vector.shape_cast %301 : vector<1x16xf32> to vector<1x1x16xf32>
    tpu.vector_store %arg14[%c0_102, %c0_103, %c0_104], %304 {strides = array<i32>} : memref<1x1x16xf32, #tpu.memory_space<vmem>>, vector<1x1x16xf32>,
    %305 = vector.extract_strided_slice %0 {offsets = [3, 0], sizes = [1, 16], strides = [1, 1]} : vector<8x16xf32> to vector<1x16xf32>
    %306 = vector.broadcast %286 : vector<16x1xf32> to vector<16x16xf32>
    %307 = vector.broadcast %305 : vector<1x16xf32> to vector<16x16xf32>
    %308 = arith.mulf %306, %307 : vector<16x16xf32>
    %309 = vector.extract_strided_slice %0 {offsets = [4, 0], sizes = [1, 16], strides = [1, 1]} : vector<8x16xf32> to vector<1x16xf32>
    %310 = vector.broadcast %309 : vector<1x16xf32> to vector<16x16xf32>
    %311 = arith.addf %308, %310 : vector<16x16xf32>
    %cst_105 = arith.constant 5.000000e-01 : f32
    %312 = vector.broadcast %cst_105 : f32 to vector<16x16xf32>
    %313 = arith.mulf %312, %311 : vector<16x16xf32>
    %cst_106 = arith.constant 1.41421354 : f32
    %314 = vector.broadcast %cst_106 : f32 to vector<16x16xf32>
    %315 = arith.divf %311, %314 : vector<16x16xf32>
    %316 = math.erf %315 : vector<16x16xf32>
    %cst_107 = arith.constant 1.000000e+00 : f32
    %317 = vector.broadcast %cst_107 : f32 to vector<16x16xf32>
    %318 = arith.addf %317, %316 : vector<16x16xf32>
    %319 = arith.mulf %313, %318 : vector<16x16xf32>
    %c0_108 = arith.constant 0 : index
    %c0_109 = arith.constant 0 : index
    %320 = vector.load %arg5[%c0_108, %c0_109] : memref<16x16xf32, #tpu.memory_space<vmem>>, vector<16x16xf32>
    %c2 = arith.constant 2 : index
    %c0_110 = arith.constant 0 : index
    %c0_111 = arith.constant 0 : index
    %321 = vector.load %arg13[%c2, %c0_110, %c0_111] : memref<4x8x16xf32, #tpu.memory_space<vmem>>, vector<1x8x16xf32>
    %322 = vector.shape_cast %321 : vector<1x8x16xf32> to vector<8x16xf32>
    %c2_112 = arith.constant 2 : index
    %c0_113 = arith.constant 0 : index
    %c0_114 = arith.constant 0 : index
    %c0_115 = arith.constant 0 : index
    %323 = vector.load %arg9[%c2_112, %c0_113, %c0_114, %c0_115] : memref<4x3x16x16xf32, #tpu.memory_space<vmem>>, vector<1x3x16x16xf32>
    %324 = vector.shape_cast %323 : vector<1x3x16x16xf32> to vector<3x16x16xf32>
    %325 = vector.extract_strided_slice %322 {offsets = [0, 0], sizes = [1, 16], strides = [1, 1]} : vector<8x16xf32> to vector<1x16xf32>
    %326 = vector.extract_strided_slice %322 {offsets = [1, 0], sizes = [1, 16], strides = [1, 1]} : vector<8x16xf32> to vector<1x16xf32>
    %cst_116 = arith.constant dense<0.000000e+00> : vector<16xf32>
    %327 = vector.multi_reduction <add>, %319, %cst_116 [1] : vector<16x16xf32> to vector<16xf32>
    %328 = vector.shape_cast %327 : vector<16xf32> to vector<16x1xf32>
    %cst_117 = arith.constant 1.600000e+01 : f32
    %329 = vector.broadcast %cst_117 : f32 to vector<16x1xf32>
    %330 = arith.divf %328, %329 : vector<16x1xf32>
    %331 = vector.broadcast %330 : vector<16x1xf32> to vector<16x16xf32>
    %332 = arith.subf %319, %331 : vector<16x16xf32>
    %333 = arith.mulf %332, %332 : vector<16x16xf32>
    %cst_118 = arith.constant dense<0.000000e+00> : vector<16xf32>
    %334 = vector.multi_reduction <add>, %333, %cst_118 [1] : vector<16x16xf32> to vector<16xf32>
    %335 = vector.shape_cast %334 : vector<16xf32> to vector<16x1xf32>
    %cst_119 = arith.constant 1.600000e+01 : f32
    %336 = vector.broadcast %cst_119 : f32 to vector<16x1xf32>
    %337 = arith.divf %335, %336 : vector<16x1xf32>
    %338 = vector.broadcast %330 : vector<16x1xf32> to vector<16x16xf32>
    %339 = arith.subf %319, %338 : vector<16x16xf32>
    %cst_120 = arith.constant 9.99999974E-6 : f32
    %340 = vector.broadcast %cst_120 : f32 to vector<16x1xf32>
    %341 = arith.addf %337, %340 : vector<16x1xf32>
    %342 = math.rsqrt %341 : vector<16x1xf32>
    %343 = vector.broadcast %342 : vector<16x1xf32> to vector<16x16xf32>
    %344 = arith.mulf %339, %343 : vector<16x16xf32>
    %345 = vector.broadcast %325 : vector<1x16xf32> to vector<16x16xf32>
    %346 = arith.mulf %344, %345 : vector<16x16xf32>
    %347 = vector.broadcast %326 : vector<1x16xf32> to vector<16x16xf32>
    %348 = arith.addf %346, %347 : vector<16x16xf32>
    %349 = vector.extract_strided_slice %324 {offsets = [0, 0, 0], sizes = [1, 16, 16], strides = [1, 1, 1]} : vector<3x16x16xf32> to vector<1x16x16xf32>
    %350 = vector.shape_cast %349 : vector<1x16x16xf32> to vector<16x16xf32>
    %cst_121 = arith.constant dense<0.000000e+00> : vector<16x16xf32>
    %351 = tpu.matmul %348, %350, %cst_121 {dimension_numbers = #tpu.dot_dimension_numbers<[1], [0], [0], [1], [0, 0, 1, 1], [], []>} : vector<16x16xf32>, vector<16x16xf32>, vector<16x16xf32> -> vector<16x16xf32>
    %352 = vector.extract_strided_slice %322 {offsets = [2, 0], sizes = [1, 16], strides = [1, 1]} : vector<8x16xf32> to vector<1x16xf32>
    %353 = vector.broadcast %352 : vector<1x16xf32> to vector<16x16xf32>
    %354 = arith.addf %351, %353 : vector<16x16xf32>
    %355 = vector.extract_strided_slice %324 {offsets = [1, 0, 0], sizes = [1, 16, 16], strides = [1, 1, 1]} : vector<3x16x16xf32> to vector<1x16x16xf32>
    %356 = vector.shape_cast %355 : vector<1x16x16xf32> to vector<16x16xf32>
    %cst_122 = arith.constant dense<0.000000e+00> : vector<16x16xf32>
    %357 = tpu.matmul %348, %356, %cst_122 {dimension_numbers = #tpu.dot_dimension_numbers<[1], [0], [0], [1], [0, 0, 1, 1], [], []>} : vector<16x16xf32>, vector<16x16xf32>, vector<16x16xf32> -> vector<16x16xf32>
    %358 = vector.extract_strided_slice %322 {offsets = [3, 0], sizes = [1, 16], strides = [1, 1]} : vector<8x16xf32> to vector<1x16xf32>
    %359 = vector.broadcast %358 : vector<1x16xf32> to vector<16x16xf32>
    %360 = arith.addf %357, %359 : vector<16x16xf32>
    %361 = vector.extract_strided_slice %324 {offsets = [2, 0, 0], sizes = [1, 16, 16], strides = [1, 1, 1]} : vector<3x16x16xf32> to vector<1x16x16xf32>
    %362 = vector.shape_cast %361 : vector<1x16x16xf32> to vector<16x16xf32>
    %cst_123 = arith.constant dense<0.000000e+00> : vector<16x16xf32>
    %363 = tpu.matmul %348, %362, %cst_123 {dimension_numbers = #tpu.dot_dimension_numbers<[1], [0], [0], [1], [0, 0, 1, 1], [], []>} : vector<16x16xf32>, vector<16x16xf32>, vector<16x16xf32> -> vector<16x16xf32>
    %364 = vector.extract_strided_slice %322 {offsets = [4, 0], sizes = [1, 16], strides = [1, 1]} : vector<8x16xf32> to vector<1x16xf32>
    %365 = vector.broadcast %364 : vector<1x16xf32> to vector<16x16xf32>
    %366 = arith.addf %363, %365 : vector<16x16xf32>
    %367 = vector.broadcast %1 : vector<1x16xf32> to vector<16x16xf32>
    %368 = arith.mulf %360, %367 : vector<16x16xf32>
    %369 = tpu.transpose %368, [1, 0] : vector<16x16xf32> -> vector<16x16xf32>
    %cst_124 = arith.constant dense<0.000000e+00> : vector<16x16xf32>
    %370 = tpu.matmul %354, %369, %cst_124 {dimension_numbers = #tpu.dot_dimension_numbers<[1], [0], [0], [1], [0, 0, 1, 1], [], []>} : vector<16x16xf32>, vector<16x16xf32>, vector<16x16xf32> -> vector<16x16xf32>
    %371 = arith.addf %370, %320 : vector<16x16xf32>
    %cst_125 = arith.constant dense<0xFF800000> : vector<16xf32>
    %372 = vector.multi_reduction <maximumf>, %371, %cst_125 [1] : vector<16x16xf32> to vector<16xf32>
    %373 = vector.shape_cast %372 : vector<16xf32> to vector<16x1xf32>
    %374 = vector.broadcast %373 : vector<16x1xf32> to vector<16x16xf32>
    %375 = arith.subf %371, %374 : vector<16x16xf32>
    %376 = math.exp %375 : vector<16x16xf32>
    %cst_126 = arith.constant dense<0.000000e+00> : vector<16xf32>
    %377 = vector.multi_reduction <add>, %376, %cst_126 [1] : vector<16x16xf32> to vector<16xf32>
    %378 = vector.shape_cast %377 : vector<16xf32> to vector<16x1xf32>
    %379 = tpu.reciprocal %378 {approx = true} : vector<16x1xf32> -> vector<16x1xf32>
    %380 = vector.broadcast %379 : vector<16x1xf32> to vector<16x16xf32>
    %381 = arith.mulf %376, %380 : vector<16x16xf32>
    %382 = vector.broadcast %1 : vector<1x16xf32> to vector<16x16xf32>
    %383 = arith.mulf %366, %382 : vector<16x16xf32>
    %cst_127 = arith.constant dense<0.000000e+00> : vector<16x16xf32>
    %384 = tpu.matmul %381, %383, %cst_127 {dimension_numbers = #tpu.dot_dimension_numbers<[1], [0], [0], [1], [0, 0, 1, 1], [], []>} : vector<16x16xf32>, vector<16x16xf32>, vector<16x16xf32> -> vector<16x16xf32>
    %385 = vector.broadcast %2 : vector<1x16xf32> to vector<16x16xf32>
    %386 = arith.mulf %360, %385 : vector<16x16xf32>
    %387 = tpu.transpose %386, [1, 0] : vector<16x16xf32> -> vector<16x16xf32>
    %cst_128 = arith.constant dense<0.000000e+00> : vector<16x16xf32>
    %388 = tpu.matmul %354, %387, %cst_128 {dimension_numbers = #tpu.dot_dimension_numbers<[1], [0], [0], [1], [0, 0, 1, 1], [], []>} : vector<16x16xf32>, vector<16x16xf32>, vector<16x16xf32> -> vector<16x16xf32>
    %389 = arith.addf %388, %320 : vector<16x16xf32>
    %cst_129 = arith.constant dense<0xFF800000> : vector<16xf32>
    %390 = vector.multi_reduction <maximumf>, %389, %cst_129 [1] : vector<16x16xf32> to vector<16xf32>
    %391 = vector.shape_cast %390 : vector<16xf32> to vector<16x1xf32>
    %392 = vector.broadcast %391 : vector<16x1xf32> to vector<16x16xf32>
    %393 = arith.subf %389, %392 : vector<16x16xf32>
    %394 = math.exp %393 : vector<16x16xf32>
    %cst_130 = arith.constant dense<0.000000e+00> : vector<16xf32>
    %395 = vector.multi_reduction <add>, %394, %cst_130 [1] : vector<16x16xf32> to vector<16xf32>
    %396 = vector.shape_cast %395 : vector<16xf32> to vector<16x1xf32>
    %397 = tpu.reciprocal %396 {approx = true} : vector<16x1xf32> -> vector<16x1xf32>
    %398 = vector.broadcast %397 : vector<16x1xf32> to vector<16x16xf32>
    %399 = arith.mulf %394, %398 : vector<16x16xf32>
    %400 = vector.broadcast %2 : vector<1x16xf32> to vector<16x16xf32>
    %401 = arith.mulf %366, %400 : vector<16x16xf32>
    %cst_131 = arith.constant dense<0.000000e+00> : vector<16x16xf32>
    %402 = tpu.matmul %399, %401, %cst_131 {dimension_numbers = #tpu.dot_dimension_numbers<[1], [0], [0], [1], [0, 0, 1, 1], [], []>} : vector<16x16xf32>, vector<16x16xf32>, vector<16x16xf32> -> vector<16x16xf32>
    %403 = arith.addf %384, %402 : vector<16x16xf32>
    %404 = arith.addf %319, %403 : vector<16x16xf32>
    %405 = vector.extract_strided_slice %322 {offsets = [5, 0], sizes = [1, 16], strides = [1, 1]} : vector<8x16xf32> to vector<1x16xf32>
    %406 = vector.extract_strided_slice %322 {offsets = [6, 0], sizes = [1, 16], strides = [1, 1]} : vector<8x16xf32> to vector<1x16xf32>
    %cst_132 = arith.constant dense<0.000000e+00> : vector<16xf32>
    %407 = vector.multi_reduction <add>, %404, %cst_132 [1] : vector<16x16xf32> to vector<16xf32>
    %408 = vector.shape_cast %407 : vector<16xf32> to vector<16x1xf32>
    %cst_133 = arith.constant 1.600000e+01 : f32
    %409 = vector.broadcast %cst_133 : f32 to vector<16x1xf32>
    %410 = arith.divf %408, %409 : vector<16x1xf32>
    %411 = vector.broadcast %410 : vector<16x1xf32> to vector<16x16xf32>
    %412 = arith.subf %404, %411 : vector<16x16xf32>
    %413 = arith.mulf %412, %412 : vector<16x16xf32>
    %cst_134 = arith.constant dense<0.000000e+00> : vector<16xf32>
    %414 = vector.multi_reduction <add>, %413, %cst_134 [1] : vector<16x16xf32> to vector<16xf32>
    %415 = vector.shape_cast %414 : vector<16xf32> to vector<16x1xf32>
    %cst_135 = arith.constant 1.600000e+01 : f32
    %416 = vector.broadcast %cst_135 : f32 to vector<16x1xf32>
    %417 = arith.divf %415, %416 : vector<16x1xf32>
    %418 = vector.broadcast %410 : vector<16x1xf32> to vector<16x16xf32>
    %419 = arith.subf %404, %418 : vector<16x16xf32>
    %cst_136 = arith.constant 9.99999974E-6 : f32
    %420 = vector.broadcast %cst_136 : f32 to vector<16x1xf32>
    %421 = arith.addf %417, %420 : vector<16x1xf32>
    %422 = math.rsqrt %421 : vector<16x1xf32>
    %423 = vector.broadcast %422 : vector<16x1xf32> to vector<16x16xf32>
    %424 = arith.mulf %419, %423 : vector<16x16xf32>
    %425 = vector.broadcast %405 : vector<1x16xf32> to vector<16x16xf32>
    %426 = arith.mulf %424, %425 : vector<16x16xf32>
    %427 = vector.broadcast %406 : vector<1x16xf32> to vector<16x16xf32>
    %428 = arith.addf %426, %427 : vector<16x16xf32>
    %c2_137 = arith.constant 2 : index
    %c0_138 = arith.constant 0 : index
    %c0_139 = arith.constant 0 : index
    %429 = vector.load %arg10[%c2_137, %c0_138, %c0_139] : memref<4x16x64xf32, #tpu.memory_space<vmem>>, vector<1x16x64xf32>
    %430 = vector.shape_cast %429 : vector<1x16x64xf32> to vector<16x64xf32>
    %cst_140 = arith.constant dense<0.000000e+00> : vector<16x64xf32>
    %431 = tpu.matmul %428, %430, %cst_140 {dimension_numbers = #tpu.dot_dimension_numbers<[1], [0], [0], [1], [0, 0, 1, 1], [], []>} : vector<16x16xf32>, vector<16x64xf32>, vector<16x64xf32> -> vector<16x64xf32>
    %c2_141 = arith.constant 2 : index
    %c0_142 = arith.constant 0 : index
    %c0_143 = arith.constant 0 : index
    %432 = vector.load %arg12[%c2_141, %c0_142, %c0_143] : memref<4x1x64xf32, #tpu.memory_space<vmem>>, vector<1x1x64xf32>
    %433 = vector.shape_cast %432 : vector<1x1x64xf32> to vector<1x64xf32>
    %434 = vector.broadcast %433 : vector<1x64xf32> to vector<16x64xf32>
    %435 = arith.addf %431, %434 : vector<16x64xf32>
    %cst_144 = arith.constant 5.000000e-01 : f32
    %436 = vector.broadcast %cst_144 : f32 to vector<16x64xf32>
    %437 = arith.mulf %436, %435 : vector<16x64xf32>
    %cst_145 = arith.constant 1.41421354 : f32
    %438 = vector.broadcast %cst_145 : f32 to vector<16x64xf32>
    %439 = arith.divf %435, %438 : vector<16x64xf32>
    %440 = math.erf %439 : vector<16x64xf32>
    %cst_146 = arith.constant 1.000000e+00 : f32
    %441 = vector.broadcast %cst_146 : f32 to vector<16x64xf32>
    %442 = arith.addf %441, %440 : vector<16x64xf32>
    %443 = arith.mulf %437, %442 : vector<16x64xf32>
    %c2_147 = arith.constant 2 : index
    %c0_148 = arith.constant 0 : index
    %c0_149 = arith.constant 0 : index
    %444 = vector.load %arg11[%c2_147, %c0_148, %c0_149] : memref<4x64x16xf32, #tpu.memory_space<vmem>>, vector<1x64x16xf32>
    %445 = vector.shape_cast %444 : vector<1x64x16xf32> to vector<64x16xf32>
    %cst_150 = arith.constant dense<0.000000e+00> : vector<16x16xf32>
    %446 = tpu.matmul %443, %445, %cst_150 {dimension_numbers = #tpu.dot_dimension_numbers<[1], [0], [0], [1], [0, 0, 1, 1], [], []>} : vector<16x64xf32>, vector<64x16xf32>, vector<16x16xf32> -> vector<16x16xf32>
    %447 = vector.extract_strided_slice %322 {offsets = [7, 0], sizes = [1, 16], strides = [1, 1]} : vector<8x16xf32> to vector<1x16xf32>
    %448 = vector.broadcast %447 : vector<1x16xf32> to vector<16x16xf32>
    %449 = arith.addf %446, %448 : vector<16x16xf32>
    %450 = arith.addf %404, %449 : vector<16x16xf32>
    %c3 = arith.constant 3 : index
    %c0_151 = arith.constant 0 : index
    %c0_152 = arith.constant 0 : index
    %451 = vector.load %arg13[%c3, %c0_151, %c0_152] : memref<4x8x16xf32, #tpu.memory_space<vmem>>, vector<1x8x16xf32>
    %452 = vector.shape_cast %451 : vector<1x8x16xf32> to vector<8x16xf32>
    %c3_153 = arith.constant 3 : index
    %c0_154 = arith.constant 0 : index
    %c0_155 = arith.constant 0 : index
    %c0_156 = arith.constant 0 : index
    %453 = vector.load %arg9[%c3_153, %c0_154, %c0_155, %c0_156] : memref<4x3x16x16xf32, #tpu.memory_space<vmem>>, vector<1x3x16x16xf32>
    %454 = vector.shape_cast %453 : vector<1x3x16x16xf32> to vector<3x16x16xf32>
    %455 = vector.extract_strided_slice %452 {offsets = [0, 0], sizes = [1, 16], strides = [1, 1]} : vector<8x16xf32> to vector<1x16xf32>
    %456 = vector.extract_strided_slice %452 {offsets = [1, 0], sizes = [1, 16], strides = [1, 1]} : vector<8x16xf32> to vector<1x16xf32>
    %cst_157 = arith.constant dense<0.000000e+00> : vector<16xf32>
    %457 = vector.multi_reduction <add>, %450, %cst_157 [1] : vector<16x16xf32> to vector<16xf32>
    %458 = vector.shape_cast %457 : vector<16xf32> to vector<16x1xf32>
    %cst_158 = arith.constant 1.600000e+01 : f32
    %459 = vector.broadcast %cst_158 : f32 to vector<16x1xf32>
    %460 = arith.divf %458, %459 : vector<16x1xf32>
    %461 = vector.broadcast %460 : vector<16x1xf32> to vector<16x16xf32>
    %462 = arith.subf %450, %461 : vector<16x16xf32>
    %463 = arith.mulf %462, %462 : vector<16x16xf32>
    %cst_159 = arith.constant dense<0.000000e+00> : vector<16xf32>
    %464 = vector.multi_reduction <add>, %463, %cst_159 [1] : vector<16x16xf32> to vector<16xf32>
    %465 = vector.shape_cast %464 : vector<16xf32> to vector<16x1xf32>
    %cst_160 = arith.constant 1.600000e+01 : f32
    %466 = vector.broadcast %cst_160 : f32 to vector<16x1xf32>
    %467 = arith.divf %465, %466 : vector<16x1xf32>
    %468 = vector.broadcast %460 : vector<16x1xf32> to vector<16x16xf32>
    %469 = arith.subf %450, %468 : vector<16x16xf32>
    %cst_161 = arith.constant 9.99999974E-6 : f32
    %470 = vector.broadcast %cst_161 : f32 to vector<16x1xf32>
    %471 = arith.addf %467, %470 : vector<16x1xf32>
    %472 = math.rsqrt %471 : vector<16x1xf32>
    %473 = vector.broadcast %472 : vector<16x1xf32> to vector<16x16xf32>
    %474 = arith.mulf %469, %473 : vector<16x16xf32>
    %475 = vector.broadcast %455 : vector<1x16xf32> to vector<16x16xf32>
    %476 = arith.mulf %474, %475 : vector<16x16xf32>
    %477 = vector.broadcast %456 : vector<1x16xf32> to vector<16x16xf32>
    %478 = arith.addf %476, %477 : vector<16x16xf32>
    %479 = vector.extract_strided_slice %454 {offsets = [0, 0, 0], sizes = [1, 16, 16], strides = [1, 1, 1]} : vector<3x16x16xf32> to vector<1x16x16xf32>
    %480 = vector.shape_cast %479 : vector<1x16x16xf32> to vector<16x16xf32>
    %cst_162 = arith.constant dense<0.000000e+00> : vector<16x16xf32>
    %481 = tpu.matmul %478, %480, %cst_162 {dimension_numbers = #tpu.dot_dimension_numbers<[1], [0], [0], [1], [0, 0, 1, 1], [], []>} : vector<16x16xf32>, vector<16x16xf32>, vector<16x16xf32> -> vector<16x16xf32>
    %482 = vector.extract_strided_slice %452 {offsets = [2, 0], sizes = [1, 16], strides = [1, 1]} : vector<8x16xf32> to vector<1x16xf32>
    %483 = vector.broadcast %482 : vector<1x16xf32> to vector<16x16xf32>
    %484 = arith.addf %481, %483 : vector<16x16xf32>
    %485 = vector.extract_strided_slice %454 {offsets = [1, 0, 0], sizes = [1, 16, 16], strides = [1, 1, 1]} : vector<3x16x16xf32> to vector<1x16x16xf32>
    %486 = vector.shape_cast %485 : vector<1x16x16xf32> to vector<16x16xf32>
    %cst_163 = arith.constant dense<0.000000e+00> : vector<16x16xf32>
    %487 = tpu.matmul %478, %486, %cst_163 {dimension_numbers = #tpu.dot_dimension_numbers<[1], [0], [0], [1], [0, 0, 1, 1], [], []>} : vector<16x16xf32>, vector<16x16xf32>, vector<16x16xf32> -> vector<16x16xf32>
    %488 = vector.extract_strided_slice %452 {offsets = [3, 0], sizes = [1, 16], strides = [1, 1]} : vector<8x16xf32> to vector<1x16xf32>
    %489 = vector.broadcast %488 : vector<1x16xf32> to vector<16x16xf32>
    %490 = arith.addf %487, %489 : vector<16x16xf32>
    %491 = vector.extract_strided_slice %454 {offsets = [2, 0, 0], sizes = [1, 16, 16], strides = [1, 1, 1]} : vector<3x16x16xf32> to vector<1x16x16xf32>
    %492 = vector.shape_cast %491 : vector<1x16x16xf32> to vector<16x16xf32>
    %cst_164 = arith.constant dense<0.000000e+00> : vector<16x16xf32>
    %493 = tpu.matmul %478, %492, %cst_164 {dimension_numbers = #tpu.dot_dimension_numbers<[1], [0], [0], [1], [0, 0, 1, 1], [], []>} : vector<16x16xf32>, vector<16x16xf32>, vector<16x16xf32> -> vector<16x16xf32>
    %494 = vector.extract_strided_slice %452 {offsets = [4, 0], sizes = [1, 16], strides = [1, 1]} : vector<8x16xf32> to vector<1x16xf32>
    %495 = vector.broadcast %494 : vector<1x16xf32> to vector<16x16xf32>
    %496 = arith.addf %493, %495 : vector<16x16xf32>
    %497 = vector.broadcast %1 : vector<1x16xf32> to vector<16x16xf32>
    %498 = arith.mulf %490, %497 : vector<16x16xf32>
    %499 = tpu.transpose %498, [1, 0] : vector<16x16xf32> -> vector<16x16xf32>
    %cst_165 = arith.constant dense<0.000000e+00> : vector<16x16xf32>
    %500 = tpu.matmul %484, %499, %cst_165 {dimension_numbers = #tpu.dot_dimension_numbers<[1], [0], [0], [1], [0, 0, 1, 1], [], []>} : vector<16x16xf32>, vector<16x16xf32>, vector<16x16xf32> -> vector<16x16xf32>
    %501 = arith.addf %500, %320 : vector<16x16xf32>
    %cst_166 = arith.constant dense<0xFF800000> : vector<16xf32>
    %502 = vector.multi_reduction <maximumf>, %501, %cst_166 [1] : vector<16x16xf32> to vector<16xf32>
    %503 = vector.shape_cast %502 : vector<16xf32> to vector<16x1xf32>
    %504 = vector.broadcast %503 : vector<16x1xf32> to vector<16x16xf32>
    %505 = arith.subf %501, %504 : vector<16x16xf32>
    %506 = math.exp %505 : vector<16x16xf32>
    %cst_167 = arith.constant dense<0.000000e+00> : vector<16xf32>
    %507 = vector.multi_reduction <add>, %506, %cst_167 [1] : vector<16x16xf32> to vector<16xf32>
    %508 = vector.shape_cast %507 : vector<16xf32> to vector<16x1xf32>
    %509 = tpu.reciprocal %508 {approx = true} : vector<16x1xf32> -> vector<16x1xf32>
    %510 = vector.broadcast %509 : vector<16x1xf32> to vector<16x16xf32>
    %511 = arith.mulf %506, %510 : vector<16x16xf32>
    %512 = vector.broadcast %1 : vector<1x16xf32> to vector<16x16xf32>
    %513 = arith.mulf %496, %512 : vector<16x16xf32>
    %cst_168 = arith.constant dense<0.000000e+00> : vector<16x16xf32>
    %514 = tpu.matmul %511, %513, %cst_168 {dimension_numbers = #tpu.dot_dimension_numbers<[1], [0], [0], [1], [0, 0, 1, 1], [], []>} : vector<16x16xf32>, vector<16x16xf32>, vector<16x16xf32> -> vector<16x16xf32>
    %515 = vector.broadcast %2 : vector<1x16xf32> to vector<16x16xf32>
    %516 = arith.mulf %490, %515 : vector<16x16xf32>
    %517 = tpu.transpose %516, [1, 0] : vector<16x16xf32> -> vector<16x16xf32>
    %cst_169 = arith.constant dense<0.000000e+00> : vector<16x16xf32>
    %518 = tpu.matmul %484, %517, %cst_169 {dimension_numbers = #tpu.dot_dimension_numbers<[1], [0], [0], [1], [0, 0, 1, 1], [], []>} : vector<16x16xf32>, vector<16x16xf32>, vector<16x16xf32> -> vector<16x16xf32>
    %519 = arith.addf %518, %320 : vector<16x16xf32>
    %cst_170 = arith.constant dense<0xFF800000> : vector<16xf32>
    %520 = vector.multi_reduction <maximumf>, %519, %cst_170 [1] : vector<16x16xf32> to vector<16xf32>
    %521 = vector.shape_cast %520 : vector<16xf32> to vector<16x1xf32>
    %522 = vector.broadcast %521 : vector<16x1xf32> to vector<16x16xf32>
    %523 = arith.subf %519, %522 : vector<16x16xf32>
    %524 = math.exp %523 : vector<16x16xf32>
    %cst_171 = arith.constant dense<0.000000e+00> : vector<16xf32>
    %525 = vector.multi_reduction <add>, %524, %cst_171 [1] : vector<16x16xf32> to vector<16xf32>
    %526 = vector.shape_cast %525 : vector<16xf32> to vector<16x1xf32>
    %527 = tpu.reciprocal %526 {approx = true} : vector<16x1xf32> -> vector<16x1xf32>
    %528 = vector.broadcast %527 : vector<16x1xf32> to vector<16x16xf32>
    %529 = arith.mulf %524, %528 : vector<16x16xf32>
    %530 = vector.broadcast %2 : vector<1x16xf32> to vector<16x16xf32>
    %531 = arith.mulf %496, %530 : vector<16x16xf32>
    %cst_172 = arith.constant dense<0.000000e+00> : vector<16x16xf32>
    %532 = tpu.matmul %529, %531, %cst_172 {dimension_numbers = #tpu.dot_dimension_numbers<[1], [0], [0], [1], [0, 0, 1, 1], [], []>} : vector<16x16xf32>, vector<16x16xf32>, vector<16x16xf32> -> vector<16x16xf32>
    %533 = arith.addf %514, %532 : vector<16x16xf32>
    %534 = arith.addf %450, %533 : vector<16x16xf32>
    %535 = vector.extract_strided_slice %452 {offsets = [5, 0], sizes = [1, 16], strides = [1, 1]} : vector<8x16xf32> to vector<1x16xf32>
    %536 = vector.extract_strided_slice %452 {offsets = [6, 0], sizes = [1, 16], strides = [1, 1]} : vector<8x16xf32> to vector<1x16xf32>
    %cst_173 = arith.constant dense<0.000000e+00> : vector<16xf32>
    %537 = vector.multi_reduction <add>, %534, %cst_173 [1] : vector<16x16xf32> to vector<16xf32>
    %538 = vector.shape_cast %537 : vector<16xf32> to vector<16x1xf32>
    %cst_174 = arith.constant 1.600000e+01 : f32
    %539 = vector.broadcast %cst_174 : f32 to vector<16x1xf32>
    %540 = arith.divf %538, %539 : vector<16x1xf32>
    %541 = vector.broadcast %540 : vector<16x1xf32> to vector<16x16xf32>
    %542 = arith.subf %534, %541 : vector<16x16xf32>
    %543 = arith.mulf %542, %542 : vector<16x16xf32>
    %cst_175 = arith.constant dense<0.000000e+00> : vector<16xf32>
    %544 = vector.multi_reduction <add>, %543, %cst_175 [1] : vector<16x16xf32> to vector<16xf32>
    %545 = vector.shape_cast %544 : vector<16xf32> to vector<16x1xf32>
    %cst_176 = arith.constant 1.600000e+01 : f32
    %546 = vector.broadcast %cst_176 : f32 to vector<16x1xf32>
    %547 = arith.divf %545, %546 : vector<16x1xf32>
    %548 = vector.broadcast %540 : vector<16x1xf32> to vector<16x16xf32>
    %549 = arith.subf %534, %548 : vector<16x16xf32>
    %cst_177 = arith.constant 9.99999974E-6 : f32
    %550 = vector.broadcast %cst_177 : f32 to vector<16x1xf32>
    %551 = arith.addf %547, %550 : vector<16x1xf32>
    %552 = math.rsqrt %551 : vector<16x1xf32>
    %553 = vector.broadcast %552 : vector<16x1xf32> to vector<16x16xf32>
    %554 = arith.mulf %549, %553 : vector<16x16xf32>
    %555 = vector.broadcast %535 : vector<1x16xf32> to vector<16x16xf32>
    %556 = arith.mulf %554, %555 : vector<16x16xf32>
    %557 = vector.broadcast %536 : vector<1x16xf32> to vector<16x16xf32>
    %558 = arith.addf %556, %557 : vector<16x16xf32>
    %c3_178 = arith.constant 3 : index
    %c0_179 = arith.constant 0 : index
    %c0_180 = arith.constant 0 : index
    %559 = vector.load %arg10[%c3_178, %c0_179, %c0_180] : memref<4x16x64xf32, #tpu.memory_space<vmem>>, vector<1x16x64xf32>
    %560 = vector.shape_cast %559 : vector<1x16x64xf32> to vector<16x64xf32>
    %cst_181 = arith.constant dense<0.000000e+00> : vector<16x64xf32>
    %561 = tpu.matmul %558, %560, %cst_181 {dimension_numbers = #tpu.dot_dimension_numbers<[1], [0], [0], [1], [0, 0, 1, 1], [], []>} : vector<16x16xf32>, vector<16x64xf32>, vector<16x64xf32> -> vector<16x64xf32>
    %c3_182 = arith.constant 3 : index
    %c0_183 = arith.constant 0 : index
    %c0_184 = arith.constant 0 : index
    %562 = vector.load %arg12[%c3_182, %c0_183, %c0_184] : memref<4x1x64xf32, #tpu.memory_space<vmem>>, vector<1x1x64xf32>
    %563 = vector.shape_cast %562 : vector<1x1x64xf32> to vector<1x64xf32>
    %564 = vector.broadcast %563 : vector<1x64xf32> to vector<16x64xf32>
    %565 = arith.addf %561, %564 : vector<16x64xf32>
    %cst_185 = arith.constant 5.000000e-01 : f32
    %566 = vector.broadcast %cst_185 : f32 to vector<16x64xf32>
    %567 = arith.mulf %566, %565 : vector<16x64xf32>
    %cst_186 = arith.constant 1.41421354 : f32
    %568 = vector.broadcast %cst_186 : f32 to vector<16x64xf32>
    %569 = arith.divf %565, %568 : vector<16x64xf32>
    %570 = math.erf %569 : vector<16x64xf32>
    %cst_187 = arith.constant 1.000000e+00 : f32
    %571 = vector.broadcast %cst_187 : f32 to vector<16x64xf32>
    %572 = arith.addf %571, %570 : vector<16x64xf32>
    %573 = arith.mulf %567, %572 : vector<16x64xf32>
    %c3_188 = arith.constant 3 : index
    %c0_189 = arith.constant 0 : index
    %c0_190 = arith.constant 0 : index
    %574 = vector.load %arg11[%c3_188, %c0_189, %c0_190] : memref<4x64x16xf32, #tpu.memory_space<vmem>>, vector<1x64x16xf32>
    %575 = vector.shape_cast %574 : vector<1x64x16xf32> to vector<64x16xf32>
    %cst_191 = arith.constant dense<0.000000e+00> : vector<16x16xf32>
    %576 = tpu.matmul %573, %575, %cst_191 {dimension_numbers = #tpu.dot_dimension_numbers<[1], [0], [0], [1], [0, 0, 1, 1], [], []>} : vector<16x64xf32>, vector<64x16xf32>, vector<16x16xf32> -> vector<16x16xf32>
    %577 = vector.extract_strided_slice %452 {offsets = [7, 0], sizes = [1, 16], strides = [1, 1]} : vector<8x16xf32> to vector<1x16xf32>
    %578 = vector.broadcast %577 : vector<1x16xf32> to vector<16x16xf32>
    %579 = arith.addf %576, %578 : vector<16x16xf32>
    %580 = arith.addf %534, %579 : vector<16x16xf32>
    %c0_192 = arith.constant 0 : index
    %c0_193 = arith.constant 0 : index
    %581 = vector.load %arg4[%c0_192, %c0_193] : memref<16x16xf32, #tpu.memory_space<vmem>>, vector<16x16xf32>
    %582 = arith.addf %580, %581 : vector<16x16xf32>
    %c0_194 = arith.constant 0 : index
    %c0_195 = arith.constant 0 : index
    %583 = vector.load %arg7[%c0_194, %c0_195] : memref<16x16xf32, #tpu.memory_space<vmem>>, vector<16x16xf32>
    %cst_196 = arith.constant dense<0.000000e+00> : vector<16x16xf32>
    %584 = tpu.matmul %582, %583, %cst_196 {dimension_numbers = #tpu.dot_dimension_numbers<[1], [0], [0], [1], [0, 0, 1, 1], [], []>} : vector<16x16xf32>, vector<16x16xf32>, vector<16x16xf32> -> vector<16x16xf32>
    %585 = vector.extract_strided_slice %0 {offsets = [0, 0], sizes = [1, 16], strides = [1, 1]} : vector<8x16xf32> to vector<1x16xf32>
    %586 = vector.broadcast %585 : vector<1x16xf32> to vector<16x16xf32>
    %587 = arith.addf %584, %586 : vector<16x16xf32>
    %c0_197 = arith.constant 0 : index
    %c0_198 = arith.constant 0 : index
    %c0_199 = arith.constant 0 : index
    %588 = vector.load %arg15[%c0_197, %c0_198, %c0_199] : memref<1x16x16xf32, #tpu.memory_space<vmem>>, vector<1x16x16xf32>
    %589 = vector.shape_cast %588 : vector<1x16x16xf32> to vector<16x16xf32>
    %590 = vector.shape_cast %587 : vector<16x16xf32> to vector<1x16x16xf32>
    tpu.vector_store %arg15[%c0_197, %c0_198, %c0_199], %590 {strides = array<i32>} : memref<1x16x16xf32, #tpu.memory_space<vmem>>, vector<1x16x16xf32>,
    return
  }
  func.func @transform_0(%arg0: i32) -> (i32, i32, i32) {
    %c0_i32 = arith.constant 0 : i32
    %c0_i32_0 = arith.constant 0 : i32
    %c0_i32_1 = arith.constant 0 : i32
    return %arg0, %c0_i32, %c0_i32_0 : i32, i32, i32
  }
  func.func @transform_1(%arg0: i32) -> (i32, i32) {
    %c0_i32 = arith.constant 0 : i32
    %c0_i32_0 = arith.constant 0 : i32
    %c0_i32_1 = arith.constant 0 : i32
    return %c0_i32, %c0_i32_0 : i32, i32
  }
  func.func @transform_2(%arg0: i32) -> (i32, i32) {
    %c0_i32 = arith.constant 0 : i32
    %c0_i32_0 = arith.constant 0 : i32
    %c0_i32_1 = arith.constant 0 : i32
    return %c0_i32, %c0_i32_0 : i32, i32
  }
  func.func @transform_3(%arg0: i32) -> (i32, i32) {
    %c0_i32 = arith.constant 0 : i32
    %c0_i32_0 = arith.constant 0 : i32
    %c0_i32_1 = arith.constant 0 : i32
    return %c0_i32, %c0_i32_0 : i32, i32
  }
  func.func @transform_4(%arg0: i32) -> (i32, i32) {
    %c0_i32 = arith.constant 0 : i32
    %c0_i32_0 = arith.constant 0 : i32
    %c0_i32_1 = arith.constant 0 : i32
    return %c0_i32, %c0_i32_0 : i32, i32
  }
  func.func @transform_5(%arg0: i32) -> (i32, i32) {
    %c0_i32 = arith.constant 0 : i32
    %c0_i32_0 = arith.constant 0 : i32
    %c0_i32_1 = arith.constant 0 : i32
    return %c0_i32, %c0_i32_0 : i32, i32
  }
  func.func @transform_6(%arg0: i32) -> (i32, i32) {
    %c0_i32 = arith.constant 0 : i32
    %c0_i32_0 = arith.constant 0 : i32
    %c0_i32_1 = arith.constant 0 : i32
    return %c0_i32, %c0_i32_0 : i32, i32
  }
  func.func @transform_7(%arg0: i32) -> (i32, i32) {
    %c0_i32 = arith.constant 0 : i32
    %c0_i32_0 = arith.constant 0 : i32
    %c0_i32_1 = arith.constant 0 : i32
    return %c0_i32, %c0_i32_0 : i32, i32
  }
  func.func @transform_8(%arg0: i32) -> (i32, i32, i32, i32) {
    %c0_i32 = arith.constant 0 : i32
    %c0_i32_0 = arith.constant 0 : i32
    %c0_i32_1 = arith.constant 0 : i32
    %c0_i32_2 = arith.constant 0 : i32
    %c0_i32_3 = arith.constant 0 : i32
    return %c0_i32, %c0_i32_0, %c0_i32_1, %c0_i32_2 : i32, i32, i32, i32
  }
  func.func @transform_9(%arg0: i32) -> (i32, i32, i32) {
    %c0_i32 = arith.constant 0 : i32
    %c0_i32_0 = arith.constant 0 : i32
    %c0_i32_1 = arith.constant 0 : i32
    %c0_i32_2 = arith.constant 0 : i32
    return %c0_i32, %c0_i32_0, %c0_i32_1 : i32, i32, i32
  }
  func.func @transform_10(%arg0: i32) -> (i32, i32, i32) {
    %c0_i32 = arith.constant 0 : i32
    %c0_i32_0 = arith.constant 0 : i32
    %c0_i32_1 = arith.constant 0 : i32
    %c0_i32_2 = arith.constant 0 : i32
    return %c0_i32, %c0_i32_0, %c0_i32_1 : i32, i32, i32
  }
  func.func @transform_11(%arg0: i32) -> (i32, i32, i32) {
    %c0_i32 = arith.constant 0 : i32
    %c0_i32_0 = arith.constant 0 : i32
    %c0_i32_1 = arith.constant 0 : i32
    %c0_i32_2 = arith.constant 0 : i32
    return %c0_i32, %c0_i32_0, %c0_i32_1 : i32, i32, i32
  }
  func.func @transform_12(%arg0: i32) -> (i32, i32, i32) {
    %c0_i32 = arith.constant 0 : i32
    %c0_i32_0 = arith.constant 0 : i32
    %c0_i32_1 = arith.constant 0 : i32
    %c0_i32_2 = arith.constant 0 : i32
    return %c0_i32, %c0_i32_0, %c0_i32_1 : i32, i32, i32
  }
  func.func @transform_13(%arg0: i32) -> (i32, i32, i32) {
    %c0_i32 = arith.constant 0 : i32
    %c0_i32_0 = arith.constant 0 : i32
    %c0_i32_1 = arith.constant 0 : i32
    return %arg0, %c0_i32, %c0_i32_0 : i32, i32, i32
  }
  func.func @transform_14(%arg0: i32) -> (i32, i32, i32) {
    %c0_i32 = arith.constant 0 : i32
    %c0_i32_0 = arith.constant 0 : i32
    %c0_i32_1 = arith.constant 0 : i32
    return %arg0, %c0_i32, %c0_i32_0 : i32, i32, i32
  }
}

</mosaic_0001>

<bundles_post_ra>
// kernel: myvit_forward.1
= control target key start
LH: loop header
LB: loop body
LE: loop exit
PB: predicated region body
PF: predicated region fallthrough
CT: control target
= control target key end

     0   :  { %s7281_s0 = inlined_call_operand.vmem [shape: f32[2,24,16], index: 0, kind: input, shape index: {}]   ;;  %s7282_s1 = inlined_call_operand.vmem [shape: f32[24,16], index: 1, kind: input, shape index: {}]   ;;  %s7283_s2 = inlined_call_operand.vmem [shape: f32[24,24], index: 2, kind: input, shape index: {}]   ;;  %s7284_s3 = inlined_call_operand.vmem [shape: f32[16,16], index: 3, kind: input, shape index: {}]   ;;  %s7285_s4 = inlined_call_operand.vmem [shape: f32[16,16], index: 4, kind: input, shape index: {}]   ;;  %s7286_s5 = inlined_call_operand.vmem [shape: f32[16,16], index: 5, kind: input, shape index: {}]   ;;  %s7287_s6 = inlined_call_operand.vmem [shape: f32[16,16], index: 6, kind: input, shape index: {}]   ;;  %s7288_s7 = inlined_call_operand.vmem [shape: f32[8,16], index: 7, kind: input, shape index: {}]   ;;  %s7289_s8 = inlined_call_operand.vmem [shape: f32[4,3,16,16], index: 8, kind: input, shape index: {}]   ;;  %s7290_s9 = inlined_call_operand.vmem [shape: f32[4,16,64], index: 9, kind: input, shape index: {}]   ;;  %s7291_s10 = inlined_call_operand.vmem [shape: f32[4,64,16], index: 10, kind: input, shape index: {}]   ;;  %s7292_s11 = inlined_call_operand.vmem [shape: f32[4,1,64], index: 11, kind: input, shape index: {}]   ;;  %s7293_s12 = inlined_call_operand.vmem [shape: f32[4,8,16], index: 12, kind: input, shape index: {}]   ;;  %s7294_s13 = inlined_call_operand.hbm [shape: f32[2,1,16], index: 13, kind: output, shape index: {0}]   ;;  %s7295_s14 = inlined_call_operand.vmem [shape: f32[2,16,16], index: 14, kind: output, shape index: {1}]  }
   0x1   :  { %7297 = sst [smem:[#allocation5_spill]] %s7281_s0 }
   0x2   :  { %7298 = sst [smem:[#allocation6_spill]] %s7282_s1 }
   0x3   :  { %7299 = sst [smem:[#allocation7_spill]] %s7283_s2 }
   0x4   :  { %7300 = sst [smem:[#allocation8_spill]] %s7284_s3 }
   0x5   :  { %7301 = sst [smem:[#allocation9_spill]] %s7285_s4 }
   0x6   :  { %7302 = sst [smem:[#allocation10_spill]] %s7286_s5 }
   0x7   :  { %20 = vsyncpa [#allocation3], 0 }
   0x8   :  { %22 = vsyncpa [#allocation3 + $0x1], 0  ;;  %s6186_s29 = smov 0   ;;  %s6188_s30 = smov 0  }
   0x9   :  { %s6190_s15 = smov 0   ;;  %s6192_s16 = smov 0  }
   0xa LB: > { %s6207_s17 = sadd.s32 4294967295, %s6105_s16   ;;  %s4992_s18 = sadd.s32 4294967294, %s6105_s16   ;;  %s6105_s16 = sphi %s6192_s16, %s7315_s16   ;;  %s6101_s15 = sphi %s6190_s15, %s7314_s15   ;;  %s6097_s30 = sphi %s6188_s30, %s7313_s30   ;;  %s6093_s29 = sphi %s6186_s29, %s7312_s29  }
   0xb   : > { %s6211_s19 = sadd.s32 1, %s6105_s16   ;;  %s313_s20 = sadd.s32 1, %s6101_s15 }
   0xc   : > { %s310_s21 = ssub.s32 %s6105_s16, %s6211_s19  ;;  %p323_p0 = scmp.ne.s32.totalorder %s6101_s15, %s6097_s30 }
   0xd   : > { %p311_p1 = scmp.eq.s32.totalorder %s310_s21, 0  ;;  %p324_p2 = scmp.eq.s32.totalorder %s6207_s17, 1 }
   0xe   : > { %p329_p3 = scmp.ne.s32.totalorder %s6097_s30, %s6093_s29  ;;  %p330_p4 = scmp.eq.s32.totalorder %s4992_s18, 1 }
   0xf   : > { %s6222_s22 = scalar_select %p311_p1, %s6101_s15, %s313_s20  }
  0x10   : > { %p6224_p5 = por %p324_p2, %p323_p0  ;;  %p6228_p6 = por %p330_p4, %p329_p3 }
  0x11   : > { %p4995_p7 = scmp.ge.s32.totalorder %s6105_s16, 1  ;;  %p418_p8 = scmp.lt.s32.totalorder %s6105_s16, 3 }
  0x13   : > { %p419_p9 = pnand %p4995_p7, %p418_p8 }
  0x14   : > { %s7305_s5 = sld [smem:[#allocation10_spill]] (!%p419_p9)  ;;  %p468_p10 = scmp.lt.s32.totalorder (!%p419_p9), %s6207_s17, 1 }
  0x15   : > { %422 = sbr.rel (%p419_p9) target bundleno = 8469 (0x2115), region = 72  ;;  %s7306_s0 = sld [smem:[#allocation5_spill]] (!%p419_p9) }
  0x16   : > { %s7307_s1 = sld [smem:[#allocation6_spill]] (!%p419_p9)  ;;  %s7296_s25 = sand.u32 (!%p419_p9), 1, %s6097_s30  }
  0x17   : > { %s7308_s2 = sld [smem:[#allocation7_spill]] (!%p419_p9)  ;;  %s5175_s27 = sshll.u32 (!%p419_p9), %s6207_s17, 4 }
  0x18   : > { %s7309_s4 = sld [smem:[#allocation9_spill]] (!%p419_p9) }
  0x19   : > { %s7310_s3 = sld [smem:[#allocation8_spill]] (!%p419_p9) }
  0x1a   : > { %v483_v0 = vld [vmem:[%s7305_s5 + $0x8] sm:$0xff]  ;;  %v6107_v1 = vmov 0.0   ;;  %v482_v2 = vld [vmem:[%s7305_s5] sm:$0xff]  ;;  %vm6108_vm0 = vmmov 0   ;;  %s6245_s18 = scalar_select %p468_p10, %s6207_s17, 1  ;;  %vm487_vm1 = vcmask 130048   ;;  %v627_v45 = vlaneseq }
  0x1b   : > { %5385 = vmatprep.subr.mxu0 %v6107_v1  ;;  %5389 = vmatprep.mubr.msk.f32.mxu0 %vm6108_vm0, %v6107_v1  ;;  %v584_v36 = vld [vmem:[%s7289_s8 + $0x18] sm:$0xff]  ;;  %v582_v37 = vld [vmem:[%s7289_s8 + $0x8] sm:$0xff]  ;;  %v581_v38 = vld [vmem:[%s7289_s8] sm:$0xff]  ;;  %vm1007_vm2 = vcmask 195584   ;;  %vm1536_vm3 = vcmask 523264   ;;  %vm2685_vm4 = vcmask 130049  }
  0x1c   : > { %5386 = vmatpush3.msra.mxu0 %v483_v0  ;;  %5398 = vmatprep.subr.mxu1 %v6107_v1  ;;  %s5836_s20 = smul.u32 24, %s6245_s18  ;;  %v484_v6 = vld [vmem:[%s7307_s1] sm:$0xff]  ;;  %v485_v10 = vld [vmem:[%s7307_s1 + $0x8] sm:$0xff]  ;;  %v486_v15 = vld [vmem:[%s7307_s1 + $0x10] sm:$0xff]  ;;  %v6308_v49 = vshrl.u32 %v627_v45, 7  ;;  %vm2721_vm5 = vcmask 1046528  }
  0x1d   : > { %5387 = vmatprep.subr.mxu0 %v6107_v1  ;;  %5402 = vmatprep.mubr.msk.f32.mxu1 %vm6108_vm0, %v6107_v1  ;;  %v583_v39 = vld [vmem:[%s7289_s8 + $0x10] sm:$0xff]  ;;  %v6316_v52 = vld [vmem:[%s7293_s12] sm:$0xff]  ;;  %v586_v62 = vld [vmem:[%s7289_s8 + $0x28] sm:$0xff]  ;;  %vm2692_vm6 = vcmask 122880   ;;  %vm3537_vm7 = vcmask 1040384  }
  0x1e   : > { %5388 = vmatpush3.msra.mxu0 %v482_v2  ;;  %s472_s26 = scalar_lea.vmem %s7306_s0, %s5836_s20  ;;  %5399 = vmatpush3.msra.mxu1 %v582_v37  ;;  %v6311_v51 = vsub.s32 0, %v6308_v49  ;;  %v6319_v53 = vsub.s32 1, %v6308_v49 }
  0x1f   : > { %5411 = vmatprep.subr.mxu0 %v6107_v1  ;;  %v479_v3 = vld [vmem:[%s472_s26] sm:$0xff]  ;;  %v480_v4 = vld [vmem:[%s472_s26 + $0x8] sm:$0xff]  ;;  %v481_v5 = vld [vmem:[%s472_s26 + $0x10] sm:$0xff]  ;;  %5400 = vmatprep.subr.mxu1 %v6107_v1  ;;  %s7179_s26 = scalar_lea.vmem [#allocation2], %s7296_s25  ;;  %s7311_s25 = sand.u32 1, %s6097_s30  }
  0x20   : > { %5390 = vmatmul.mubr.msk.f32.vlgmr.msra.gmra.mxu0 %vm487_vm1, %v479_v3  ;;  %5401 = vmatpush3.msra.mxu1 %v581_v38  ;;  %v630_v54 = vrot.slane %v6316_v52, %v6311_v51  ;;  %v637_v57 = vrot.slane %v6316_v52, %v6319_v53  ;;  %s4909_s28 = sshll.u32 %s7179_s26, 4  ;;  %s4892_s0 = scalar_lea.sflag [#allocation3], %s7311_s25  ;;  %s4910_s28 = int_to_ptr.vmem [resolvable:$true] %s4909_s28 }
  0x21   : > { %5392 = vmatprep.mubr.msk.f32.mxu0 %vm6108_vm0, %v6107_v1  ;;  %5412 = vmatpush3.msra.mxu0 %v584_v36  ;;  %s6045_s1 = scalar_lea.vmem %s4910_s28, 16 }
  0x22   : > { %5413 = vmatprep.subr.mxu0 %v6107_v1  ;;  %5424 = vmatprep.subr.mxu1 %v6107_v1  ;;  %p6046_p11 = scmp.ne.s32.totalorder %s4910_s28, %s6045_s1 }
  0x23   : > { %5414 = vmatpush3.msra.mxu0 %v583_v39  ;;  %v6392_v39 = vsub.s32 4, %v6308_v49 }
  0x24   : > { %5393 = vmatmul.mubr.msk.f32.gmra.mxu0 %vm487_vm1, %v480_v4  ;;  %5437 = vmatprep.subr.mxu0 %v6107_v1  ;;  %v585_v4 = vld [vmem:[%s7289_s8 + $0x20] sm:$0xff]  ;;  %p6047_p12 = pnand %p6046_p11, %p6224_p5 }
  0x25   : > { %5395 = vmatprep.mubr.msk.f32.mxu0 %vm6108_vm0, %v6107_v1  ;;  %v821_v45 = vrot.slane %v6316_v52, %v6392_v39 }
  0x26   : > { %p6048_p13 = pneg %p6047_p12 }
  0x28   : > { %5396 = vmatmul.mubr.msk.f32.gmra.mxu0 %vm487_vm1, %v481_v5 }
  0x29   : > { %5415 = vmatprep.mubr.msk.f32.mxu0 %vm6108_vm0, %v6107_v1 }
  0xe0   : > { %v563_v7 = vpop.f32.mrf.mxu0 }
  0xe1   : > { %v6268_v8 = vadd.f32 %v563_v7, %v484_v6 }
  0xe2   : > { %v5391_v9 = vpop.f32.mrf.mxu0 }
  0xe3   : > { %v587_v11 = vsel %vm487_vm1, %v6268_v8, 0.0 }
  0xe4   : > { %588 = vadd.xlane.f32.xlu0 %v587_v11  ;;  %v568_v12 = vpop.f32.mrf.mxu0 }
  0xe5   : > { %v6275_v13 = vadd.f32 %v568_v12, %v485_v10  ;;  %v6361_v12 = vsub.s32 3, %v6308_v49 }
  0xe6   : > { %v5394_v14 = vpop.f32.mrf.mxu0 }
  0xe7   : > { %v590_v16 = vsel %vm487_vm1, %v6275_v13, 0.0 }
  0xe8   : > { %591 = vadd.xlane.f32.xlu0 %v590_v16  ;;  %v573_v17 = vpop.f32.mrf.mxu0  ;;  %v6364_v16 = vsub.s32 5, %v6308_v49 }
  0xe9   : > { %v6282_v18 = vadd.f32 %v573_v17, %v486_v15  ;;  %v6367_v17 = vsub.s32 6, %v6308_v49 }
  0xea   : > { %v5397_v19 = vpop.f32.mrf.mxu0 }
  0xeb   : > { %v593_v20 = vsel %vm487_vm1, %v6282_v18, 0.0  ;;  %v478_v19 = vld [vmem:[%s7288_s7] sm:$0xff] }
  0xec   : > { %594 = vadd.xlane.f32.xlu1 %v593_v20 }
 0x16d   : > { %v589_v21 = vpop.xlane.xlu0 %588 }
 0x16e   : > { %v597_v22 = vmul.f32 0.0625, %v589_v21 }
 0x170   : > { %v600_v23 = vsub.f32 %v6268_v8, %v597_v22  ;;  %v737_v22 = vrot.slane %v6316_v52, %v6361_v12 }
 0x171   : > { %v592_v24 = vpop.xlane.xlu0 %591 }
 0x172   : > { %v598_v25 = vmul.f32 0.0625, %v592_v24  ;;  %v603_v26 = vmul.f32 %v600_v23, %v600_v23 }
 0x174   : > { %v601_v27 = vsub.f32 %v6275_v13, %v598_v25  ;;  %v606_v28 = vsel %vm487_vm1, %v603_v26, 0.0  ;;  %v6375_v25 = vrot.slane %v478_v19, %v6364_v16  ;;  %v6378_v26 = vrot.slane %v478_v19, %v6367_v17 }
 0x175   : > { %607 = vadd.xlane.f32.xlu1 %v606_v28  ;;  %v595_v29 = vpop.xlane.xlu1 %594 }
 0x176   : > { %v599_v30 = vmul.f32 0.0625, %v595_v29  ;;  %v604_v31 = vmul.f32 %v601_v27, %v601_v27 }
 0x178   : > { %v602_v32 = vsub.f32 %v6282_v18, %v599_v30  ;;  %v609_v33 = vsel %vm487_vm1, %v604_v31, 0.0 }
 0x179   : > { %610 = vadd.xlane.f32.xlu0 %v609_v33 }
 0x17a   : > { %v605_v34 = vmul.f32 %v602_v32, %v602_v32 }
 0x17c   : > { %v612_v35 = vsel %vm487_vm1, %v605_v34, 0.0  ;;  %v6385_v34 = vsub.s32 2, %v6308_v49 }
 0x17d   : > { %613 = vadd.xlane.f32.xlu1 %v612_v35 }
 0x1fe   : > { %v608_v40 = vpop.xlane.xlu1 %607 }
 0x1ff   : > { %v615_v41 = vmul.f32 0.0625, %v608_v40 }
 0x201   : > { %v618_v42 = vadd.f32 1e-05, %v615_v41  ;;  %v644_v41 = vrot.slane %v6316_v52, %v6385_v34 }
 0x202   : > { %v611_v43 = vpop.xlane.xlu0 %610 }
 0x203   : > { %5881 = vrsqrt.f32 %v618_v42  ;;  %v616_v44 = vmul.f32 0.0625, %v611_v43 }
 0x205   : > { %v619_v46 = vadd.f32 1e-05, %v616_v44 }
 0x206   : > { %v614_v47 = vpop.xlane.xlu1 %613 }
 0x207   : > { %5883 = vrsqrt.f32 %v619_v46  ;;  %v617_v48 = vmul.f32 0.0625, %v614_v47 }
 0x209   : > { %v620_v50 = vadd.f32 1e-05, %v617_v48 }
 0x20b   : > { %5885 = vrsqrt.f32 %v620_v50 }
 0x210   : > { %v5882_v55 = vpop.eup %5881 }
 0x211   : > { %v624_v56 = vmul.f32 %v5882_v55, %v600_v23 }
 0x213   : > { %v631_v58 = vmul.f32 %v630_v54, %v624_v56 }
 0x214   : > { %v5884_v59 = vpop.eup %5883 }
 0x215   : > { %v638_v60 = vadd.f32 %v637_v57, %v631_v58  ;;  %v625_v61 = vmul.f32 %v5884_v59, %v601_v27 }
 0x217   : > { %5403 = vmatmul.mubr.msk.f32.vlgmr.msra.gmra.mxu1 %vm487_vm1, %v638_v60  ;;  %5416 = vmatmul.mubr.msk.f32.vlgmr.msra.gmra.mxu0 %vm487_vm1, %v638_v60  ;;  %v632_v63 = vmul.f32 %v630_v54, %v625_v61 }
 0x218   : > { %v5886_v0 = vpop.eup %5885  ;;  %5405 = vmatprep.mubr.msk.f32.mxu1 %vm6108_vm0, %v6107_v1  ;;  %5418 = vmatprep.mubr.msk.f32.mxu0 %vm6108_vm0, %v6107_v1 }
 0x219   : > { %v639_v2 = vadd.f32 %v637_v57, %v632_v63  ;;  %v626_v3 = vmul.f32 %v5886_v0, %v602_v32  ;;  %5425 = vmatpush3.msra.mxu1 %v586_v62  ;;  %v6441_v0 = vld [vmem:[%s7308_s2] sm:$0xff] }
 0x21a   : > { %5426 = vmatprep.subr.mxu1 %v6107_v1 }
 0x21b   : > { %5406 = vmatmul.mubr.msk.f32.gmra.mxu1 %vm487_vm1, %v639_v2  ;;  %5419 = vmatmul.mubr.msk.f32.gmra.mxu0 %vm487_vm1, %v639_v2  ;;  %v633_v5 = vmul.f32 %v630_v54, %v626_v3 }
 0x21c   : > { %5408 = vmatprep.mubr.msk.f32.mxu1 %vm6108_vm0, %v6107_v1  ;;  %5421 = vmatprep.mubr.msk.f32.mxu0 %vm6108_vm0, %v6107_v1 }
 0x21d   : > { %v640_v6 = vadd.f32 %v637_v57, %v633_v5  ;;  %5427 = vmatpush3.msra.mxu1 %v585_v4 }
 0x21e   : > { %5452 = vmatprep.subr.mxu1 %v6107_v1 }
 0x21f   : > { %5409 = vmatmul.mubr.msk.f32.gmra.mxu1 %vm487_vm1, %v640_v6  ;;  %5422 = vmatmul.mubr.msk.f32.gmra.mxu0 %vm487_vm1, %v640_v6 }
 0x220   : > { %5428 = vmatprep.mubr.msk.f32.mxu1 %vm6108_vm0, %v6107_v1  ;;  %5443 = vmatprep.mubr.msk.f32.mxu0 %vm6108_vm0, %v6107_v1 }
 0x223   : > { %5429 = vmatmul.mubr.msk.f32.vlgmr.msra.gmra.mxu1 %vm487_vm1, %v638_v60 }
 0x224   : > { %5431 = vmatprep.mubr.msk.f32.mxu1 %vm6108_vm0, %v6107_v1 }
 0x227   : > { %5432 = vmatmul.mubr.msk.f32.gmra.mxu1 %vm487_vm1, %v639_v2 }
 0x228   : > { %5434 = vmatprep.mubr.msk.f32.mxu1 %vm6108_vm0, %v6107_v1 }
 0x22b   : > { %5435 = vmatmul.mubr.msk.f32.gmra.mxu1 %vm487_vm1, %v640_v6 }
 0x22c   : > { %5458 = vmatprep.mubr.msk.f32.mxu1 %vm6108_vm0, %v6107_v1 }
 0x2d7   : > { %v720_v7 = vpop.f32.mrf.mxu1  ;;  %v804_v9 = vpop.f32.mrf.mxu0 }
 0x2d8   : > { %v805_v36 = vadd.f32 %v804_v9, %v737_v22  ;;  %v721_v48 = vadd.f32 %v720_v7, %v644_v41 }
 0x2d9   : > { %v5404_v10 = vpop.f32.mrf.mxu1  ;;  %v5417_v11 = vpop.f32.mrf.mxu0 }
 0x2da   : > { %v906_v43 = vmul.f32 %v6375_v25, %v805_v36  ;;  %v1048_v44 = vmul.f32 %v6378_v26, %v805_v36  ;;  %v6449_v10 = vld [vmem:[%s7308_s2 + $0x8] sm:$0xff] }
 0x2db   : > { %v725_v14 = vpop.f32.mrf.mxu1  ;;  %v809_v15 = vpop.f32.mrf.mxu0 }
 0x2dc   : > { %v810_v30 = vadd.f32 %v809_v15, %v737_v22  ;;  %v726_v60 = vadd.f32 %v725_v14, %v644_v41 }
 0x2dd   : > { %v5407_v20 = vpop.f32.mrf.mxu1  ;;  %v5420_v21 = vpop.f32.mrf.mxu0 }
 0x2de   : > { %v907_v37 = vmul.f32 %v6375_v25, %v810_v30  ;;  %v1049_v38 = vmul.f32 %v6378_v26, %v810_v30 }
 0x2df   : > { %v730_v23 = vpop.f32.mrf.mxu1  ;;  %v814_v24 = vpop.f32.mrf.mxu0 }
 0x2e0   : > { %v815_v27 = vadd.f32 %v814_v24, %v737_v22  ;;  %v731_v63 = vadd.f32 %v730_v23, %v644_v41  ;;  %v6457_v23 = vld [vmem:[%s7308_s2 + $0x10] sm:$0xff]  ;;  %s4907_s2 = scalar_lea.hbm %s7294_s13, %s5175_s27 }
 0x2e1   : > { %v5410_v28 = vpop.f32.mrf.mxu1  ;;  %v5423_v29 = vpop.f32.mrf.mxu0 }
 0x2e2   : > { %v908_v31 = vmul.f32 %v6375_v25, %v815_v27  ;;  %v1050_v32 = vmul.f32 %v6378_v26, %v815_v27 }
 0x2e3   : > { %v888_v33 = vpop.f32.mrf.mxu1 }
 0x2e4   : > { %5438 = vmatpush3.xpose.msk.msra.mxu0 %vm487_vm1, %v908_v31  ;;  %5453 = vmatpush3.xpose.msk.msra.mxu1 %vm487_vm1, %v1050_v32  ;;  %v889_v57 = vadd.f32 %v888_v33, %v821_v45 }
 0x2e5   : > { %v5430_v35 = vpop.f32.mrf.mxu1  ;;  %5439 = vmatprep.subr.mxu0 %v6107_v1  ;;  %5454 = vmatprep.subr.mxu1 %v6107_v1 }
 0x2e6   : > { %v1041_v61 = vmul.f32 %v6375_v25, %v889_v57  ;;  %v1173_v62 = vmul.f32 %v6378_v26, %v889_v57 }
 0x2e7   : > { %v893_v40 = vpop.f32.mrf.mxu1 }
 0x2e8   : > { %5440 = vmatpush3.xpose.msk.msra.mxu0 %vm487_vm1, %v907_v37  ;;  %5455 = vmatpush3.xpose.msk.msra.mxu1 %vm487_vm1, %v1049_v38  ;;  %v894_v50 = vadd.f32 %v893_v40, %v821_v45 }
 0x2e9   : > { %v5433_v42 = vpop.f32.mrf.mxu1  ;;  %5441 = vmatprep.subr.mxu0 %v6107_v1  ;;  %5456 = vmatprep.subr.mxu1 %v6107_v1 }
 0x2ea   : > { %v1042_v58 = vmul.f32 %v6375_v25, %v894_v50  ;;  %v1174_v59 = vmul.f32 %v6378_v26, %v894_v50 }
 0x2eb   : > { %v898_v46 = vpop.f32.mrf.mxu1 }
 0x2ec   : > { %v899_v47 = vadd.f32 %v898_v46, %v821_v45  ;;  %5442 = vmatpush3.xpose.msk.msra.mxu0 %vm487_vm1, %v906_v43  ;;  %5457 = vmatpush3.xpose.msk.msra.mxu1 %vm487_vm1, %v1048_v44 }
 0x2ed   : > { %v5436_v54 = vpop.f32.mrf.mxu1  ;;  %5467 = vmatprep.subr.mxu0 %v6107_v1  ;;  %5482 = vmatprep.subr.mxu1 %v6107_v1 }
 0x2ee   : > { %v1043_v55 = vmul.f32 %v6375_v25, %v899_v47  ;;  %v1175_v56 = vmul.f32 %v6378_v26, %v899_v47 }
 0x2ef   : > { %5444 = vmatmul.mubr.msk.f32.vlgmr.msra.gmra.mxu0 %vm487_vm1, %v721_v48  ;;  %5459 = vmatmul.mubr.msk.f32.vlgmr.msra.gmra.mxu1 %vm487_vm1, %v721_v48 }
 0x2f0   : > { %5468 = vmatpush3.msra.mxu0 %v1175_v56  ;;  %5483 = vmatpush3.msra.mxu1 %v1043_v55 }
 0x2f1   : > { %5469 = vmatprep.subr.mxu0 %v6107_v1  ;;  %5484 = vmatprep.subr.mxu1 %v6107_v1 }
 0x2f2   : > { %5446 = vmatprep.mubr.msk.f32.mxu0 %vm6108_vm0, %v6107_v1  ;;  %5461 = vmatprep.mubr.msk.f32.mxu1 %vm6108_vm0, %v6107_v1 }
 0x2f3   : > { %5470 = vmatpush3.msra.mxu0 %v1174_v59  ;;  %5485 = vmatpush3.msra.mxu1 %v1042_v58 }
 0x2f4   : > { %5447 = vmatmul.mubr.msk.f32.gmra.mxu0 %vm487_vm1, %v726_v60  ;;  %5462 = vmatmul.mubr.msk.f32.gmra.mxu1 %vm487_vm1, %v726_v60 }
 0x2f5   : > { %5471 = vmatprep.subr.mxu0 %v6107_v1  ;;  %5486 = vmatprep.subr.mxu1 %v6107_v1 }
 0x2f6   : > { %5472 = vmatpush3.msra.mxu0 %v1173_v62  ;;  %5487 = vmatpush3.msra.mxu1 %v1041_v61 }
 0x2f7   : > { %5449 = vmatprep.mubr.msk.f32.mxu0 %vm6108_vm0, %v6107_v1  ;;  %5464 = vmatprep.mubr.msk.f32.mxu1 %vm6108_vm0, %v6107_v1 }
 0x2f8   : > { %5450 = vmatmul.mubr.msk.f32.gmra.mxu0 %vm487_vm1, %v731_v63  ;;  %5465 = vmatmul.mubr.msk.f32.gmra.mxu1 %vm487_vm1, %v731_v63 }
 0x2f9   : > { %5473 = vmatprep.mubr.msk.f32.mxu0 %vm6108_vm0, %v6107_v1  ;;  %5488 = vmatprep.mubr.msk.f32.mxu1 %vm6108_vm0, %v6107_v1 }
 0x2fa   : > { %5497 = vmatprep.subr.mxu0 %v6107_v1  ;;  %5510 = vmatprep.subr.mxu1 %v6107_v1 }
 0x3af   : > { %v993_v2 = vpop.f32.mrf.mxu0  ;;  %v1126_v3 = vpop.f32.mrf.mxu1 }
 0x3b0   : > { %v994_v4 = vadd.f32 %v993_v2, %v6441_v0  ;;  %v1127_v5 = vadd.f32 %v1126_v3, %v6441_v0 }
 0x3b1   : > { %v5445_v6 = vpop.f32.mrf.mxu0  ;;  %v5460_v7 = vpop.f32.mrf.mxu1 }
 0x3b2   : > { %v1140_v9 = vsel %vm1007_vm2, %v1127_v5, -inf  ;;  %v1008_v11 = vsel %vm1007_vm2, %v994_v4, -inf }
 0x3b3   : > { %1141 = vmax.xlane.f32.xlu1 %v1140_v9  ;;  %1009 = vmax.xlane.f32.xlu0 %v1008_v11 }
 0x3b4   : > { %v1131_v14 = vpop.f32.mrf.mxu1  ;;  %v998_v15 = vpop.f32.mrf.mxu0 }
 0x3b5   : > { %v1132_v19 = vadd.f32 %v1131_v14, %v6449_v10  ;;  %v999_v20 = vadd.f32 %v998_v15, %v6449_v10 }
 0x3b6   : > { %v5448_v21 = vpop.f32.mrf.mxu0  ;;  %v5463_v22 = vpop.f32.mrf.mxu1 }
 0x3b7   : > { %v1143_v24 = vsel %vm1007_vm2, %v1132_v19, -inf  ;;  %v1011_v27 = vsel %vm1007_vm2, %v999_v20, -inf }
 0x3b8   : > { %1144 = vmax.xlane.f32.xlu1 %v1143_v24  ;;  %v1136_v28 = vpop.f32.mrf.mxu1  ;;  %1012 = vmax.xlane.f32.xlu0 %v1011_v27  ;;  %v1003_v29 = vpop.f32.mrf.mxu0 }
 0x3b9   : > { %v1137_v30 = vadd.f32 %v1136_v28, %v6457_v23  ;;  %v1004_v31 = vadd.f32 %v1003_v29, %v6457_v23 }
 0x3ba   : > { %v5451_v32 = vpop.f32.mrf.mxu0  ;;  %v5466_v33 = vpop.f32.mrf.mxu1 }
 0x3bb   : > { %v1146_v35 = vsel %vm1007_vm2, %v1137_v30, -inf  ;;  %v1014_v36 = vsel %vm1007_vm2, %v1004_v31, -inf }
 0x3bc   : > { %1147 = vmax.xlane.f32.xlu1 %v1146_v35  ;;  %1015 = vmax.xlane.f32.xlu0 %v1014_v36 }
 0x43c   : > { %v1142_v37 = vpop.xlane.xlu1 %1141  ;;  %v1010_v38 = vpop.xlane.xlu0 %1009 }
 0x43d   : > { %v1149_v40 = vsub.f32 %v1127_v5, %v1142_v37  ;;  %v1017_v41 = vsub.f32 %v994_v4, %v1010_v38 }
 0x43f   : > { %v1152_v42 = vmul.f32 1.442695, %v1149_v40  ;;  %v1020_v43 = vmul.f32 1.442695, %v1017_v41 }
 0x441   : > { %5887 = vpow2.f32 %v1152_v42  ;;  %v1145_v44 = vpop.xlane.xlu1 %1144  ;;  %v1013_v45 = vpop.xlane.xlu0 %1012 }
 0x442   : > { %5889 = vpow2.f32 %v1020_v43  ;;  %v1150_v46 = vsub.f32 %v1132_v19, %v1145_v44  ;;  %v1018_v47 = vsub.f32 %v999_v20, %v1013_v45 }
 0x444   : > { %v1154_v48 = vmul.f32 1.442695, %v1150_v46  ;;  %v1022_v50 = vmul.f32 1.442695, %v1018_v47 }
 0x445   : > { %v1148_v54 = vpop.xlane.xlu1 %1147  ;;  %v1016_v55 = vpop.xlane.xlu0 %1015 }
 0x446   : > { %5891 = vpow2.f32 %v1154_v48  ;;  %v1151_v56 = vsub.f32 %v1137_v30, %v1148_v54  ;;  %v1019_v57 = vsub.f32 %v1004_v31, %v1016_v55 }
 0x447   : > { %5893 = vpow2.f32 %v1022_v50 }
 0x448   : > { %v1156_v58 = vmul.f32 1.442695, %v1151_v56  ;;  %v1024_v59 = vmul.f32 1.442695, %v1019_v57 }
 0x44a   : > { %5895 = vpow2.f32 %v1156_v58 }
 0x44b   : > { %5897 = vpow2.f32 %v1024_v59 }
 0x44e   : > { %v5888_v60 = vpop.eup %5887 }
 0x44f   : > { %v5890_v61 = vpop.eup %5889  ;;  %v1158_v62 = vsel %vm1007_vm2, %v5888_v60, 0.0 }
 0x450   : > { %1159 = vadd.xlane.f32.xlu1 %v1158_v62  ;;  %v1026_v63 = vsel %vm1007_vm2, %v5890_v61, 0.0 }
 0x451   : > { %1027 = vadd.xlane.f32.xlu0 %v1026_v63 }
 0x453   : > { %v5892_v2 = vpop.eup %5891 }
 0x454   : > { %v5894_v3 = vpop.eup %5893  ;;  %v1161_v4 = vsel %vm1007_vm2, %v5892_v2, 0.0 }
 0x455   : > { %1162 = vadd.xlane.f32.xlu1 %v1161_v4  ;;  %v1029_v5 = vsel %vm1007_vm2, %v5894_v3, 0.0 }
 0x456   : > { %1030 = vadd.xlane.f32.xlu0 %v1029_v5 }
 0x457   : > { %v5896_v6 = vpop.eup %5895 }
 0x458   : > { %v5898_v7 = vpop.eup %5897  ;;  %v1164_v9 = vsel %vm1007_vm2, %v5896_v6, 0.0 }
 0x459   : > { %1165 = vadd.xlane.f32.xlu1 %v1164_v9  ;;  %v1032_v11 = vsel %vm1007_vm2, %v5898_v7, 0.0 }
 0x45a   : > { %1033 = vadd.xlane.f32.xlu0 %v1032_v11 }
 0x4d9   : > { %v1160_v14 = vpop.xlane.xlu1 %1159 }
 0x4da   : > { %5899 = vrcp.f32 %v1160_v14  ;;  %v1028_v15 = vpop.xlane.xlu0 %1027 }
 0x4db   : > { %5901 = vrcp.f32 %v1028_v15 }
 0x4de   : > { %v1163_v19 = vpop.xlane.xlu1 %1162 }
 0x4df   : > { %5903 = vrcp.f32 %v1163_v19  ;;  %v1031_v20 = vpop.xlane.xlu0 %1030 }
 0x4e0   : > { %5905 = vrcp.f32 %v1031_v20 }
 0x4e2   : > { %v1166_v21 = vpop.xlane.xlu1 %1165 }
 0x4e3   : > { %5907 = vrcp.f32 %v1166_v21  ;;  %v1034_v22 = vpop.xlane.xlu0 %1033 }
 0x4e4   : > { %5909 = vrcp.f32 %v1034_v22  ;;  %v1411_v22 = vld [vmem:[%s7290_s9 + $0x8] sm:$0xff] }
 0x4e7   : > { %v5900_v24 = vpop.eup %5899 }
 0x4e8   : > { %v5902_v27 = vpop.eup %5901  ;;  %v1170_v28 = vmul.f32 %v5900_v24, %v5888_v60  ;;  %v1410_v24 = vld [vmem:[%s7290_s9] sm:$0xff] }
 0x4e9   : > { %v1038_v29 = vmul.f32 %v5902_v27, %v5890_v61 }
 0x4ea   : > { %5474 = vmatmul.mubr.msk.f32.vlgmr.msra.gmra.mxu0 %vm1007_vm2, %v1170_v28 }
 0x4eb   : > { %5489 = vmatmul.mubr.msk.f32.vlgmr.msra.gmra.mxu1 %vm1007_vm2, %v1038_v29  ;;  %5476 = vmatprep.mubr.msk.f32.mxu0 %vm6108_vm0, %v6107_v1 }
 0x4ec   : > { %v5904_v30 = vpop.eup %5903  ;;  %5491 = vmatprep.mubr.msk.f32.mxu1 %vm6108_vm0, %v6107_v1  ;;  %5498 = vmatpush3.msra.mxu0 %v1411_v22 }
 0x4ed   : > { %v5906_v31 = vpop.eup %5905  ;;  %v1171_v32 = vmul.f32 %v5904_v30, %v5892_v2  ;;  %5499 = vmatprep.subr.mxu0 %v6107_v1 }
 0x4ee   : > { %v1039_v33 = vmul.f32 %v5906_v31, %v5894_v3  ;;  %5500 = vmatpush3.msra.mxu0 %v1410_v24 }
 0x4ef   : > { %5477 = vmatmul.mubr.msk.f32.gmra.mxu0 %vm1007_vm2, %v1171_v32  ;;  %5535 = vmatprep.subr.mxu0 %v6107_v1 }
 0x4f0   : > { %v5908_v35 = vpop.eup %5907  ;;  %5492 = vmatmul.mubr.msk.f32.gmra.mxu1 %vm1007_vm2, %v1039_v33  ;;  %5479 = vmatprep.mubr.msk.f32.mxu0 %vm6108_vm0, %v6107_v1 }
 0x4f1   : > { %v5910_v36 = vpop.eup %5909  ;;  %5494 = vmatprep.mubr.msk.f32.mxu1 %vm6108_vm0, %v6107_v1  ;;  %v1172_v37 = vmul.f32 %v5908_v35, %v5896_v6 }
 0x4f2   : > { %v1040_v38 = vmul.f32 %v5910_v36, %v5898_v7 }
 0x4f3   : > { %5480 = vmatmul.mubr.msk.f32.gmra.mxu0 %vm1007_vm2, %v1172_v37  ;;  %v1399_v37 = vrot.slane %v6316_v52, %v6364_v16 }
 0x4f4   : > { %5495 = vmatmul.mubr.msk.f32.gmra.mxu1 %vm1007_vm2, %v1040_v38  ;;  %5501 = vmatprep.mubr.msk.f32.mxu0 %vm6108_vm0, %v6107_v1 }
 0x4f5   : > { %5526 = vmatprep.mubr.msk.f32.mxu1 %vm6108_vm0, %v6107_v1 }
 0x5aa   : > { %v1251_v40 = vpop.f32.mrf.mxu0 }
 0x5ab   : > { %v1340_v41 = vpop.f32.mrf.mxu1 }
 0x5ac   : > { %v1341_v42 = vadd.f32 %v1340_v41, %v1251_v40  ;;  %v5475_v43 = vpop.f32.mrf.mxu0  ;;  %v1406_v41 = vrot.slane %v6316_v52, %v6367_v17 }
 0x5ad   : > { %v5490_v44 = vpop.f32.mrf.mxu1 }
 0x5ae   : > { %v6490_v45 = vadd.f32 %v1341_v42, %v6268_v8 }
 0x5af   : > { %v1256_v46 = vpop.f32.mrf.mxu0 }
 0x5b0   : > { %v1345_v47 = vpop.f32.mrf.mxu1  ;;  %v1357_v48 = vsel %vm487_vm1, %v6490_v45, 0.0 }
 0x5b1   : > { %v1346_v50 = vadd.f32 %v1345_v47, %v1256_v46  ;;  %1358 = vadd.xlane.f32.xlu0 %v1357_v48  ;;  %v5478_v54 = vpop.f32.mrf.mxu0 }
 0x5b2   : > { %v5493_v55 = vpop.f32.mrf.mxu1 }
 0x5b3   : > { %v6495_v56 = vadd.f32 %v1346_v50, %v6275_v13  ;;  %v1261_v57 = vpop.f32.mrf.mxu0 }
 0x5b4   : > { %v1350_v58 = vpop.f32.mrf.mxu1 }
 0x5b5   : > { %v1351_v59 = vadd.f32 %v1350_v58, %v1261_v57  ;;  %v1360_v60 = vsel %vm487_vm1, %v6495_v56, 0.0  ;;  %v5481_v8 = vpop.f32.mrf.mxu0  ;;  %v1531_v58 = vld [vmem:[%s7291_s10 + $0x38] sm:$0xff] }
 0x5b6   : > { %v5496_v61 = vpop.f32.mrf.mxu1  ;;  %1361 = vadd.xlane.f32.xlu1 %v1360_v60  ;;  %5511 = vmatpush3.msra.mxu1 %v1531_v58  ;;  %v1529_v60 = vld [vmem:[%s7291_s10 + $0x28] sm:$0xff]  ;;  %v1528_v8 = vld [vmem:[%s7291_s10 + $0x20] sm:$0xff] }
 0x5b7   : > { %v6500_v62 = vadd.f32 %v1351_v59, %v6282_v18  ;;  %5512 = vmatprep.subr.mxu1 %v6107_v1  ;;  %v1530_v59 = vld [vmem:[%s7291_s10 + $0x30] sm:$0xff]  ;;  %v1527_v61 = vld [vmem:[%s7291_s10 + $0x18] sm:$0xff] }
 0x5b8   : > { %5513 = vmatpush3.msra.mxu1 %v1530_v59 }
 0x5b9   : > { %v1363_v63 = vsel %vm487_vm1, %v6500_v62, 0.0  ;;  %5514 = vmatprep.subr.mxu1 %v6107_v1 }
 0x5ba   : > { %1364 = vadd.xlane.f32.xlu0 %v1363_v63  ;;  %5515 = vmatpush3.msra.mxu1 %v1529_v60  ;;  %v1526_v63 = vld [vmem:[%s7291_s10 + $0x10] sm:$0xff] }
 0x5bb   : > { %5516 = vmatprep.subr.mxu1 %v6107_v1 }
 0x5bc   : > { %5517 = vmatpush3.msra.mxu1 %v1528_v8 }
 0x5bd   : > { %5518 = vmatprep.subr.mxu1 %v6107_v1 }
 0x5be   : > { %5519 = vmatpush3.msra.mxu1 %v1527_v61 }
 0x5bf   : > { %5520 = vmatprep.subr.mxu1 %v6107_v1 }
 0x5c0   : > { %5521 = vmatpush3.msra.mxu1 %v1526_v63 }
 0x5c1   : > { %5522 = vmatprep.subr.mxu1 %v6107_v1 }
 0x63a   : > { %v1359_v2 = vpop.xlane.xlu0 %1358 }
 0x63b   : > { %v1366_v3 = vmul.f32 0.0625, %v1359_v2  ;;  %v1525_v2 = vld [vmem:[%s7291_s10 + $0x8] sm:$0xff] }
 0x63c   : > { %5523 = vmatpush3.msra.mxu1 %v1525_v2 }
 0x63d   : > { %v1369_v13 = vsub.f32 %v6490_v45, %v1366_v3  ;;  %5524 = vmatprep.subr.mxu1 %v6107_v1  ;;  %v1524_v3 = vld [vmem:[%s7291_s10] sm:$0xff] }
 0x63e   : > { %5525 = vmatpush3.msra.mxu1 %v1524_v3 }
 0x63f   : > { %v1362_v4 = vpop.xlane.xlu1 %1361  ;;  %v1372_v5 = vmul.f32 %v1369_v13, %v1369_v13  ;;  %5548 = vmatprep.subr.mxu1 %v6107_v1 }
 0x640   : > { %v1367_v6 = vmul.f32 0.0625, %v1362_v4 }
 0x641   : > { %v1375_v7 = vsel %vm487_vm1, %v1372_v5, 0.0 }
 0x642   : > { %v1370_v9 = vsub.f32 %v6495_v56, %v1367_v6  ;;  %1376 = vadd.xlane.f32.xlu1 %v1375_v7 }
 0x643   : > { %v1365_v11 = vpop.xlane.xlu0 %1364 }
 0x644   : > { %v1368_v14 = vmul.f32 0.0625, %v1365_v11  ;;  %v1373_v18 = vmul.f32 %v1370_v9, %v1370_v9 }
 0x646   : > { %v1371_v15 = vsub.f32 %v6500_v62, %v1368_v14  ;;  %v1378_v19 = vsel %vm487_vm1, %v1373_v18, 0.0 }
 0x647   : > { %1379 = vadd.xlane.f32.xlu0 %v1378_v19 }
 0x648   : > { %v1374_v20 = vmul.f32 %v1371_v15, %v1371_v15 }
 0x64a   : > { %v1381_v21 = vsel %vm487_vm1, %v1374_v20, 0.0 }
 0x64b   : > { %1382 = vadd.xlane.f32.xlu1 %v1381_v21 }
 0x6cb   : > { %v1377_v27 = vpop.xlane.xlu1 %1376 }
 0x6cc   : > { %v1384_v28 = vmul.f32 0.0625, %v1377_v27 }
 0x6ce   : > { %v1387_v29 = vadd.f32 1e-05, %v1384_v28 }
 0x6d0   : > { %5911 = vrsqrt.f32 %v1387_v29  ;;  %v1380_v30 = vpop.xlane.xlu0 %1379 }
 0x6d1   : > { %v1385_v31 = vmul.f32 0.0625, %v1380_v30 }
 0x6d3   : > { %v1388_v32 = vadd.f32 1e-05, %v1385_v31 }
 0x6d4   : > { %v1383_v33 = vpop.xlane.xlu1 %1382 }
 0x6d5   : > { %5913 = vrsqrt.f32 %v1388_v32  ;;  %v1386_v35 = vmul.f32 0.0625, %v1383_v33 }
 0x6d7   : > { %v1389_v36 = vadd.f32 1e-05, %v1386_v35 }
 0x6d9   : > { %5915 = vrsqrt.f32 %v1389_v36 }
 0x6dd   : > { %v5912_v38 = vpop.eup %5911 }
 0x6de   : > { %v1393_v40 = vmul.f32 %v5912_v38, %v1369_v13  ;;  %v5029_v13 = vld [vmem:[%s7292_s11] ss:$0 sm:$0xff]  ;;  %v6576_v38 = vsub.s32 7, %v6308_v49 }
 0x6e0   : > { %v1400_v42 = vmul.f32 %v1399_v37, %v1393_v40  ;;  %v1535_v40 = vrot.slane %v6316_v52, %v6576_v38 }
 0x6e2   : > { %v5914_v43 = vpop.eup %5913  ;;  %v1407_v44 = vadd.f32 %v1406_v41, %v1400_v42 }
 0x6e3   : > { %v1394_v46 = vmul.f32 %v5914_v43, %v1370_v9 }
 0x6e4   : > { %5502 = vmatmul.mubr.msk.f32.vlgmr.msra.gmra.mxu0 %vm487_vm1, %v1407_v44 }
 0x6e5   : > { %5504 = vmatprep.mubr.msk.f32.mxu0 %vm6108_vm0, %v6107_v1  ;;  %v1401_v47 = vmul.f32 %v1399_v37, %v1394_v46 }
 0x6e6   : > { %v5916_v48 = vpop.eup %5915 }
 0x6e7   : > { %v1408_v50 = vadd.f32 %v1406_v41, %v1401_v47  ;;  %v1395_v54 = vmul.f32 %v5916_v48, %v1371_v15 }
 0x6e9   : > { %5505 = vmatmul.mubr.msk.f32.gmra.mxu0 %vm487_vm1, %v1408_v50  ;;  %v1402_v55 = vmul.f32 %v1399_v37, %v1395_v54 }
 0x6ea   : > { %5507 = vmatprep.mubr.msk.f32.mxu0 %vm6108_vm0, %v6107_v1 }
 0x6eb   : > { %v1409_v57 = vadd.f32 %v1406_v41, %v1402_v55 }
 0x6ed   : > { %5508 = vmatmul.mubr.msk.f32.gmra.mxu0 %vm487_vm1, %v1409_v57 }
 0x6ee   : > { %5539 = vmatprep.mubr.msk.f32.mxu0 %vm6108_vm0, %v6107_v1 }
 0x7a4   : > { %v1494_v4 = vpop.f32.mrf.mxu0 }
 0x7a5   : > { %v1495_v5 = vadd.f32 %v5029_v13, %v1494_v4 }
 0x7a6   : > { %v5503_v6 = vpop.f32.mrf.mxu0 }
 0x7a7   : > { %v1512_v7 = vmul.f32 0.70710677, %v1495_v5  ;;  %v1508_v24 = vmul.f32 0.5, %v1495_v5 }
 0x7a9   : > { %5917 = verf.f32 %v1512_v7  ;;  %v1499_v9 = vpop.f32.mrf.mxu0 }
 0x7aa   : > { %v1500_v11 = vadd.f32 %v5029_v13, %v1499_v9 }
 0x7ab   : > { %v5506_v14 = vpop.f32.mrf.mxu0 }
 0x7ac   : > { %v1513_v18 = vmul.f32 0.70710677, %v1500_v11  ;;  %v1509_v30 = vmul.f32 0.5, %v1500_v11  ;;  %v5040_v11 = vld [vmem:[%s7289_s8 + $0x48] sm:$0xff]  ;;  %v5038_v14 = vld [vmem:[%s7289_s8 + $0x38] sm:$0xff] }
 0x7ad   : > { %v1504_v15 = vpop.f32.mrf.mxu0  ;;  %5536 = vmatpush3.msra.mxu0 %v5038_v14 }
 0x7ae   : > { %5919 = verf.f32 %v1513_v18  ;;  %v1505_v19 = vadd.f32 %v5029_v13, %v1504_v15  ;;  %v5037_v18 = vld [vmem:[%s7289_s8 + $0x30] sm:$0xff]  ;;  %v5039_v15 = vld [vmem:[%s7289_s8 + $0x40] sm:$0xff]  ;;  %5537 = vmatprep.subr.mxu0 %v6107_v1 }
 0x7af   : > { %v5509_v20 = vpop.f32.mrf.mxu0  ;;  %5538 = vmatpush3.msra.mxu0 %v5037_v18 }
 0x7b0   : > { %v1514_v21 = vmul.f32 0.70710677, %v1505_v19  ;;  %v1510_v35 = vmul.f32 0.5, %v1505_v19  ;;  %5561 = vmatprep.subr.mxu0 %v6107_v1 }
 0x7b2   : > { %5921 = verf.f32 %v1514_v21 }
 0x7b6   : > { %v5918_v22 = vpop.eup %5917 }
 0x7b7   : > { %v1518_v27 = vadd.f32 1.0, %v5918_v22 }
 0x7b9   : > { %v1521_v28 = vmul.f32 %v1518_v27, %v1508_v24 }
 0x7bb   : > { %v5920_v29 = vpop.eup %5919  ;;  %5527 = vmatmul.mubr.msk.f32.vlgmr.msra.gmra.mxu1 %vm1536_vm3, %v1521_v28 }
 0x7bc   : > { %v1519_v31 = vadd.f32 1.0, %v5920_v29  ;;  %5529 = vmatprep.mubr.msk.f32.mxu1 %vm6108_vm0, %v6107_v1  ;;  %5549 = vmatpush3.msra.mxu1 %v5040_v11 }
 0x7bd   : > { %5550 = vmatprep.subr.mxu1 %v6107_v1 }
 0x7be   : > { %v1522_v32 = vmul.f32 %v1519_v31, %v1509_v30  ;;  %5551 = vmatpush3.msra.mxu1 %v5039_v15  ;;  %v6620_v31 = vld [vmem:[%s7293_s12 + $0x8] sm:$0xff] }
 0x7bf   : > { %v5922_v33 = vpop.eup %5921  ;;  %5574 = vmatprep.subr.mxu1 %v6107_v1 }
 0x7c0   : > { %v1520_v36 = vadd.f32 1.0, %v5922_v33  ;;  %5530 = vmatmul.mubr.msk.f32.gmra.mxu1 %vm1536_vm3, %v1522_v32  ;;  %v1680_v32 = vrot.slane %v6620_v31, %v6311_v51 }
 0x7c1   : > { %5532 = vmatprep.mubr.msk.f32.mxu1 %vm6108_vm0, %v6107_v1 }
 0x7c2   : > { %v1523_v37 = vmul.f32 %v1520_v36, %v1510_v35  ;;  %v1687_v36 = vrot.slane %v6620_v31, %v6319_v53 }
 0x7c4   : > { %5533 = vmatmul.mubr.msk.f32.gmra.mxu1 %vm1536_vm3, %v1523_v37 }
 0x7c5   : > { %5552 = vmatprep.mubr.msk.f32.mxu1 %vm6108_vm0, %v6107_v1 }
 0x87b   : > { %v1612_v41 = vpop.f32.mrf.mxu1 }
 0x87c   : > { %v1613_v42 = vadd.f32 %v1612_v41, %v1535_v40 }
 0x87d   : > { %v5528_v43 = vpop.f32.mrf.mxu1 }
 0x87e   : > { %v6581_v44 = vadd.f32 %v1613_v42, %v6490_v45  ;;  %v5042_v43 = vld [vmem:[%s7289_s8 + $0x58] sm:$0xff] }
 0x880   : > { %v1617_v46 = vpop.f32.mrf.mxu1  ;;  %v1638_v47 = vsel %vm487_vm1, %v6581_v44, 0.0 }
 0x881   : > { %v1618_v48 = vadd.f32 %v1617_v46, %v1535_v40  ;;  %1639 = vadd.xlane.f32.xlu0 %v1638_v47  ;;  %v5041_v47 = vld [vmem:[%s7289_s8 + $0x50] sm:$0xff] }
 0x882   : > { %v5531_v50 = vpop.f32.mrf.mxu1 }
 0x883   : > { %v6586_v54 = vadd.f32 %v1618_v48, %v6495_v56 }
 0x884   : > { %v1622_v49 = vpop.f32.mrf.mxu1 }
 0x885   : > { %v1623_v55 = vadd.f32 %v1622_v49, %v1535_v40  ;;  %v1641_v52 = vsel %vm487_vm1, %v6586_v54, 0.0 }
 0x886   : > { %1642 = vadd.xlane.f32.xlu1 %v1641_v52  ;;  %v5534_v57 = vpop.f32.mrf.mxu1 }
 0x887   : > { %v6591_v45 = vadd.f32 %v1623_v55, %v6500_v62 }
 0x889   : > { %v1644_v58 = vsel %vm487_vm1, %v6591_v45, 0.0 }
 0x88a   : > { %1645 = vadd.xlane.f32.xlu0 %v1644_v58 }
 0x90a   : > { %v1640_v59 = vpop.xlane.xlu0 %1639 }
 0x90b   : > { %v1647_v60 = vmul.f32 0.0625, %v1640_v59 }
 0x90d   : > { %v1650_v8 = vsub.f32 %v6581_v44, %v1647_v60 }
 0x90f   : > { %v1643_v56 = vpop.xlane.xlu1 %1642  ;;  %v1653_v61 = vmul.f32 %v1650_v8, %v1650_v8 }
 0x910   : > { %v1648_v63 = vmul.f32 0.0625, %v1643_v56 }
 0x911   : > { %v1656_v2 = vsel %vm487_vm1, %v1653_v61, 0.0 }
 0x912   : > { %v1651_v3 = vsub.f32 %v6586_v54, %v1648_v63  ;;  %1657 = vadd.xlane.f32.xlu1 %v1656_v2  ;;  %v1787_v2 = vrot.slane %v6620_v31, %v6361_v12 }
 0x913   : > { %v1646_v13 = vpop.xlane.xlu0 %1645 }
 0x914   : > { %v1649_v4 = vmul.f32 0.0625, %v1646_v13  ;;  %v1654_v62 = vmul.f32 %v1651_v3, %v1651_v3 }
 0x916   : > { %v1652_v5 = vsub.f32 %v6591_v45, %v1649_v4  ;;  %v1659_v6 = vsel %vm487_vm1, %v1654_v62, 0.0 }
 0x917   : > { %1660 = vadd.xlane.f32.xlu0 %v1659_v6 }
 0x918   : > { %v1655_v7 = vmul.f32 %v1652_v5, %v1652_v5 }
 0x91a   : > { %v1662_v9 = vsel %vm487_vm1, %v1655_v7, 0.0 }
 0x91b   : > { %1663 = vadd.xlane.f32.xlu1 %v1662_v9 }
 0x99b   : > { %v1658_v19 = vpop.xlane.xlu1 %1657 }
 0x99c   : > { %v1665_v20 = vmul.f32 0.0625, %v1658_v19 }
 0x99e   : > { %v1668_v21 = vadd.f32 1e-05, %v1665_v20 }
 0x9a0   : > { %5923 = vrsqrt.f32 %v1668_v21  ;;  %v1661_v22 = vpop.xlane.xlu0 %1660  ;;  %v1694_v21 = vrot.slane %v6620_v31, %v6385_v34 }
 0x9a1   : > { %v1666_v24 = vmul.f32 0.0625, %v1661_v22 }
 0x9a3   : > { %v1669_v27 = vadd.f32 1e-05, %v1666_v24 }
 0x9a4   : > { %v1664_v28 = vpop.xlane.xlu1 %1663 }
 0x9a5   : > { %5925 = vrsqrt.f32 %v1669_v27  ;;  %v1667_v29 = vmul.f32 0.0625, %v1664_v28  ;;  %v1871_v28 = vrot.slane %v6620_v31, %v6392_v39 }
 0x9a7   : > { %v1670_v30 = vadd.f32 1e-05, %v1667_v29 }
 0x9a9   : > { %5927 = vrsqrt.f32 %v1670_v30 }
 0x9ad   : > { %v5924_v33 = vpop.eup %5923 }
 0x9ae   : > { %v1674_v35 = vmul.f32 %v5924_v33, %v1650_v8 }
 0x9b0   : > { %v1681_v37 = vmul.f32 %v1680_v32, %v1674_v35 }
 0x9b2   : > { %v5926_v40 = vpop.eup %5925  ;;  %v1688_v41 = vadd.f32 %v1687_v36, %v1681_v37 }
 0x9b3   : > { %v1675_v42 = vmul.f32 %v5926_v40, %v1651_v3 }
 0x9b4   : > { %5540 = vmatmul.mubr.msk.f32.vlgmr.msra.gmra.mxu0 %vm487_vm1, %v1688_v41  ;;  %5553 = vmatmul.mubr.msk.f32.vlgmr.msra.gmra.mxu1 %vm487_vm1, %v1688_v41 }
 0x9b5   : > { %5542 = vmatprep.mubr.msk.f32.mxu0 %vm6108_vm0, %v6107_v1  ;;  %5555 = vmatprep.mubr.msk.f32.mxu1 %vm6108_vm0, %v6107_v1  ;;  %v1682_v46 = vmul.f32 %v1680_v32, %v1675_v42 }
 0x9b6   : > { %v5928_v48 = vpop.eup %5927  ;;  %5562 = vmatpush3.msra.mxu0 %v5042_v43 }
 0x9b7   : > { %v1689_v50 = vadd.f32 %v1687_v36, %v1682_v46  ;;  %v1676_v49 = vmul.f32 %v5928_v48, %v1652_v5  ;;  %5563 = vmatprep.subr.mxu0 %v6107_v1 }
 0x9b8   : > { %5564 = vmatpush3.msra.mxu0 %v5041_v47 }
 0x9b9   : > { %5543 = vmatmul.mubr.msk.f32.gmra.mxu0 %vm487_vm1, %v1689_v50  ;;  %5556 = vmatmul.mubr.msk.f32.gmra.mxu1 %vm487_vm1, %v1689_v50  ;;  %v1683_v55 = vmul.f32 %v1680_v32, %v1676_v49 }
 0x9ba   : > { %5545 = vmatprep.mubr.msk.f32.mxu0 %vm6108_vm0, %v6107_v1  ;;  %5558 = vmatprep.mubr.msk.f32.mxu1 %vm6108_vm0, %v6107_v1 }
 0x9bb   : > { %v1690_v52 = vadd.f32 %v1687_v36, %v1683_v55  ;;  %5589 = vmatprep.subr.mxu0 %v6107_v1 }
 0x9bd   : > { %5546 = vmatmul.mubr.msk.f32.gmra.mxu0 %vm487_vm1, %v1690_v52  ;;  %5559 = vmatmul.mubr.msk.f32.gmra.mxu1 %vm487_vm1, %v1690_v52 }
 0x9be   : > { %5565 = vmatprep.mubr.msk.f32.mxu0 %vm6108_vm0, %v6107_v1  ;;  %5580 = vmatprep.mubr.msk.f32.mxu1 %vm6108_vm0, %v6107_v1 }
 0x9c1   : > { %5566 = vmatmul.mubr.msk.f32.vlgmr.msra.gmra.mxu0 %vm487_vm1, %v1688_v41 }
 0x9c2   : > { %5568 = vmatprep.mubr.msk.f32.mxu0 %vm6108_vm0, %v6107_v1 }
 0x9c5   : > { %5569 = vmatmul.mubr.msk.f32.gmra.mxu0 %vm487_vm1, %v1689_v50 }
 0x9c6   : > { %5571 = vmatprep.mubr.msk.f32.mxu0 %vm6108_vm0, %v6107_v1 }
 0x9c9   : > { %5572 = vmatmul.mubr.msk.f32.gmra.mxu0 %vm487_vm1, %v1690_v52 }
 0x9ca   : > { %5595 = vmatprep.mubr.msk.f32.mxu0 %vm6108_vm0, %v6107_v1 }
 0xa74   : > { %v1770_v57 = vpop.f32.mrf.mxu0  ;;  %v1854_v58 = vpop.f32.mrf.mxu1 }
 0xa75   : > { %v1855_v18 = vadd.f32 %v1854_v58, %v1787_v2  ;;  %v1771_v32 = vadd.f32 %v1770_v57, %v1694_v21 }
 0xa76   : > { %v5541_v59 = vpop.f32.mrf.mxu0  ;;  %v5554_v60 = vpop.f32.mrf.mxu1 }
 0xa77   : > { %v1952_v24 = vmul.f32 %v1855_v18, %v6375_v25  ;;  %v2089_v27 = vmul.f32 %v1855_v18, %v6378_v26 }
 0xa79   : > { %v1775_v8 = vpop.f32.mrf.mxu0  ;;  %v1859_v56 = vpop.f32.mrf.mxu1 }
 0xa7a   : > { %v1860_v6 = vadd.f32 %v1859_v56, %v1787_v2  ;;  %v1776_v43 = vadd.f32 %v1775_v8, %v1694_v21 }
 0xa7b   : > { %v5544_v61 = vpop.f32.mrf.mxu0  ;;  %v5557_v63 = vpop.f32.mrf.mxu1 }
 0xa7c   : > { %v1953_v15 = vmul.f32 %v1860_v6, %v6375_v25  ;;  %v2090_v19 = vmul.f32 %v1860_v6, %v6378_v26 }
 0xa7d   : > { %v1780_v3 = vpop.f32.mrf.mxu0  ;;  %v1864_v13 = vpop.f32.mrf.mxu1 }
 0xa7e   : > { %v1865_v4 = vadd.f32 %v1864_v13, %v1787_v2  ;;  %v1781_v48 = vadd.f32 %v1780_v3, %v1694_v21 }
 0xa7f   : > { %v5547_v62 = vpop.f32.mrf.mxu0  ;;  %v5560_v5 = vpop.f32.mrf.mxu1 }
 0xa80   : > { %v1954_v7 = vmul.f32 %v1865_v4, %v6375_v25  ;;  %v2091_v9 = vmul.f32 %v1865_v4, %v6378_v26 }
 0xa81   : > { %v1938_v11 = vpop.f32.mrf.mxu0 }
 0xa82   : > { %5575 = vmatpush3.xpose.msk.msra.mxu1 %vm487_vm1, %v1954_v7  ;;  %5590 = vmatpush3.xpose.msk.msra.mxu0 %vm487_vm1, %v2091_v9  ;;  %v1939_v40 = vadd.f32 %v1938_v11, %v1871_v28 }
 0xa83   : > { %v5567_v14 = vpop.f32.mrf.mxu0  ;;  %5576 = vmatprep.subr.mxu1 %v6107_v1  ;;  %5591 = vmatprep.subr.mxu0 %v6107_v1 }
 0xa84   : > { %v2086_v46 = vmul.f32 %v1939_v40, %v6375_v25  ;;  %v2214_v47 = vmul.f32 %v1939_v40, %v6378_v26 }
 0xa85   : > { %v1943_v20 = vpop.f32.mrf.mxu0 }
 0xa86   : > { %5577 = vmatpush3.xpose.msk.msra.mxu1 %vm487_vm1, %v1953_v15  ;;  %5592 = vmatpush3.xpose.msk.msra.mxu0 %vm487_vm1, %v2090_v19  ;;  %v1944_v33 = vadd.f32 %v1943_v20, %v1871_v28 }
 0xa87   : > { %v5570_v22 = vpop.f32.mrf.mxu0  ;;  %5578 = vmatprep.subr.mxu1 %v6107_v1  ;;  %5593 = vmatprep.subr.mxu0 %v6107_v1 }
 0xa88   : > { %v2087_v41 = vmul.f32 %v1944_v33, %v6375_v25  ;;  %v2215_v42 = vmul.f32 %v1944_v33, %v6378_v26 }
 0xa89   : > { %v1948_v29 = vpop.f32.mrf.mxu0 }
 0xa8a   : > { %v1949_v30 = vadd.f32 %v1948_v29, %v1871_v28  ;;  %5579 = vmatpush3.xpose.msk.msra.mxu1 %vm487_vm1, %v1952_v24  ;;  %5594 = vmatpush3.xpose.msk.msra.mxu0 %vm487_vm1, %v2089_v27 }
 0xa8b   : > { %v5573_v35 = vpop.f32.mrf.mxu0  ;;  %5604 = vmatprep.subr.mxu1 %v6107_v1  ;;  %5619 = vmatprep.subr.mxu0 %v6107_v1 }
 0xa8c   : > { %v2088_v36 = vmul.f32 %v1949_v30, %v6375_v25  ;;  %v2216_v37 = vmul.f32 %v1949_v30, %v6378_v26 }
 0xa8d   : > { %5581 = vmatmul.mubr.msk.f32.vlgmr.msra.gmra.mxu1 %vm487_vm1, %v1771_v32  ;;  %5596 = vmatmul.mubr.msk.f32.vlgmr.msra.gmra.mxu0 %vm487_vm1, %v1771_v32 }
 0xa8e   : > { %5605 = vmatpush3.msra.mxu1 %v2216_v37  ;;  %5620 = vmatpush3.msra.mxu0 %v2088_v36 }
 0xa8f   : > { %5606 = vmatprep.subr.mxu1 %v6107_v1  ;;  %5621 = vmatprep.subr.mxu0 %v6107_v1 }
 0xa90   : > { %5583 = vmatprep.mubr.msk.f32.mxu1 %vm6108_vm0, %v6107_v1  ;;  %5598 = vmatprep.mubr.msk.f32.mxu0 %vm6108_vm0, %v6107_v1 }
 0xa91   : > { %5607 = vmatpush3.msra.mxu1 %v2215_v42  ;;  %5622 = vmatpush3.msra.mxu0 %v2087_v41 }
 0xa92   : > { %5584 = vmatmul.mubr.msk.f32.gmra.mxu1 %vm487_vm1, %v1776_v43  ;;  %5599 = vmatmul.mubr.msk.f32.gmra.mxu0 %vm487_vm1, %v1776_v43 }
 0xa93   : > { %5608 = vmatprep.subr.mxu1 %v6107_v1  ;;  %5623 = vmatprep.subr.mxu0 %v6107_v1 }
 0xa94   : > { %5609 = vmatpush3.msra.mxu1 %v2214_v47  ;;  %5624 = vmatpush3.msra.mxu0 %v2086_v46 }
 0xa95   : > { %5586 = vmatprep.mubr.msk.f32.mxu1 %vm6108_vm0, %v6107_v1  ;;  %5601 = vmatprep.mubr.msk.f32.mxu0 %vm6108_vm0, %v6107_v1 }
 0xa96   : > { %5587 = vmatmul.mubr.msk.f32.gmra.mxu1 %vm487_vm1, %v1781_v48  ;;  %5602 = vmatmul.mubr.msk.f32.gmra.mxu0 %vm487_vm1, %v1781_v48 }
 0xa97   : > { %5610 = vmatprep.mubr.msk.f32.mxu1 %vm6108_vm0, %v6107_v1  ;;  %5625 = vmatprep.mubr.msk.f32.mxu0 %vm6108_vm0, %v6107_v1 }
 0xa98   : > { %5634 = vmatprep.subr.mxu1 %v6107_v1  ;;  %5647 = vmatprep.subr.mxu0 %v6107_v1 }
 0xb4d   : > { %v2039_v50 = vpop.f32.mrf.mxu1  ;;  %v2167_v49 = vpop.f32.mrf.mxu0 }
 0xb4e   : > { %v2040_v55 = vadd.f32 %v2039_v50, %v6441_v0  ;;  %v2168_v52 = vadd.f32 %v2167_v49, %v6441_v0 }
 0xb4f   : > { %v5582_v57 = vpop.f32.mrf.mxu1  ;;  %v5597_v58 = vpop.f32.mrf.mxu0 }
 0xb50   : > { %v2053_v59 = vsel %vm1007_vm2, %v2040_v55, -inf  ;;  %v2181_v60 = vsel %vm1007_vm2, %v2168_v52, -inf }
 0xb51   : > { %2054 = vmax.xlane.f32.xlu0 %v2053_v59  ;;  %2182 = vmax.xlane.f32.xlu1 %v2181_v60 }
 0xb52   : > { %v2044_v8 = vpop.f32.mrf.mxu1  ;;  %v2172_v56 = vpop.f32.mrf.mxu0 }
 0xb53   : > { %v2045_v61 = vadd.f32 %v2044_v8, %v6449_v10  ;;  %v2173_v63 = vadd.f32 %v2172_v56, %v6449_v10 }
 0xb54   : > { %v5585_v2 = vpop.f32.mrf.mxu1  ;;  %v5600_v3 = vpop.f32.mrf.mxu0 }
 0xb55   : > { %v2056_v13 = vsel %vm1007_vm2, %v2045_v61, -inf  ;;  %v2184_v0 = vsel %vm1007_vm2, %v2173_v63, -inf }
 0xb56   : > { %2057 = vmax.xlane.f32.xlu0 %v2056_v13  ;;  %v2049_v4 = vpop.f32.mrf.mxu1  ;;  %2185 = vmax.xlane.f32.xlu1 %v2184_v0  ;;  %v2177_v62 = vpop.f32.mrf.mxu0 }
 0xb57   : > { %v2050_v5 = vadd.f32 %v2049_v4, %v6457_v23  ;;  %v2178_v6 = vadd.f32 %v2177_v62, %v6457_v23 }
 0xb58   : > { %v5588_v7 = vpop.f32.mrf.mxu1  ;;  %v5603_v9 = vpop.f32.mrf.mxu0 }
 0xb59   : > { %v2059_v11 = vsel %vm1007_vm2, %v2050_v5, -inf  ;;  %v2187_v10 = vsel %vm1007_vm2, %v2178_v6, -inf }
 0xb5a   : > { %2060 = vmax.xlane.f32.xlu0 %v2059_v11  ;;  %2188 = vmax.xlane.f32.xlu1 %v2187_v10 }
 0xbda   : > { %v2055_v14 = vpop.xlane.xlu0 %2054  ;;  %v2183_v18 = vpop.xlane.xlu1 %2182 }
 0xbdb   : > { %v2062_v15 = vsub.f32 %v2040_v55, %v2055_v14  ;;  %v2190_v19 = vsub.f32 %v2168_v52, %v2183_v18 }
 0xbdd   : > { %v2065_v20 = vmul.f32 1.442695, %v2062_v15  ;;  %v2193_v21 = vmul.f32 1.442695, %v2190_v19 }
 0xbdf   : > { %5929 = vpow2.f32 %v2065_v20  ;;  %v2058_v22 = vpop.xlane.xlu0 %2057  ;;  %v2186_v24 = vpop.xlane.xlu1 %2185 }
 0xbe0   : > { %5931 = vpow2.f32 %v2193_v21  ;;  %v2063_v27 = vsub.f32 %v2045_v61, %v2058_v22  ;;  %v2191_v23 = vsub.f32 %v2173_v63, %v2186_v24 }
 0xbe2   : > { %v2067_v28 = vmul.f32 1.442695, %v2063_v27  ;;  %v2195_v29 = vmul.f32 1.442695, %v2191_v23 }
 0xbe3   : > { %v2061_v30 = vpop.xlane.xlu0 %2060  ;;  %v2189_v32 = vpop.xlane.xlu1 %2188 }
 0xbe4   : > { %5933 = vpow2.f32 %v2067_v28  ;;  %v2064_v33 = vsub.f32 %v2050_v5, %v2061_v30  ;;  %v2192_v35 = vsub.f32 %v2178_v6, %v2189_v32 }
 0xbe5   : > { %5935 = vpow2.f32 %v2195_v29 }
 0xbe6   : > { %v2069_v36 = vmul.f32 1.442695, %v2064_v33  ;;  %v2197_v37 = vmul.f32 1.442695, %v2192_v35 }
 0xbe8   : > { %5937 = vpow2.f32 %v2069_v36 }
 0xbe9   : > { %5939 = vpow2.f32 %v2197_v37 }
 0xbec   : > { %v5930_v40 = vpop.eup %5929 }
 0xbed   : > { %v5932_v41 = vpop.eup %5931  ;;  %v2071_v42 = vsel %vm1007_vm2, %v5930_v40, 0.0 }
 0xbee   : > { %2072 = vadd.xlane.f32.xlu0 %v2071_v42  ;;  %v2199_v43 = vsel %vm1007_vm2, %v5932_v41, 0.0 }
 0xbef   : > { %2200 = vadd.xlane.f32.xlu1 %v2199_v43 }
 0xbf1   : > { %v5934_v46 = vpop.eup %5933 }
 0xbf2   : > { %v5936_v47 = vpop.eup %5935  ;;  %v2074_v48 = vsel %vm1007_vm2, %v5934_v46, 0.0 }
 0xbf3   : > { %2075 = vadd.xlane.f32.xlu0 %v2074_v48  ;;  %v2202_v50 = vsel %vm1007_vm2, %v5936_v47, 0.0 }
 0xbf4   : > { %2203 = vadd.xlane.f32.xlu1 %v2202_v50 }
 0xbf5   : > { %v5938_v49 = vpop.eup %5937 }
 0xbf6   : > { %v5940_v55 = vpop.eup %5939  ;;  %v2077_v52 = vsel %vm1007_vm2, %v5938_v49, 0.0 }
 0xbf7   : > { %2078 = vadd.xlane.f32.xlu0 %v2077_v52  ;;  %v2205_v57 = vsel %vm1007_vm2, %v5940_v55, 0.0 }
 0xbf8   : > { %2206 = vadd.xlane.f32.xlu1 %v2205_v57 }
 0xc77   : > { %v2073_v58 = vpop.xlane.xlu0 %2072 }
 0xc78   : > { %5941 = vrcp.f32 %v2073_v58  ;;  %v2201_v59 = vpop.xlane.xlu1 %2200 }
 0xc79   : > { %5943 = vrcp.f32 %v2201_v59 }
 0xc7c   : > { %v2076_v60 = vpop.xlane.xlu0 %2075 }
 0xc7d   : > { %5945 = vrcp.f32 %v2076_v60  ;;  %v2204_v8 = vpop.xlane.xlu1 %2203  ;;  %v5071_v60 = vld [vmem:[%s7290_s9 + $0x18] sm:$0xff] }
 0xc7e   : > { %5947 = vrcp.f32 %v2204_v8  ;;  %v5070_v8 = vld [vmem:[%s7290_s9 + $0x10] sm:$0xff] }
 0xc80   : > { %v2079_v56 = vpop.xlane.xlu0 %2078 }
 0xc81   : > { %5949 = vrcp.f32 %v2079_v56  ;;  %v2207_v61 = vpop.xlane.xlu1 %2206 }
 0xc82   : > { %5951 = vrcp.f32 %v2207_v61 }
 0xc85   : > { %v5942_v63 = vpop.eup %5941 }
 0xc86   : > { %v5944_v2 = vpop.eup %5943  ;;  %v2083_v3 = vmul.f32 %v5942_v63, %v5930_v40 }
 0xc87   : > { %v2211_v13 = vmul.f32 %v5944_v2, %v5932_v41 }
 0xc88   : > { %5626 = vmatmul.mubr.msk.f32.vlgmr.msra.gmra.mxu0 %vm1007_vm2, %v2083_v3 }
 0xc89   : > { %5611 = vmatmul.mubr.msk.f32.vlgmr.msra.gmra.mxu1 %vm1007_vm2, %v2211_v13  ;;  %5628 = vmatprep.mubr.msk.f32.mxu0 %vm6108_vm0, %v6107_v1 }
 0xc8a   : > { %v5946_v0 = vpop.eup %5945  ;;  %5613 = vmatprep.mubr.msk.f32.mxu1 %vm6108_vm0, %v6107_v1  ;;  %5635 = vmatpush3.msra.mxu1 %v5071_v60 }
 0xc8b   : > { %v5948_v4 = vpop.eup %5947  ;;  %v2084_v62 = vmul.f32 %v5946_v0, %v5934_v46  ;;  %5636 = vmatprep.subr.mxu1 %v6107_v1 }
 0xc8c   : > { %v2212_v5 = vmul.f32 %v5948_v4, %v5936_v47  ;;  %5637 = vmatpush3.msra.mxu1 %v5070_v8 }
 0xc8d   : > { %5629 = vmatmul.mubr.msk.f32.gmra.mxu0 %vm1007_vm2, %v2084_v62  ;;  %5672 = vmatprep.subr.mxu1 %v6107_v1 }
 0xc8e   : > { %v5950_v6 = vpop.eup %5949  ;;  %5614 = vmatmul.mubr.msk.f32.gmra.mxu1 %vm1007_vm2, %v2212_v5  ;;  %5631 = vmatprep.mubr.msk.f32.mxu0 %vm6108_vm0, %v6107_v1  ;;  %v2440_v5 = vrot.slane %v6620_v31, %v6364_v16 }
 0xc8f   : > { %v5952_v7 = vpop.eup %5951  ;;  %5616 = vmatprep.mubr.msk.f32.mxu1 %vm6108_vm0, %v6107_v1  ;;  %v2085_v9 = vmul.f32 %v5950_v6, %v5938_v49 }
 0xc90   : > { %v2213_v11 = vmul.f32 %v5952_v7, %v5940_v55 }
 0xc91   : > { %5632 = vmatmul.mubr.msk.f32.gmra.mxu0 %vm1007_vm2, %v2085_v9  ;;  %v2447_v9 = vrot.slane %v6620_v31, %v6367_v17 }
 0xc92   : > { %5617 = vmatmul.mubr.msk.f32.gmra.mxu1 %vm1007_vm2, %v2213_v11  ;;  %5663 = vmatprep.mubr.msk.f32.mxu0 %vm6108_vm0, %v6107_v1 }
 0xc93   : > { %5638 = vmatprep.mubr.msk.f32.mxu1 %vm6108_vm0, %v6107_v1 }
 0xd48   : > { %v2381_v10 = vpop.f32.mrf.mxu0 }
 0xd49   : > { %v2292_v14 = vpop.f32.mrf.mxu1 }
 0xd4a   : > { %v2382_v18 = vadd.f32 %v2381_v10, %v2292_v14  ;;  %v5627_v15 = vpop.f32.mrf.mxu0 }
 0xd4b   : > { %v5612_v19 = vpop.f32.mrf.mxu1 }
 0xd4c   : > { %v6752_v20 = vadd.f32 %v2382_v18, %v6581_v44 }
 0xd4d   : > { %v2386_v21 = vpop.f32.mrf.mxu0 }
 0xd4e   : > { %v2297_v22 = vpop.f32.mrf.mxu1  ;;  %v2398_v24 = vsel %vm487_vm1, %v6752_v20, 0.0 }
 0xd4f   : > { %v2387_v27 = vadd.f32 %v2386_v21, %v2297_v22  ;;  %2399 = vadd.xlane.f32.xlu0 %v2398_v24  ;;  %v5630_v23 = vpop.f32.mrf.mxu0 }
 0xd50   : > { %v5615_v28 = vpop.f32.mrf.mxu1  ;;  %v5084_v23 = vld [vmem:[%s7291_s10 + $0x78] sm:$0xff] }
 0xd51   : > { %v6757_v29 = vadd.f32 %v2387_v27, %v6586_v54  ;;  %v2391_v30 = vpop.f32.mrf.mxu0  ;;  %5648 = vmatpush3.msra.mxu0 %v5084_v23  ;;  %v5083_v28 = vld [vmem:[%s7291_s10 + $0x70] sm:$0xff] }
 0xd52   : > { %v2302_v32 = vpop.f32.mrf.mxu1  ;;  %5649 = vmatprep.subr.mxu0 %v6107_v1 }
 0xd53   : > { %v2392_v33 = vadd.f32 %v2391_v30, %v2302_v32  ;;  %v2401_v35 = vsel %vm487_vm1, %v6757_v29, 0.0  ;;  %v5633_v44 = vpop.f32.mrf.mxu0  ;;  %5650 = vmatpush3.msra.mxu0 %v5083_v28  ;;  %v5082_v30 = vld [vmem:[%s7291_s10 + $0x68] sm:$0xff]  ;;  %v5081_v32 = vld [vmem:[%s7291_s10 + $0x60] sm:$0xff] }
 0xd54   : > { %v5618_v36 = vpop.f32.mrf.mxu1  ;;  %2402 = vadd.xlane.f32.xlu1 %v2401_v35  ;;  %5651 = vmatprep.subr.mxu0 %v6107_v1  ;;  %v5079_v35 = vld [vmem:[%s7291_s10 + $0x50] sm:$0xff]  ;;  %v5078_v44 = vld [vmem:[%s7291_s10 + $0x48] sm:$0xff] }
 0xd55   : > { %v6762_v37 = vadd.f32 %v2392_v33, %v6591_v45  ;;  %5652 = vmatpush3.msra.mxu0 %v5082_v30  ;;  %v5080_v33 = vld [vmem:[%s7291_s10 + $0x58] sm:$0xff]  ;;  %v5077_v36 = vld [vmem:[%s7291_s10 + $0x40] sm:$0xff] }
 0xd56   : > { %5653 = vmatprep.subr.mxu0 %v6107_v1 }
 0xd57   : > { %v2404_v40 = vsel %vm487_vm1, %v6762_v37, 0.0  ;;  %5654 = vmatpush3.msra.mxu0 %v5081_v32 }
 0xd58   : > { %2405 = vadd.xlane.f32.xlu0 %v2404_v40  ;;  %5655 = vmatprep.subr.mxu0 %v6107_v1  ;;  %v5073_v40 = vld [vmem:[%s7292_s11 + $0x1] ss:$0 sm:$0xff] }
 0xd59   : > { %5656 = vmatpush3.msra.mxu0 %v5080_v33 }
 0xd5a   : > { %5657 = vmatprep.subr.mxu0 %v6107_v1 }
 0xd5b   : > { %5658 = vmatpush3.msra.mxu0 %v5079_v35 }
 0xd5c   : > { %5659 = vmatprep.subr.mxu0 %v6107_v1 }
 0xd5d   : > { %5660 = vmatpush3.msra.mxu0 %v5078_v44 }
 0xd5e   : > { %5661 = vmatprep.subr.mxu0 %v6107_v1 }
 0xd5f   : > { %5662 = vmatpush3.msra.mxu0 %v5077_v36 }
 0xdd8   : > { %v2400_v41 = vpop.xlane.xlu0 %2399 }
 0xdd9   : > { %v2407_v42 = vmul.f32 0.0625, %v2400_v41 }
 0xddb   : > { %v2410_v54 = vsub.f32 %v6752_v20, %v2407_v42 }
 0xddd   : > { %v2403_v43 = vpop.xlane.xlu1 %2402  ;;  %v2413_v46 = vmul.f32 %v2410_v54, %v2410_v54 }
 0xdde   : > { %v2408_v47 = vmul.f32 0.0625, %v2403_v43 }
 0xddf   : > { %v2416_v48 = vsel %vm487_vm1, %v2413_v46, 0.0 }
 0xde0   : > { %v2411_v50 = vsub.f32 %v6757_v29, %v2408_v47  ;;  %2417 = vadd.xlane.f32.xlu1 %v2416_v48 }
 0xde1   : > { %v2406_v49 = vpop.xlane.xlu0 %2405 }
 0xde2   : > { %v2409_v55 = vmul.f32 0.0625, %v2406_v49  ;;  %v2414_v45 = vmul.f32 %v2411_v50, %v2411_v50 }
 0xde4   : > { %v2412_v52 = vsub.f32 %v6762_v37, %v2409_v55  ;;  %v2419_v57 = vsel %vm487_vm1, %v2414_v45, 0.0 }
 0xde5   : > { %2420 = vadd.xlane.f32.xlu0 %v2419_v57 }
 0xde6   : > { %v2415_v58 = vmul.f32 %v2412_v52, %v2412_v52 }
 0xde8   : > { %v2422_v59 = vsel %vm487_vm1, %v2415_v58, 0.0 }
 0xde9   : > { %2423 = vadd.xlane.f32.xlu1 %v2422_v59 }
 0xe69   : > { %v2418_v56 = vpop.xlane.xlu1 %2417 }
 0xe6a   : > { %v2425_v61 = vmul.f32 0.0625, %v2418_v56 }
 0xe6c   : > { %v2428_v63 = vadd.f32 1e-05, %v2425_v61 }
 0xe6e   : > { %5953 = vrsqrt.f32 %v2428_v63  ;;  %v2421_v2 = vpop.xlane.xlu0 %2420 }
 0xe6f   : > { %v2426_v3 = vmul.f32 0.0625, %v2421_v2 }
 0xe71   : > { %v2429_v13 = vadd.f32 1e-05, %v2426_v3 }
 0xe72   : > { %v2424_v0 = vpop.xlane.xlu1 %2423 }
 0xe73   : > { %5955 = vrsqrt.f32 %v2429_v13  ;;  %v2427_v4 = vmul.f32 0.0625, %v2424_v0 }
 0xe75   : > { %v2430_v62 = vadd.f32 1e-05, %v2427_v4  ;;  %v2578_v4 = vrot.slane %v6620_v31, %v6576_v38 }
 0xe77   : > { %5957 = vrsqrt.f32 %v2430_v62 }
 0xe7b   : > { %v5954_v6 = vpop.eup %5953 }
 0xe7c   : > { %v2434_v7 = vmul.f32 %v5954_v6, %v2410_v54  ;;  %v6839_v6 = vld [vmem:[%s7288_s7] sm:$0xff] }
 0xe7e   : > { %v2441_v11 = vmul.f32 %v2440_v5, %v2434_v7  ;;  %v2674_v7 = vrot.slane %v6839_v6, %v6319_v53 }
 0xe80   : > { %v5956_v10 = vpop.eup %5955  ;;  %v2448_v14 = vadd.f32 %v2447_v9, %v2441_v11 }
 0xe81   : > { %v2435_v18 = vmul.f32 %v5956_v10, %v2411_v50  ;;  %v2681_v10 = vrot.slane %v6839_v6, %v6385_v34 }
 0xe82   : > { %5639 = vmatmul.mubr.msk.f32.vlgmr.msra.gmra.mxu1 %vm487_vm1, %v2448_v14 }
 0xe83   : > { %5641 = vmatprep.mubr.msk.f32.mxu1 %vm6108_vm0, %v6107_v1  ;;  %v2442_v15 = vmul.f32 %v2440_v5, %v2435_v18 }
 0xe84   : > { %v5958_v19 = vpop.eup %5957 }
 0xe85   : > { %v2449_v21 = vadd.f32 %v2447_v9, %v2442_v15  ;;  %v2436_v22 = vmul.f32 %v5958_v19, %v2412_v52 }
 0xe87   : > { %5642 = vmatmul.mubr.msk.f32.gmra.mxu1 %vm487_vm1, %v2449_v21  ;;  %v2443_v24 = vmul.f32 %v2440_v5, %v2436_v22 }
 0xe88   : > { %5644 = vmatprep.mubr.msk.f32.mxu1 %vm6108_vm0, %v6107_v1 }
 0xe89   : > { %v2450_v27 = vadd.f32 %v2447_v9, %v2443_v24 }
 0xe8b   : > { %5645 = vmatmul.mubr.msk.f32.gmra.mxu1 %vm487_vm1, %v2450_v27 }
 0xe8c   : > { %5676 = vmatprep.mubr.msk.f32.mxu1 %vm6108_vm0, %v6107_v1 }
 0xf42   : > { %v2537_v41 = vpop.f32.mrf.mxu1 }
 0xf43   : > { %v2538_v42 = vadd.f32 %v5073_v40, %v2537_v41 }
 0xf44   : > { %v5640_v54 = vpop.f32.mrf.mxu1 }
 0xf45   : > { %v2554_v43 = vmul.f32 0.70710677, %v2538_v42  ;;  %v2551_v58 = vmul.f32 0.5, %v2538_v42 }
 0xf47   : > { %5959 = verf.f32 %v2554_v43  ;;  %v2542_v46 = vpop.f32.mrf.mxu1 }
 0xf48   : > { %v2543_v47 = vadd.f32 %v5073_v40, %v2542_v46 }
 0xf49   : > { %v5643_v48 = vpop.f32.mrf.mxu1 }
 0xf4a   : > { %v2555_v50 = vmul.f32 0.70710677, %v2543_v47  ;;  %v2552_v56 = vmul.f32 0.5, %v2543_v47 }
 0xf4b   : > { %v2547_v49 = vpop.f32.mrf.mxu1 }
 0xf4c   : > { %5961 = verf.f32 %v2555_v50  ;;  %v2548_v55 = vadd.f32 %v5073_v40, %v2547_v49  ;;  %v2814_v49 = vrot.slane %v6839_v6, %v6361_v12 }
 0xf4d   : > { %v5646_v45 = vpop.f32.mrf.mxu1 }
 0xf4e   : > { %v2556_v52 = vmul.f32 0.70710677, %v2548_v55  ;;  %v2553_v3 = vmul.f32 0.5, %v2548_v55  ;;  %v2821_v45 = vrot.slane %v6839_v6, %v6392_v39 }
 0xf50   : > { %5963 = verf.f32 %v2556_v52 }
 0xf54   : > { %v5960_v57 = vpop.eup %5959 }
 0xf55   : > { %v2560_v59 = vadd.f32 1.0, %v5960_v57 }
 0xf57   : > { %v2563_v60 = vmul.f32 %v2560_v59, %v2551_v58 }
 0xf59   : > { %v5962_v8 = vpop.eup %5961  ;;  %5664 = vmatmul.mubr.msk.f32.vlgmr.msra.gmra.mxu0 %vm1536_vm3, %v2563_v60 }
 0xf5a   : > { %v2561_v61 = vadd.f32 1.0, %v5962_v8  ;;  %5666 = vmatprep.mubr.msk.f32.mxu0 %vm6108_vm0, %v6107_v1 }
 0xf5c   : > { %v2564_v63 = vmul.f32 %v2561_v61, %v2552_v56 }
 0xf5d   : > { %v5964_v2 = vpop.eup %5963 }
 0xf5e   : > { %v2562_v13 = vadd.f32 1.0, %v5964_v2  ;;  %5667 = vmatmul.mubr.msk.f32.gmra.mxu0 %vm1536_vm3, %v2564_v63 }
 0xf5f   : > { %5669 = vmatprep.mubr.msk.f32.mxu0 %vm6108_vm0, %v6107_v1 }
 0xf60   : > { %v2565_v0 = vmul.f32 %v2562_v13, %v2553_v3 }
 0xf62   : > { %5670 = vmatmul.mubr.msk.f32.gmra.mxu0 %vm1536_vm3, %v2565_v0 }
0x1019   : > { %v2654_v62 = vpop.f32.mrf.mxu0 }
0x101a   : > { %v2655_v5 = vadd.f32 %v2654_v62, %v2578_v4 }
0x101b   : > { %v5665_v9 = vpop.f32.mrf.mxu0 }
0x101c   : > { %v2668_v11 = vadd.f32 %v2655_v5, %v6752_v20 }
0x101e   : > { %v2659_v14 = vpop.f32.mrf.mxu0  ;;  %v2675_v18 = vmul.f32 %v2674_v7, %v2668_v11  ;;  %v2722_v40 = vrot.slane %v2668_v11, 1 }
0x101f   : > { %v2660_v15 = vadd.f32 %v2659_v14, %v2578_v4 }
0x1020   : > { %v5668_v31 = vpop.f32.mrf.mxu0  ;;  %v2682_v19 = vadd.f32 %v2681_v10, %v2675_v18 }
0x1021   : > { %v2669_v21 = vadd.f32 %v2660_v15, %v6757_v29 }
0x1022   : > { %v2664_v22 = vpop.f32.mrf.mxu0  ;;  %v2686_v24 = vsel %vm2685_vm4, %v2682_v19, 0.0 }
0x1023   : > { %v2665_v27 = vadd.f32 %v2664_v22, %v2578_v4  ;;  %2687 = vadd.xlane.f32.xlu0 %v2686_v24  ;;  %v2676_v23 = vmul.f32 %v2674_v7, %v2669_v21  ;;  %v2723_v32 = vrot.slane %v2669_v21, 1 }
0x1024   : > { %v5671_v28 = vpop.f32.mrf.mxu0 }
0x1025   : > { %v2670_v20 = vadd.f32 %v2665_v27, %v6762_v37  ;;  %v2683_v30 = vadd.f32 %v2681_v10, %v2676_v23  ;;  %v2724_v37 = vsel %vm2721_vm5, %v2722_v40, %v2723_v32 }
0x1027   : > { %v2725_v33 = vrot.slane %v2670_v20, 1  ;;  %v2689_v35 = vsel %vm487_vm1, %v2683_v30, 0.0  ;;  %v2677_v44 = vmul.f32 %v2674_v7, %v2670_v20 }
0x1028   : > { %2690 = vadd.xlane.f32.xlu1 %v2689_v35 }
0x1029   : > { %v2726_v29 = vsel %vm2721_vm5, %v2723_v32, %v2725_v33  ;;  %v2684_v36 = vadd.f32 %v2681_v10, %v2677_v44 }
0x102a   : > { %5673 = vmatpush3.xpose.msk.msra.mxu1 %vm487_vm1, %v2726_v29 }
0x102b   : > { %v2693_v41 = vsel %vm2692_vm6, %v2684_v36, 0.0  ;;  %5674 = vmatprep.subr.mxu1 %v6107_v1 }
0x102c   : > { %2694 = vadd.xlane.f32.xlu0 %v2693_v41 }
0x102e   : > { %5675 = vmatpush3.xpose.msk.msra.mxu1 %vm487_vm1, %v2724_v37 }
0x10ac   : > { %v2688_v42 = vpop.xlane.xlu0 %2687 }
0x10ad   : > { %v2699_v54 = vmul.f32 0.70710677, %v2688_v42  ;;  %v2696_v55 = vmul.f32 0.5, %v2688_v42 }
0x10af   : > { %5965 = verf.f32 %v2699_v54 }
0x10b1   : > { %v2691_v43 = vpop.xlane.xlu1 %2690 }
0x10b2   : > { %v2700_v46 = vmul.f32 0.70710677, %v2691_v43  ;;  %v2697_v59 = vmul.f32 0.5, %v2691_v43 }
0x10b4   : > { %5967 = verf.f32 %v2700_v46 }
0x10b5   : > { %v2695_v47 = vpop.xlane.xlu0 %2694 }
0x10b6   : > { %v2701_v48 = vmul.f32 0.70710677, %v2695_v47  ;;  %v2698_v3 = vmul.f32 0.5, %v2695_v47 }
0x10b8   : > { %5969 = verf.f32 %v2701_v48 }
0x10bc   : > { %v5966_v50 = vpop.eup %5965 }
0x10bd   : > { %v2705_v1 = vadd.f32 1.0, %v5966_v50  ;;  %v2717_v50 = vrot.slane %v6839_v6, 1 }
0x10bf   : > { %v2708_v52 = vmul.f32 %v2705_v1, %v2696_v55  ;;  %5677 = vmatmul.mubr.msk.f32.vlgmr.msra.gmra.mxu1 %vm487_vm1, %v2717_v50  ;;  %v5092_v55 = vld [vmem:[%s7289_s8 + $0x60] sm:$0xff]  ;;  %v5095_v1 = vld [vmem:[%s7289_s8 + $0x78] sm:$0xff] }
0x10c1   : > { %v5968_v57 = vpop.eup %5967  ;;  %v2815_v58 = vmul.f32 %v2814_v49, %v2708_v52 }
0x10c2   : > { %v2706_v60 = vadd.f32 1.0, %v5968_v57 }
0x10c3   : > { %v2822_v8 = vadd.f32 %v2821_v45, %v2815_v58 }
0x10c4   : > { %v2709_v56 = vmul.f32 %v2706_v60, %v2697_v59 }
0x10c5   : > { %v5970_v61 = vpop.eup %5969  ;;  %v2828_v63 = vmul.f32 0.70710677, %v2822_v8  ;;  %v2825_v10 = vmul.f32 0.5, %v2822_v8 }
0x10c6   : > { %v2816_v2 = vmul.f32 %v2814_v49, %v2709_v56  ;;  %v2707_v13 = vadd.f32 1.0, %v5970_v61  ;;  %v6892_v61 = vld [vmem:[%s7293_s12 + $0x10] sm:$0xff] }
0x10c7   : > { %5971 = verf.f32 %v2828_v63 }
0x10c8   : > { %v2823_v0 = vadd.f32 %v2821_v45, %v2816_v2  ;;  %v2710_v4 = vmul.f32 %v2707_v13, %v2698_v3  ;;  %v2893_v2 = vrot.slane %v6892_v61, %v6311_v51 }
0x10ca   : > { %v2829_v62 = vmul.f32 0.70710677, %v2823_v0  ;;  %v2817_v5 = vmul.f32 %v2814_v49, %v2710_v4  ;;  %v2826_v19 = vmul.f32 0.5, %v2823_v0  ;;  %v5093_v49 = vld [vmem:[%s7289_s8 + $0x68] sm:$0xff]  ;;  %v2900_v0 = vrot.slane %v6892_v61, %v6319_v53 }
0x10cb   : > { %5679 = vmatprep.subr.mxu1 %v5093_v49 }
0x10cc   : > { %5973 = verf.f32 %v2829_v62  ;;  %v2824_v7 = vadd.f32 %v2821_v45, %v2817_v5  ;;  %5680 = vmatpush3.msra.mxu1 %v5093_v49 }
0x10cd   : > { %5681 = vmatprep.subr.mxu1 %v5092_v55 }
0x10ce   : > { %v2830_v9 = vmul.f32 0.70710677, %v2824_v7  ;;  %v2827_v23 = vmul.f32 0.5, %v2824_v7  ;;  %5682 = vmatpush3.msra.mxu1 %v5092_v55 }
0x10cf   : > { %5686 = vmatprep.subr.mxu1 %v5095_v1 }
0x10d0   : > { %5975 = verf.f32 %v2830_v9 }
0x10d4   : > { %v5972_v11 = vpop.eup %5971 }
0x10d5   : > { %v2834_v14 = vadd.f32 1.0, %v5972_v11 }
0x10d7   : > { %v6860_v18 = vmul.f32 %v2834_v14, %v2825_v10 }
0x10d9   : > { %v5974_v15 = vpop.eup %5973  ;;  %v2851_v31 = vsel %vm2685_vm4, %v6860_v18, 0.0 }
0x10da   : > { %2852 = vadd.xlane.f32.xlu1 %v2851_v31  ;;  %v2835_v21 = vadd.f32 1.0, %v5974_v15 }
0x10dc   : > { %v6864_v22 = vmul.f32 %v2835_v21, %v2826_v19 }
0x10dd   : > { %v5976_v24 = vpop.eup %5975 }
0x10de   : > { %v2854_v27 = vsel %vm487_vm1, %v6864_v22, 0.0  ;;  %v2836_v28 = vadd.f32 1.0, %v5976_v24 }
0x10df   : > { %2855 = vadd.xlane.f32.xlu0 %v2854_v27 }
0x10e0   : > { %v6868_v20 = vmul.f32 %v2836_v28, %v2827_v23  ;;  %v5094_v23 = vld [vmem:[%s7289_s8 + $0x70] sm:$0xff]  ;;  %v5097_v28 = vld [vmem:[%s7289_s8 + $0x88] sm:$0xff] }
0x10e2   : > { %v2857_v30 = vsel %vm2692_vm6, %v6868_v20, 0.0 }
0x10e3   : > { %2858 = vadd.xlane.f32.xlu1 %v2857_v30  ;;  %v5096_v30 = vld [vmem:[%s7289_s8 + $0x80] sm:$0xff] }
0x1163   : > { %v2853_v32 = vpop.xlane.xlu1 %2852 }
0x1164   : > { %v2860_v33 = vmul.f32 0.0625, %v2853_v32 }
0x1166   : > { %v2863_v35 = vsub.f32 %v6860_v18, %v2860_v33 }
0x1168   : > { %v2856_v44 = vpop.xlane.xlu0 %2855  ;;  %v2866_v29 = vmul.f32 %v2863_v35, %v2863_v35 }
0x1169   : > { %v2861_v36 = vmul.f32 0.0625, %v2856_v44  ;;  %v2907_v44 = vrot.slane %v6892_v61, %v6385_v34 }
0x116a   : > { %v2869_v40 = vsel %vm2685_vm4, %v2866_v29, 0.0  ;;  %v2998_v29 = vrot.slane %v6892_v61, %v6361_v12 }
0x116b   : > { %v2864_v41 = vsub.f32 %v6864_v22, %v2861_v36  ;;  %2870 = vadd.xlane.f32.xlu0 %v2869_v40 }
0x116c   : > { %v2859_v37 = vpop.xlane.xlu1 %2858 }
0x116d   : > { %v2862_v42 = vmul.f32 0.0625, %v2859_v37  ;;  %v2867_v54 = vmul.f32 %v2864_v41, %v2864_v41 }
0x116f   : > { %v2865_v43 = vsub.f32 %v6868_v20, %v2862_v42  ;;  %v2872_v46 = vsel %vm487_vm1, %v2867_v54, 0.0  ;;  %v3077_v42 = vrot.slane %v6892_v61, %v6392_v39 }
0x1170   : > { %2873 = vadd.xlane.f32.xlu1 %v2872_v46 }
0x1171   : > { %v2868_v47 = vmul.f32 %v2865_v43, %v2865_v43 }
0x1173   : > { %v2875_v48 = vsel %vm2692_vm6, %v2868_v47, 0.0 }
0x1174   : > { %2876 = vadd.xlane.f32.xlu0 %v2875_v48 }
0x117f   : > { %v6915_v32 = vpop.f32.mrf.mxu1 }
0x1181   : > { %v5678_v33 = vpop.f32.mrf.mxu1 }
0x11f4   : > { %v2871_v6 = vpop.xlane.xlu0 %2870 }
0x11f5   : > { %v2878_v45 = vmul.f32 0.0625, %v2871_v6 }
0x11f7   : > { %v2881_v52 = vadd.f32 1e-05, %v2878_v45 }
0x11f9   : > { %5977 = vrsqrt.f32 %v2881_v52  ;;  %v2874_v57 = vpop.xlane.xlu1 %2873 }
0x11fa   : > { %v2879_v58 = vmul.f32 0.0625, %v2874_v57 }
0x11fc   : > { %v2882_v59 = vadd.f32 1e-05, %v2879_v58 }
0x11fd   : > { %v2877_v60 = vpop.xlane.xlu0 %2876 }
0x11fe   : > { %5979 = vrsqrt.f32 %v2882_v59  ;;  %v2880_v8 = vmul.f32 0.0625, %v2877_v60 }
0x1200   : > { %v2883_v56 = vadd.f32 1e-05, %v2880_v8 }
0x1202   : > { %5981 = vrsqrt.f32 %v2883_v56  ;;  %v6946_v56 = vld [vmem:[%s7309_s4] sm:$0xff] }
0x1206   : > { %v5978_v63 = vpop.eup %5977 }
0x1207   : > { %v2887_v3 = vmul.f32 %v5978_v63, %v2863_v35  ;;  %v6951_v63 = vld [vmem:[%s7309_s4 + $0x8] sm:$0xff] }
0x1209   : > { %v2894_v13 = vmul.f32 %v2893_v2, %v2887_v3 }
0x120b   : > { %v5980_v4 = vpop.eup %5979  ;;  %v2901_v7 = vadd.f32 %v2900_v0, %v2894_v13 }
0x120c   : > { %v2888_v62 = vmul.f32 %v5980_v4, %v2864_v41 }
0x120d   : > { %v2911_v14 = vrot.slane %v2901_v7, 1 }
0x120e   : > { %v2895_v5 = vmul.f32 %v2893_v2, %v2888_v62 }
0x120f   : > { %v5982_v9 = vpop.eup %5981 }
0x1210   : > { %v2902_v11 = vadd.f32 %v2900_v0, %v2895_v5  ;;  %v2889_v10 = vmul.f32 %v5982_v9, %v2865_v43 }
0x1212   : > { %v2912_v15 = vrot.slane %v2902_v11, 1  ;;  %v2896_v31 = vmul.f32 %v2893_v2, %v2889_v10 }
0x1214   : > { %v2913_v19 = vsel %vm2721_vm5, %v2911_v14, %v2912_v15  ;;  %v2903_v21 = vadd.f32 %v2900_v0, %v2896_v31 }
0x1215   : > { %5683 = vmatprep.mubr.msk.f32.mxu1 %vm487_vm1, %v2913_v19 }
0x1216   : > { %v2914_v24 = vrot.slane %v2903_v21, 1 }
0x1218   : > { %v2915_v27 = vsel %vm2721_vm5, %v2912_v15, %v2914_v24 }
0x1219   : > { %5684 = vmatmul.mubr.msk.f32.vlgmr.msra.gmra.mxu1 %vm487_vm1, %v2915_v27 }
0x121a   : > { %5687 = vmatpush3.msra.mxu1 %v5095_v1  ;;  %5690 = vmatprep.mubr.msk.f32.mxu1 %vm487_vm1, %v2913_v19 }
0x121b   : > { %5688 = vmatprep.subr.mxu1 %v5094_v23 }
0x121c   : > { %5689 = vmatpush3.msra.mxu1 %v5094_v23 }
0x121d   : > { %5691 = vmatmul.mubr.msk.f32.vlgmr.msra.gmra.mxu1 %vm487_vm1, %v2915_v27  ;;  %5693 = vmatprep.subr.mxu1 %v5097_v28 }
0x121e   : > { %5694 = vmatpush3.msra.mxu1 %v5097_v28  ;;  %5697 = vmatprep.mubr.msk.f32.mxu1 %vm487_vm1, %v2913_v19 }
0x121f   : > { %5695 = vmatprep.subr.mxu1 %v5096_v30 }
0x1220   : > { %5696 = vmatpush3.msra.mxu1 %v5096_v30 }
0x1221   : > { %5698 = vmatmul.mubr.msk.f32.vlgmr.msra.gmra.mxu1 %vm487_vm1, %v2915_v27 }
0x12d9   : > { %v5685_v35 = vpop.f32.mrf.mxu1 }
0x12da   : > { %v2992_v57 = vadd.f32 %v5685_v35, %v2907_v44 }
0x12db   : > { %v2986_v36 = vpop.f32.mrf.mxu1 }
0x12dc   : > { %v2987_v40 = vadd.f32 %v2986_v36, %v2907_v44 }
0x12dd   : > { %v5692_v41 = vpop.f32.mrf.mxu1 }
0x12de   : > { %v3071_v37 = vadd.f32 %v5692_v41, %v2998_v29  ;;  %5704 = vmatprep.mubr.msk.f32.mxu1 %vm487_vm1, %v2987_v40  ;;  %5711 = vmatprep.mubr.msk.f32.mxu0 %vm487_vm1, %v2987_v40 }
0x12df   : > { %v3065_v54 = vpop.f32.mrf.mxu1 }
0x12e0   : > { %v3154_v43 = vmul.f32 %v3071_v37, %v6375_v25  ;;  %v3267_v46 = vmul.f32 %v3071_v37, %v6378_v26  ;;  %v3066_v47 = vadd.f32 %v3065_v54, %v2998_v29 }
0x12e1   : > { %v5699_v48 = vpop.f32.mrf.mxu1 }
0x12e2   : > { %v3153_v50 = vmul.f32 %v3066_v47, %v6375_v25  ;;  %v3266_v49 = vmul.f32 %v3066_v47, %v6378_v26  ;;  %v3150_v55 = vadd.f32 %v5699_v48, %v3077_v42  ;;  %5700 = vmatprep.subr.msk.mxu1 %vm487_vm1, %v3154_v43  ;;  %5707 = vmatprep.subr.msk.mxu0 %vm487_vm1, %v3267_v46 }
0x12e3   : > { %v3144_v1 = vpop.f32.mrf.mxu1  ;;  %5701 = vmatpush3.xpose.msk.msra.mxu1 %vm487_vm1, %v3154_v43  ;;  %5708 = vmatpush3.xpose.msk.msra.mxu0 %vm487_vm1, %v3267_v46 }
0x12e4   : > { %5702 = vmatprep.subr.msk.mxu1 %vm487_vm1, %v3153_v50  ;;  %5709 = vmatprep.subr.msk.mxu0 %vm487_vm1, %v3266_v49  ;;  %v3265_v6 = vmul.f32 %v3150_v55, %v6375_v25  ;;  %v3372_v45 = vmul.f32 %v3150_v55, %v6378_v26  ;;  %v3145_v52 = vadd.f32 %v3144_v1, %v3077_v42 }
0x12e6   : > { %v3264_v58 = vmul.f32 %v3145_v52, %v6375_v25  ;;  %v3371_v59 = vmul.f32 %v3145_v52, %v6378_v26 }
0x12e7   : > { %5703 = vmatpush3.xpose.msk.msra.mxu1 %vm487_vm1, %v3153_v50  ;;  %5710 = vmatpush3.xpose.msk.msra.mxu0 %vm487_vm1, %v3266_v49 }
0x12e8   : > { %5714 = vmatprep.subr.mxu1 %v3372_v45  ;;  %5721 = vmatprep.subr.mxu0 %v3265_v6 }
0x12ea   : > { %5705 = vmatmul.mubr.msk.f32.vlgmr.msra.gmra.mxu1 %vm487_vm1, %v2992_v57  ;;  %5712 = vmatmul.mubr.msk.f32.vlgmr.msra.gmra.mxu0 %vm487_vm1, %v2992_v57 }
0x12eb   : > { %5715 = vmatpush3.msra.mxu1 %v3372_v45  ;;  %5722 = vmatpush3.msra.mxu0 %v3265_v6 }
0x12ec   : > { %5716 = vmatprep.subr.mxu1 %v3371_v59  ;;  %5723 = vmatprep.subr.mxu0 %v3264_v58 }
0x12ed   : > { %5717 = vmatpush3.msra.mxu1 %v3371_v59  ;;  %5724 = vmatpush3.msra.mxu0 %v3264_v58 }
0x13aa   : > { %v5706_v60 = vpop.f32.mrf.mxu1  ;;  %v5713_v8 = vpop.f32.mrf.mxu0 }
0x13ab   : > { %v3239_v4 = vadd.f32 %v5706_v60, %v6951_v63  ;;  %v3346_v62 = vadd.f32 %v5713_v8, %v6951_v63 }
0x13ac   : > { %v3233_v2 = vpop.f32.mrf.mxu1  ;;  %v3340_v3 = vpop.f32.mrf.mxu0 }
0x13ad   : > { %v3234_v13 = vadd.f32 %v3233_v2, %v6946_v56  ;;  %v3341_v0 = vadd.f32 %v3340_v3, %v6946_v56  ;;  %v3245_v9 = vsel %vm487_vm1, %v3239_v4, -inf  ;;  %v3352_v11 = vsel %vm487_vm1, %v3346_v62, -inf }
0x13af   : > { %v3242_v5 = vsel %vm487_vm1, %v3234_v13, -inf  ;;  %v3349_v7 = vsel %vm487_vm1, %v3341_v0, -inf }
0x13b0   : > { %3243 = vmax.xlane.f32.xlu1 %v3242_v5  ;;  %3350 = vmax.xlane.f32.xlu0 %v3349_v7 }
0x13b4   : > { %3246 = vmax.xlane.f32.xlu1 %v3245_v9  ;;  %3353 = vmax.xlane.f32.xlu0 %v3352_v11 }
0x1439   : > { %v3244_v10 = vpop.xlane.xlu1 %3243  ;;  %v3351_v14 = vpop.xlane.xlu0 %3350 }
0x143a   : > { %v3248_v15 = vsub.f32 %v3234_v13, %v3244_v10  ;;  %v3355_v31 = vsub.f32 %v3341_v0, %v3351_v14 }
0x143c   : > { %v3250_v19 = vmul.f32 1.442695, %v3248_v15  ;;  %v3357_v21 = vmul.f32 1.442695, %v3355_v31 }
0x143d   : > { %v3247_v24 = vpop.xlane.xlu1 %3246  ;;  %v3354_v27 = vpop.xlane.xlu0 %3353 }
0x143e   : > { %5983 = vpow2.f32 %v3250_v19  ;;  %v3249_v23 = vsub.f32 %v3239_v4, %v3247_v24  ;;  %v3356_v28 = vsub.f32 %v3346_v62, %v3354_v27 }
0x143f   : > { %5985 = vpow2.f32 %v3357_v21 }
0x1440   : > { %v3252_v30 = vmul.f32 1.442695, %v3249_v23  ;;  %v3359_v33 = vmul.f32 1.442695, %v3356_v28 }
0x1442   : > { %5987 = vpow2.f32 %v3252_v30 }
0x1443   : > { %5989 = vpow2.f32 %v3359_v33 }
0x144b   : > { %v5984_v35 = vpop.eup %5983 }
0x144c   : > { %v5986_v44 = vpop.eup %5985  ;;  %v3254_v29 = vsel %vm487_vm1, %v5984_v35, 0.0 }
0x144d   : > { %3255 = vadd.xlane.f32.xlu1 %v3254_v29  ;;  %v3361_v36 = vsel %vm487_vm1, %v5986_v44, 0.0 }
0x144e   : > { %3362 = vadd.xlane.f32.xlu0 %v3361_v36 }
0x144f   : > { %v5988_v40 = vpop.eup %5987 }
0x1450   : > { %v5990_v41 = vpop.eup %5989  ;;  %v3257_v37 = vsel %vm487_vm1, %v5988_v40, 0.0 }
0x1451   : > { %3258 = vadd.xlane.f32.xlu1 %v3257_v37  ;;  %v3364_v42 = vsel %vm487_vm1, %v5990_v41, 0.0 }
0x1452   : > { %3365 = vadd.xlane.f32.xlu0 %v3364_v42 }
0x14d6   : > { %v3256_v54 = vpop.xlane.xlu1 %3255 }
0x14d7   : > { %5991 = vrcp.f32 %v3256_v54  ;;  %v3363_v43 = vpop.xlane.xlu0 %3362 }
0x14d8   : > { %5993 = vrcp.f32 %v3363_v43 }
0x14da   : > { %v3259_v46 = vpop.xlane.xlu1 %3258 }
0x14db   : > { %5995 = vrcp.f32 %v3259_v46  ;;  %v3366_v47 = vpop.xlane.xlu0 %3365 }
0x14dc   : > { %5997 = vrcp.f32 %v3366_v47  ;;  %v3589_v47 = vrot.slane %v6892_v61, %v6364_v16 }
0x14e4   : > { %v5992_v48 = vpop.eup %5991 }
0x14e5   : > { %v5994_v50 = vpop.eup %5993  ;;  %v3262_v49 = vmul.f32 %v5992_v48, %v5984_v35  ;;  %v5117_v35 = vld [vmem:[%s7290_s9 + $0x28] sm:$0xff] }
0x14e6   : > { %v3369_v55 = vmul.f32 %v5994_v50, %v5986_v44  ;;  %5728 = vmatprep.subr.mxu1 %v5117_v35  ;;  %v5116_v44 = vld [vmem:[%s7290_s9 + $0x20] sm:$0xff] }
0x14e7   : > { %5725 = vmatprep.mubr.msk.f32.mxu0 %vm487_vm1, %v3262_v49 }
0x14e8   : > { %v5996_v1 = vpop.eup %5995  ;;  %5718 = vmatprep.mubr.msk.f32.mxu1 %vm487_vm1, %v3369_v55  ;;  %v3596_v55 = vrot.slane %v6892_v61, %v6367_v17 }
0x14e9   : > { %v5998_v6 = vpop.eup %5997  ;;  %v3263_v45 = vmul.f32 %v5996_v1, %v5988_v40 }
0x14ea   : > { %v3370_v52 = vmul.f32 %v5998_v6, %v5990_v41 }
0x14eb   : > { %5726 = vmatmul.mubr.msk.f32.vlgmr.msra.gmra.mxu0 %vm487_vm1, %v3263_v45 }
0x14ec   : > { %5719 = vmatmul.mubr.msk.f32.vlgmr.msra.gmra.mxu1 %vm487_vm1, %v3370_v52 }
0x14ed   : > { %5729 = vmatpush3.msra.mxu1 %v5117_v35 }
0x14ee   : > { %5730 = vmatprep.subr.mxu1 %v5116_v44 }
0x14ef   : > { %5731 = vmatpush3.msra.mxu1 %v5116_v44 }
0x15ab   : > { %v5727_v57 = vpop.f32.mrf.mxu0 }
0x15ac   : > { %v5720_v58 = vpop.f32.mrf.mxu1 }
0x15ad   : > { %v3532_v59 = vadd.f32 %v5727_v57, %v5720_v58  ;;  %v3526_v60 = vpop.f32.mrf.mxu0 }
0x15ae   : > { %v3445_v8 = vpop.f32.mrf.mxu1 }
0x15af   : > { %v3527_v2 = vadd.f32 %v3526_v60, %v3445_v8  ;;  %v3539_v3 = vrot.slane %v3532_v59, 7 }
0x15b1   : > { %v3538_v13 = vrot.slane %v3527_v2, 7  ;;  %v6977_v5 = vadd.f32 %v3539_v3, %v6868_v20 }
0x15b3   : > { %v3540_v0 = vsel %vm3537_vm7, %v3538_v13, %v3539_v3  ;;  %v6971_v4 = vadd.f32 %v3538_v13, %v6860_v18  ;;  %v3553_v11 = vsel %vm2692_vm6, %v6977_v5, 0.0 }
0x15b4   : > { %v6974_v62 = vadd.f32 %v3540_v0, %v6864_v22 }
0x15b5   : > { %v3547_v7 = vsel %vm2685_vm4, %v6971_v4, 0.0 }
0x15b6   : > { %3548 = vadd.xlane.f32.xlu1 %v3547_v7  ;;  %v3550_v9 = vsel %vm487_vm1, %v6974_v62, 0.0 }
0x15b7   : > { %3551 = vadd.xlane.f32.xlu0 %v3550_v9  ;;  %v5129_v9 = vld [vmem:[%s7291_s10 + $0xb8] sm:$0xff] }
0x15b8   : > { %5735 = vmatprep.subr.mxu0 %v5129_v9 }
0x15b9   : > { %5736 = vmatpush3.msra.mxu0 %v5129_v9 }
0x15ba   : > { %3554 = vadd.xlane.f32.xlu1 %v3553_v11  ;;  %v5128_v11 = vld [vmem:[%s7291_s10 + $0xb0] sm:$0xff] }
0x15bb   : > { %5737 = vmatprep.subr.mxu0 %v5128_v11 }
0x15bc   : > { %5738 = vmatpush3.msra.mxu0 %v5128_v11  ;;  %v5134_v11 = vld [vmem:[%s7289_s8 + $0x98] sm:$0xff] }
0x15bd   : > { %5754 = vmatprep.subr.mxu1 %v5134_v11 }
0x163f   : > { %v3549_v18 = vpop.xlane.xlu1 %3548 }
0x1640   : > { %v3556_v10 = vmul.f32 0.0625, %v3549_v18  ;;  %v3552_v14 = vpop.xlane.xlu0 %3551  ;;  %v5127_v18 = vld [vmem:[%s7291_s10 + $0xa8] sm:$0xff] }
0x1641   : > { %v3557_v22 = vmul.f32 0.0625, %v3552_v14  ;;  %5739 = vmatprep.subr.mxu0 %v5127_v18  ;;  %v5125_v14 = vld [vmem:[%s7291_s10 + $0x98] sm:$0xff] }
0x1642   : > { %v3559_v15 = vsub.f32 %v6971_v4, %v3556_v10  ;;  %5740 = vmatpush3.msra.mxu0 %v5127_v18  ;;  %v5126_v10 = vld [vmem:[%s7291_s10 + $0xa0] sm:$0xff]  ;;  %v5133_v18 = vld [vmem:[%s7289_s8 + $0x90] sm:$0xff] }
0x1643   : > { %v3560_v20 = vsub.f32 %v6974_v62, %v3557_v22  ;;  %v3555_v31 = vpop.xlane.xlu1 %3554  ;;  %5741 = vmatprep.subr.mxu0 %v5126_v10  ;;  %v5124_v22 = vld [vmem:[%s7291_s10 + $0x90] sm:$0xff] }
0x1644   : > { %v3558_v19 = vmul.f32 0.0625, %v3555_v31  ;;  %v3562_v21 = vmul.f32 %v3559_v15, %v3559_v15  ;;  %5742 = vmatpush3.msra.mxu0 %v5126_v10  ;;  %v5119_v31 = vld [vmem:[%s7292_s11 + $0x2] ss:$0 sm:$0xff]  ;;  %v5136_v10 = vld [vmem:[%s7289_s8 + $0xa8] sm:$0xff] }
0x1645   : > { %v3563_v24 = vmul.f32 %v3560_v20, %v3560_v20  ;;  %5743 = vmatprep.subr.mxu0 %v5125_v14 }
0x1646   : > { %v3561_v27 = vsub.f32 %v6977_v5, %v3558_v19  ;;  %v3565_v23 = vsel %vm2685_vm4, %v3562_v21, 0.0  ;;  %5744 = vmatpush3.msra.mxu0 %v5125_v14 }
0x1647   : > { %3566 = vadd.xlane.f32.xlu0 %v3565_v23  ;;  %v3568_v28 = vsel %vm487_vm1, %v3563_v24, 0.0  ;;  %5745 = vmatprep.subr.mxu0 %v5124_v22 }
0x1648   : > { %3569 = vadd.xlane.f32.xlu1 %v3568_v28  ;;  %v3564_v30 = vmul.f32 %v3561_v27, %v3561_v27  ;;  %5746 = vmatpush3.msra.mxu0 %v5124_v22 }
0x164a   : > { %v3571_v33 = vsel %vm2692_vm6, %v3564_v30, 0.0 }
0x164b   : > { %3572 = vadd.xlane.f32.xlu0 %v3571_v33 }
0x16d0   : > { %v3567_v29 = vpop.xlane.xlu0 %3566 }
0x16d1   : > { %v3574_v36 = vmul.f32 0.0625, %v3567_v29  ;;  %v3570_v40 = vpop.xlane.xlu1 %3569 }
0x16d2   : > { %v3575_v41 = vmul.f32 0.0625, %v3570_v40 }
0x16d3   : > { %v3577_v37 = vadd.f32 1e-05, %v3574_v36 }
0x16d4   : > { %v3578_v42 = vadd.f32 1e-05, %v3575_v41  ;;  %v3573_v54 = vpop.xlane.xlu0 %3572 }
0x16d5   : > { %5999 = vrsqrt.f32 %v3577_v37  ;;  %v3576_v43 = vmul.f32 0.0625, %v3573_v54  ;;  %v3720_v37 = vrot.slane %v6892_v61, %v6576_v38 }
0x16d6   : > { %6001 = vrsqrt.f32 %v3578_v42 }
0x16d7   : > { %v3579_v46 = vadd.f32 1e-05, %v3576_v43 }
0x16d9   : > { %6003 = vrsqrt.f32 %v3579_v46 }
0x16e2   : > { %v6000_v48 = vpop.eup %5999 }
0x16e3   : > { %v6002_v50 = vpop.eup %6001  ;;  %v3583_v49 = vmul.f32 %v6000_v48, %v3559_v15  ;;  %v5123_v15 = vld [vmem:[%s7291_s10 + $0x88] sm:$0xff] }
0x16e4   : > { %v3584_v1 = vmul.f32 %v6002_v50, %v3560_v20  ;;  %5747 = vmatprep.subr.mxu0 %v5123_v15  ;;  %v5122_v20 = vld [vmem:[%s7291_s10 + $0x80] sm:$0xff] }
0x16e5   : > { %v3590_v6 = vmul.f32 %v3589_v47, %v3583_v49  ;;  %5748 = vmatpush3.msra.mxu0 %v5123_v15 }
0x16e6   : > { %v6004_v45 = vpop.eup %6003  ;;  %v3591_v52 = vmul.f32 %v3589_v47, %v3584_v1  ;;  %5749 = vmatprep.subr.mxu0 %v5122_v20 }
0x16e7   : > { %v3597_v57 = vadd.f32 %v3596_v55, %v3590_v6  ;;  %v3585_v58 = vmul.f32 %v6004_v45, %v3561_v27  ;;  %5750 = vmatpush3.msra.mxu0 %v5122_v20 }
0x16e8   : > { %v3598_v59 = vadd.f32 %v3596_v55, %v3591_v52 }
0x16e9   : > { %v3614_v60 = vrot.slane %v3597_v57, 1  ;;  %v3592_v8 = vmul.f32 %v3589_v47, %v3585_v58 }
0x16ea   : > { %v3615_v2 = vrot.slane %v3598_v59, 1 }
0x16eb   : > { %v3599_v3 = vadd.f32 %v3596_v55, %v3592_v8 }
0x16ec   : > { %v3616_v13 = vsel %vm2721_vm5, %v3614_v60, %v3615_v2 }
0x16ed   : > { %5732 = vmatprep.mubr.msk.f32.mxu1 %vm487_vm1, %v3616_v13  ;;  %v3617_v0 = vrot.slane %v3599_v3, 1 }
0x16ef   : > { %v3618_v7 = vsel %vm2721_vm5, %v3615_v2, %v3617_v0 }
0x16f0   : > { %5733 = vmatmul.mubr.msk.f32.vlgmr.msra.gmra.mxu1 %vm487_vm1, %v3618_v7 }
0x16f1   : > { %5755 = vmatpush3.msra.mxu1 %v5134_v11 }
0x16f2   : > { %5756 = vmatprep.subr.mxu1 %v5133_v18 }
0x16f3   : > { %5757 = vmatpush3.msra.mxu1 %v5133_v18 }
0x16f4   : > { %5761 = vmatprep.subr.mxu1 %v5136_v10 }
0x17b0   : > { %v5734_v19 = vpop.f32.mrf.mxu1 }
0x17b1   : > { %v3695_v21 = vadd.f32 %v5734_v19, %v5119_v31 }
0x17b2   : > { %v3689_v24 = vpop.f32.mrf.mxu1 }
0x17b3   : > { %v3701_v27 = vmul.f32 0.70710677, %v3695_v21  ;;  %v3690_v23 = vadd.f32 %v5119_v31, %v3689_v24  ;;  %v3699_v36 = vmul.f32 0.5, %v3695_v21 }
0x17b5   : > { %6005 = verf.f32 %v3701_v27  ;;  %v3700_v28 = vmul.f32 0.70710677, %v3690_v23  ;;  %v3698_v44 = vmul.f32 0.5, %v3690_v23  ;;  %v7070_v23 = vld [vmem:[%s7293_s12 + $0x18] sm:$0xff] }
0x17b7   : > { %6007 = verf.f32 %v3700_v28  ;;  %v3864_v28 = vrot.slane %v7070_v23, %v6311_v51 }
0x17c2   : > { %v6006_v30 = vpop.eup %6005 }
0x17c3   : > { %v3705_v35 = vadd.f32 1.0, %v6006_v30 }
0x17c4   : > { %v6008_v33 = vpop.eup %6007 }
0x17c5   : > { %v3704_v29 = vadd.f32 1.0, %v6008_v33  ;;  %v3707_v41 = vmul.f32 %v3705_v35, %v3699_v36 }
0x17c7   : > { %v3706_v40 = vmul.f32 %v3704_v29, %v3698_v44  ;;  %v3871_v44 = vrot.slane %v7070_v23, %v6319_v53  ;;  %v5135_v53 = vld [vmem:[%s7289_s8 + $0xa0] sm:$0xff] }
0x17c9   : > { %5751 = vmatprep.mubr.msk.f32.mxu0 %vm1536_vm3, %v3706_v40 }
0x17ca   : > { %5752 = vmatmul.mubr.msk.f32.vlgmr.msra.gmra.mxu0 %vm1536_vm3, %v3707_v41 }
0x188a   : > { %v5753_v42 = vpop.f32.mrf.mxu0 }
0x188b   : > { %v3799_v54 = vadd.f32 %v5753_v42, %v3720_v37 }
0x188c   : > { %v3793_v43 = vpop.f32.mrf.mxu0 }
0x188d   : > { %v3794_v46 = vadd.f32 %v3793_v43, %v3720_v37  ;;  %v3805_v47 = vrot.slane %v3799_v54, 7 }
0x188f   : > { %v3804_v48 = vrot.slane %v3794_v46, 7  ;;  %v7044_v1 = vadd.f32 %v3805_v47, %v6977_v5 }
0x1891   : > { %v3806_v50 = vsel %vm3537_vm7, %v3804_v48, %v3805_v47  ;;  %v7038_v49 = vadd.f32 %v3804_v48, %v6971_v4  ;;  %v3828_v45 = vsel %vm2692_vm6, %v7044_v1, 0.0 }
0x1892   : > { %v7041_v55 = vadd.f32 %v3806_v50, %v6974_v62 }
0x1893   : > { %v3822_v61 = vsel %vm2685_vm4, %v7038_v49, 0.0 }
0x1894   : > { %3823 = vadd.xlane.f32.xlu1 %v3822_v61  ;;  %v3825_v6 = vsel %vm487_vm1, %v7041_v55, 0.0 }
0x1895   : > { %3826 = vadd.xlane.f32.xlu0 %v3825_v6 }
0x1898   : > { %3829 = vadd.xlane.f32.xlu1 %v3828_v45  ;;  %v5138_v45 = vld [vmem:[%s7289_s8 + $0xb8] sm:$0xff] }
0x191d   : > { %v3824_v4 = vpop.xlane.xlu1 %3823 }
0x191e   : > { %v3831_v52 = vmul.f32 0.0625, %v3824_v4  ;;  %v3827_v57 = vpop.xlane.xlu0 %3826  ;;  %v5137_v4 = vld [vmem:[%s7289_s8 + $0xb0] sm:$0xff] }
0x191f   : > { %v3832_v62 = vmul.f32 0.0625, %v3827_v57  ;;  %v3878_v57 = vrot.slane %v7070_v23, %v6385_v34 }
0x1920   : > { %v3834_v58 = vsub.f32 %v7038_v49, %v3831_v52 }
0x1921   : > { %v3835_v5 = vsub.f32 %v7041_v55, %v3832_v62  ;;  %v3830_v59 = vpop.xlane.xlu1 %3829  ;;  %v3969_v62 = vrot.slane %v7070_v23, %v6361_v12 }
0x1922   : > { %v3833_v60 = vmul.f32 0.0625, %v3830_v59  ;;  %v3837_v8 = vmul.f32 %v3834_v58, %v3834_v58 }
0x1923   : > { %v3838_v2 = vmul.f32 %v3835_v5, %v3835_v5 }
0x1924   : > { %v3836_v3 = vsub.f32 %v7044_v1, %v3833_v60  ;;  %v3840_v13 = vsel %vm2685_vm4, %v3837_v8, 0.0  ;;  %v4048_v8 = vrot.slane %v7070_v23, %v6392_v39 }
0x1925   : > { %3841 = vadd.xlane.f32.xlu0 %v3840_v13  ;;  %v3843_v0 = vsel %vm487_vm1, %v3838_v2, 0.0 }
0x1926   : > { %3844 = vadd.xlane.f32.xlu1 %v3843_v0  ;;  %v3839_v7 = vmul.f32 %v3836_v3, %v3836_v3 }
0x1928   : > { %v3846_v9 = vsel %vm2692_vm6, %v3839_v7, 0.0 }
0x1929   : > { %3847 = vadd.xlane.f32.xlu0 %v3846_v9 }
0x19ae   : > { %v3842_v14 = vpop.xlane.xlu0 %3841 }
0x19af   : > { %v3849_v22 = vmul.f32 0.0625, %v3842_v14  ;;  %v3845_v15 = vpop.xlane.xlu1 %3844 }
0x19b0   : > { %v3850_v20 = vmul.f32 0.0625, %v3845_v15 }
0x19b1   : > { %v3852_v31 = vadd.f32 1e-05, %v3849_v22 }
0x19b2   : > { %v3853_v19 = vadd.f32 1e-05, %v3850_v20  ;;  %v3848_v21 = vpop.xlane.xlu0 %3847 }
0x19b3   : > { %6009 = vrsqrt.f32 %v3852_v31  ;;  %v3851_v24 = vmul.f32 0.0625, %v3848_v21 }
0x19b4   : > { %6011 = vrsqrt.f32 %v3853_v19 }
0x19b5   : > { %v3854_v27 = vadd.f32 1e-05, %v3851_v24 }
0x19b7   : > { %6013 = vrsqrt.f32 %v3854_v27 }
0x19c0   : > { %v6010_v30 = vpop.eup %6009 }
0x19c1   : > { %v6012_v33 = vpop.eup %6011  ;;  %v3858_v35 = vmul.f32 %v6010_v30, %v3834_v58 }
0x19c2   : > { %v3859_v29 = vmul.f32 %v6012_v33, %v3835_v5 }
0x19c3   : > { %v3865_v36 = vmul.f32 %v3864_v28, %v3858_v35 }
0x19c4   : > { %v6014_v40 = vpop.eup %6013  ;;  %v3866_v41 = vmul.f32 %v3864_v28, %v3859_v29 }
0x19c5   : > { %v3872_v37 = vadd.f32 %v3871_v44, %v3865_v36  ;;  %v3860_v42 = vmul.f32 %v6014_v40, %v3836_v3 }
0x19c6   : > { %v3873_v54 = vadd.f32 %v3871_v44, %v3866_v41 }
0x19c7   : > { %v3882_v43 = vrot.slane %v3872_v37, 1  ;;  %v3867_v46 = vmul.f32 %v3864_v28, %v3860_v42 }
0x19c8   : > { %v3883_v47 = vrot.slane %v3873_v54, 1 }
0x19c9   : > { %v3874_v48 = vadd.f32 %v3871_v44, %v3867_v46 }
0x19ca   : > { %v3884_v50 = vsel %vm2721_vm5, %v3882_v43, %v3883_v47 }
0x19cb   : > { %5758 = vmatprep.mubr.msk.f32.mxu1 %vm487_vm1, %v3884_v50  ;;  %v3885_v61 = vrot.slane %v3874_v48, 1 }
0x19cd   : > { %v3886_v6 = vsel %vm2721_vm5, %v3883_v47, %v3885_v61 }
0x19ce   : > { %5759 = vmatmul.mubr.msk.f32.vlgmr.msra.gmra.mxu1 %vm487_vm1, %v3886_v6 }
0x19cf   : > { %5762 = vmatpush3.msra.mxu1 %v5136_v10  ;;  %5765 = vmatprep.mubr.msk.f32.mxu1 %vm487_vm1, %v3884_v50 }
0x19d0   : > { %5763 = vmatprep.subr.mxu1 %v5135_v53 }
0x19d1   : > { %5764 = vmatpush3.msra.mxu1 %v5135_v53 }
0x19d2   : > { %5766 = vmatmul.mubr.msk.f32.vlgmr.msra.gmra.mxu1 %vm487_vm1, %v3886_v6  ;;  %5768 = vmatprep.subr.mxu1 %v5138_v45 }
0x19d3   : > { %5769 = vmatpush3.msra.mxu1 %v5138_v45  ;;  %5772 = vmatprep.mubr.msk.f32.mxu1 %vm487_vm1, %v3884_v50 }
0x19d4   : > { %5770 = vmatprep.subr.mxu1 %v5137_v4 }
0x19d5   : > { %5771 = vmatpush3.msra.mxu1 %v5137_v4 }
0x19d6   : > { %5773 = vmatmul.mubr.msk.f32.vlgmr.msra.gmra.mxu1 %vm487_vm1, %v3886_v6 }
0x1a8e   : > { %v5760_v52 = vpop.f32.mrf.mxu1 }
0x1a8f   : > { %v3963_v14 = vadd.f32 %v5760_v52, %v3878_v57 }
0x1a90   : > { %v3957_v58 = vpop.f32.mrf.mxu1 }
0x1a91   : > { %v3958_v5 = vadd.f32 %v3957_v58, %v3878_v57 }
0x1a92   : > { %v5767_v59 = vpop.f32.mrf.mxu1 }
0x1a93   : > { %v4042_v60 = vadd.f32 %v5767_v59, %v3969_v62  ;;  %5779 = vmatprep.mubr.msk.f32.mxu1 %vm487_vm1, %v3958_v5  ;;  %5786 = vmatprep.mubr.msk.f32.mxu0 %vm487_vm1, %v3958_v5 }
0x1a94   : > { %v4036_v2 = vpop.f32.mrf.mxu1 }
0x1a95   : > { %v4125_v3 = vmul.f32 %v4042_v60, %v6375_v25  ;;  %v4238_v13 = vmul.f32 %v4042_v60, %v6378_v26  ;;  %v4037_v34 = vadd.f32 %v4036_v2, %v3969_v62 }
0x1a96   : > { %v5774_v0 = vpop.f32.mrf.mxu1 }
0x1a97   : > { %v4124_v12 = vmul.f32 %v4037_v34, %v6375_v25  ;;  %v4237_v7 = vmul.f32 %v4037_v34, %v6378_v26  ;;  %v4121_v9 = vadd.f32 %v5774_v0, %v4048_v8  ;;  %5775 = vmatprep.subr.msk.mxu1 %vm487_vm1, %v4125_v3  ;;  %5782 = vmatprep.subr.msk.mxu0 %vm487_vm1, %v4238_v13 }
0x1a98   : > { %v4115_v11 = vpop.f32.mrf.mxu1  ;;  %5776 = vmatpush3.xpose.msk.msra.mxu1 %vm487_vm1, %v4125_v3  ;;  %5783 = vmatpush3.xpose.msk.msra.mxu0 %vm487_vm1, %v4238_v13 }
0x1a99   : > { %5777 = vmatprep.subr.msk.mxu1 %vm487_vm1, %v4124_v12  ;;  %5784 = vmatprep.subr.msk.mxu0 %vm487_vm1, %v4237_v7  ;;  %v4236_v39 = vmul.f32 %v4121_v9, %v6375_v25  ;;  %v4343_v18 = vmul.f32 %v4121_v9, %v6378_v26  ;;  %v4116_v10 = vadd.f32 %v4115_v11, %v4048_v8 }
0x1a9b   : > { %v4235_v22 = vmul.f32 %v4116_v10, %v6375_v25  ;;  %v4342_v15 = vmul.f32 %v4116_v10, %v6378_v26 }
0x1a9c   : > { %5778 = vmatpush3.xpose.msk.msra.mxu1 %vm487_vm1, %v4124_v12  ;;  %5785 = vmatpush3.xpose.msk.msra.mxu0 %vm487_vm1, %v4237_v7 }
0x1a9d   : > { %5789 = vmatprep.subr.mxu1 %v4343_v18  ;;  %5796 = vmatprep.subr.mxu0 %v4236_v39 }
0x1a9f   : > { %5780 = vmatmul.mubr.msk.f32.vlgmr.msra.gmra.mxu1 %vm487_vm1, %v3963_v14  ;;  %5787 = vmatmul.mubr.msk.f32.vlgmr.msra.gmra.mxu0 %vm487_vm1, %v3963_v14 }
0x1aa0   : > { %5790 = vmatpush3.msra.mxu1 %v4343_v18  ;;  %5797 = vmatpush3.msra.mxu0 %v4236_v39 }
0x1aa1   : > { %5791 = vmatprep.subr.mxu1 %v4342_v15  ;;  %5798 = vmatprep.subr.mxu0 %v4235_v22 }
0x1aa2   : > { %5792 = vmatpush3.msra.mxu1 %v4342_v15  ;;  %5799 = vmatpush3.msra.mxu0 %v4235_v22 }
0x1b5f   : > { %v5781_v20 = vpop.f32.mrf.mxu1  ;;  %v5788_v31 = vpop.f32.mrf.mxu0 }
0x1b60   : > { %v4210_v26 = vadd.f32 %v5781_v20, %v6951_v63  ;;  %v4317_v27 = vadd.f32 %v5788_v31, %v6951_v63 }
0x1b61   : > { %v4204_v19 = vpop.f32.mrf.mxu1  ;;  %v4311_v21 = vpop.f32.mrf.mxu0 }
0x1b62   : > { %v4205_v24 = vadd.f32 %v4204_v19, %v6946_v56  ;;  %v4312_v25 = vadd.f32 %v4311_v21, %v6946_v56  ;;  %v4323_v33 = vsel %vm487_vm1, %v4317_v27, -inf  ;;  %v4216_v35 = vsel %vm487_vm1, %v4210_v26, -inf }
0x1b64   : > { %v4320_v28 = vsel %vm487_vm1, %v4312_v25, -inf  ;;  %v4213_v30 = vsel %vm487_vm1, %v4205_v24, -inf }
0x1b65   : > { %4321 = vmax.xlane.f32.xlu0 %v4320_v28  ;;  %4214 = vmax.xlane.f32.xlu1 %v4213_v30 }
0x1b69   : > { %4324 = vmax.xlane.f32.xlu0 %v4323_v33  ;;  %4217 = vmax.xlane.f32.xlu1 %v4216_v35 }
0x1bee   : > { %v4322_v44 = vpop.xlane.xlu0 %4321  ;;  %v4215_v29 = vpop.xlane.xlu1 %4214 }
0x1bef   : > { %v4326_v36 = vsub.f32 %v4312_v25, %v4322_v44  ;;  %v4219_v56 = vsub.f32 %v4205_v24, %v4215_v29 }
0x1bf1   : > { %v4328_v40 = vmul.f32 1.442695, %v4326_v36  ;;  %v4221_v41 = vmul.f32 1.442695, %v4219_v56 }
0x1bf2   : > { %v4325_v37 = vpop.xlane.xlu0 %4324  ;;  %v4218_v63 = vpop.xlane.xlu1 %4217 }
0x1bf3   : > { %6015 = vpow2.f32 %v4328_v40  ;;  %v4327_v42 = vsub.f32 %v4317_v27, %v4325_v37  ;;  %v4220_v54 = vsub.f32 %v4210_v26, %v4218_v63  ;;  %v5158_v63 = vld [vmem:[%s7290_s9 + $0x38] sm:$0xff] }
0x1bf4   : > { %6017 = vpow2.f32 %v4221_v41  ;;  %v7160_v41 = vld [vmem:[%s7288_s7] sm:$0xff]  ;;  %5803 = vmatprep.subr.mxu1 %v5158_v63 }
0x1bf5   : > { %v4330_v43 = vmul.f32 1.442695, %v4327_v42  ;;  %v4223_v46 = vmul.f32 1.442695, %v4220_v54  ;;  %v2711_v37 = vmul.f32 16.0, %v7160_v41  ;;  %v5157_v42 = vld [vmem:[%s7290_s9 + $0x30] sm:$0xff] }
0x1bf7   : > { %6019 = vpow2.f32 %v4330_v43 }
0x1bf8   : > { %6021 = vpow2.f32 %v4223_v46 }
0x1c00   : > { %v6016_v47 = vpop.eup %6015 }
0x1c01   : > { %v6018_v48 = vpop.eup %6017  ;;  %v4332_v50 = vsel %vm487_vm1, %v6016_v47, 0.0 }
0x1c02   : > { %4333 = vadd.xlane.f32.xlu0 %v4332_v50  ;;  %v4225_v61 = vsel %vm487_vm1, %v6018_v48, 0.0 }
0x1c03   : > { %4226 = vadd.xlane.f32.xlu1 %v4225_v61 }
0x1c04   : > { %v6020_v6 = vpop.eup %6019 }
0x1c05   : > { %v6022_v53 = vpop.eup %6021  ;;  %v4335_v45 = vsel %vm487_vm1, %v6020_v6, 0.0 }
0x1c06   : > { %4336 = vadd.xlane.f32.xlu0 %v4335_v45  ;;  %v4228_v4 = vsel %vm487_vm1, %v6022_v53, 0.0 }
0x1c07   : > { %4229 = vadd.xlane.f32.xlu1 %v4228_v4 }
0x1c8b   : > { %v4334_v52 = vpop.xlane.xlu0 %4333 }
0x1c8c   : > { %6023 = vrcp.f32 %v4334_v52  ;;  %v4227_v57 = vpop.xlane.xlu1 %4226 }
0x1c8d   : > { %6025 = vrcp.f32 %v4227_v57 }
0x1c8f   : > { %v4337_v62 = vpop.xlane.xlu0 %4336 }
0x1c90   : > { %6027 = vrcp.f32 %v4337_v62  ;;  %v4230_v58 = vpop.xlane.xlu1 %4229  ;;  %v4559_v62 = vrot.slane %v7070_v23, %v6364_v16 }
0x1c91   : > { %6029 = vrcp.f32 %v4230_v58 }
0x1c99   : > { %v6024_v5 = vpop.eup %6023 }
0x1c9a   : > { %v6026_v59 = vpop.eup %6025  ;;  %v4340_v60 = vmul.f32 %v6024_v5, %v6016_v47 }
0x1c9b   : > { %v4233_v8 = vmul.f32 %v6026_v59, %v6018_v48 }
0x1c9c   : > { %5793 = vmatprep.mubr.msk.f32.mxu1 %vm487_vm1, %v4340_v60  ;;  %v4566_v60 = vrot.slane %v7070_v23, %v6367_v17 }
0x1c9d   : > { %v6028_v2 = vpop.eup %6027  ;;  %5800 = vmatprep.mubr.msk.f32.mxu0 %vm487_vm1, %v4233_v8 }
0x1c9e   : > { %v6030_v3 = vpop.eup %6029  ;;  %v4341_v13 = vmul.f32 %v6028_v2, %v6020_v6 }
0x1c9f   : > { %v4234_v34 = vmul.f32 %v6030_v3, %v6022_v53 }
0x1ca0   : > { %5794 = vmatmul.mubr.msk.f32.vlgmr.msra.gmra.mxu1 %vm487_vm1, %v4341_v13 }
0x1ca1   : > { %5801 = vmatmul.mubr.msk.f32.vlgmr.msra.gmra.mxu0 %vm487_vm1, %v4234_v34  ;;  %5804 = vmatpush3.msra.mxu1 %v5158_v63 }
0x1ca2   : > { %5805 = vmatprep.subr.mxu1 %v5157_v42 }
0x1ca3   : > { %5806 = vmatpush3.msra.mxu1 %v5157_v42 }
0x1d60   : > { %v5795_v0 = vpop.f32.mrf.mxu1 }
0x1d61   : > { %v5802_v12 = vpop.f32.mrf.mxu0 }
0x1d62   : > { %v4503_v7 = vadd.f32 %v5802_v12, %v5795_v0  ;;  %v4416_v9 = vpop.f32.mrf.mxu1 }
0x1d63   : > { %v4497_v11 = vpop.f32.mrf.mxu0 }
0x1d64   : > { %v4498_v39 = vadd.f32 %v4497_v11, %v4416_v9  ;;  %v4509_v18 = vrot.slane %v4503_v7, 7 }
0x1d66   : > { %v4508_v10 = vrot.slane %v4498_v39, 7  ;;  %v7143_v20 = vadd.f32 %v4509_v18, %v7044_v1 }
0x1d68   : > { %v4510_v14 = vsel %vm3537_vm7, %v4508_v10, %v4509_v18  ;;  %v7137_v22 = vadd.f32 %v4508_v10, %v7038_v49  ;;  %v4523_v21 = vsel %vm2692_vm6, %v7143_v20, 0.0  ;;  %v6109_v49 = vmov 0  }
0x1d69   : > { %v7140_v15 = vadd.f32 %v4510_v14, %v7041_v55  ;;  %5879 = vset.pattern.permute.xlu1 %v6109_v49  ;;  %5880 = vset.pattern.permute.xlu0 %v6109_v49  ;;  %v5168_v49 = vld [vmem:[%s7291_s10 + $0xe8] sm:$0xff] }
0x1d6a   : > { %v4517_v31 = vsel %vm2685_vm4, %v7137_v22, 0.0 }
0x1d6b   : > { %4518 = vadd.xlane.f32.xlu1 %v4517_v31  ;;  %v4520_v19 = vsel %vm487_vm1, %v7140_v15, 0.0 }
0x1d6c   : > { %4521 = vadd.xlane.f32.xlu0 %v4520_v19  ;;  %v5170_v19 = vld [vmem:[%s7291_s10 + $0xf8] sm:$0xff] }
0x1d6d   : > { %5810 = vmatprep.subr.mxu0 %v5170_v19 }
0x1d6e   : > { %5811 = vmatpush3.msra.mxu0 %v5170_v19 }
0x1d6f   : > { %4524 = vadd.xlane.f32.xlu1 %v4523_v21  ;;  %v5169_v21 = vld [vmem:[%s7291_s10 + $0xf0] sm:$0xff] }
0x1d70   : > { %5812 = vmatprep.subr.mxu0 %v5169_v21 }
0x1d71   : > { %5813 = vmatpush3.msra.mxu0 %v5169_v21 }
0x1d72   : > { %5814 = vmatprep.subr.mxu0 %v5168_v49 }
0x1d73   : > { %5815 = vmatpush3.msra.mxu0 %v5168_v49 }
0x1df4   : > { %v4519_v55 = vpop.xlane.xlu1 %4518 }
0x1df5   : > { %v4526_v24 = vmul.f32 0.0625, %v4519_v55  ;;  %v4522_v25 = vpop.xlane.xlu0 %4521  ;;  %v5167_v55 = vld [vmem:[%s7291_s10 + $0xe0] sm:$0xff] }
0x1df6   : > { %v4527_v1 = vmul.f32 0.0625, %v4522_v25  ;;  %5816 = vmatprep.subr.mxu0 %v5167_v55  ;;  %v5165_v25 = vld [vmem:[%s7291_s10 + $0xd0] sm:$0xff] }
0x1df7   : > { %v4529_v26 = vsub.f32 %v7137_v22, %v4526_v24  ;;  %5817 = vmatpush3.msra.mxu0 %v5167_v55  ;;  %v5166_v24 = vld [vmem:[%s7291_s10 + $0xd8] sm:$0xff] }
0x1df8   : > { %v4530_v27 = vsub.f32 %v7140_v15, %v4527_v1  ;;  %v4525_v28 = vpop.xlane.xlu1 %4524  ;;  %5818 = vmatprep.subr.mxu0 %v5166_v24  ;;  %v5164_v1 = vld [vmem:[%s7291_s10 + $0xc8] sm:$0xff] }
0x1df9   : > { %v4528_v30 = vmul.f32 0.0625, %v4525_v28  ;;  %v4532_v33 = vmul.f32 %v4529_v26, %v4529_v26  ;;  %5819 = vmatpush3.msra.mxu0 %v5166_v24 }
0x1dfa   : > { %v4533_v35 = vmul.f32 %v4530_v27, %v4530_v27  ;;  %5820 = vmatprep.subr.mxu0 %v5165_v25 }
0x1dfb   : > { %v4531_v44 = vsub.f32 %v7143_v20, %v4528_v30  ;;  %v4535_v29 = vsel %vm2685_vm4, %v4532_v33, 0.0  ;;  %5821 = vmatpush3.msra.mxu0 %v5165_v25 }
0x1dfc   : > { %4536 = vadd.xlane.f32.xlu0 %v4535_v29  ;;  %v4538_v36 = vsel %vm487_vm1, %v4533_v35, 0.0  ;;  %5822 = vmatprep.subr.mxu0 %v5164_v1 }
0x1dfd   : > { %4539 = vadd.xlane.f32.xlu1 %v4538_v36  ;;  %v4534_v56 = vmul.f32 %v4531_v44, %v4531_v44  ;;  %5823 = vmatpush3.msra.mxu0 %v5164_v1 }
0x1dff   : > { %v4541_v40 = vsel %vm2692_vm6, %v4534_v56, 0.0 }
0x1e00   : > { %4542 = vadd.xlane.f32.xlu0 %v4541_v40 }
0x1e0e   : > { %2714 = vperm.xlu1 %5879, %v2711_v37  }
0x1e85   : > { %v4537_v54 = vpop.xlane.xlu0 %4536 }
0x1e86   : > { %v4544_v43 = vmul.f32 0.0625, %v4537_v54  ;;  %v4540_v46 = vpop.xlane.xlu1 %4539 }
0x1e87   : > { %v4545_v47 = vmul.f32 0.0625, %v4540_v46  ;;  %v4797_v46 = vld [vmem:[%s7287_s6 + $0x8] sm:$0xff] }
0x1e88   : > { %v4547_v48 = vadd.f32 1e-05, %v4544_v43  ;;  %5829 = vmatprep.subr.mxu1 %v4797_v46 }
0x1e89   : > { %v4548_v50 = vadd.f32 1e-05, %v4545_v47  ;;  %v4543_v61 = vpop.xlane.xlu0 %4542  ;;  %v4796_v47 = vld [vmem:[%s7287_s6] sm:$0xff] }
0x1e8a   : > { %6031 = vrsqrt.f32 %v4547_v48  ;;  %v4546_v6 = vmul.f32 0.0625, %v4543_v61  ;;  %v2715_v53 = vpop.permute.xlu1 %2714  ;;  %v4690_v48 = vrot.slane %v7070_v23, %v6576_v38  ;;  %v4783_v61 = vld [vmem:[%s7310_s3] sm:$0xff] }
0x1e8b   : > { %6033 = vrsqrt.f32 %v4548_v50  ;;  %v2727_v45 = vrot.slane %v2715_v53, 2  ;;  %v4784_v53 = vld [vmem:[%s7310_s3 + $0x8] sm:$0xff]  ;;  %s6110_s3 = smov [#allocation2]  }
0x1e8c   : > { %v4549_v4 = vadd.f32 1e-05, %v4546_v6  ;;  %s6049_s4 = sshll.u32 %s6110_s3, 4  ;;  %s6050_s4 = int_to_ptr.vmem [resolvable:$false] %s6049_s4 }
0x1e8d   : > { %v2802_v52 = vadd.f32 %v6915_v32, %v2727_v45  ;;  %s6051_s5 = scalar_lea.vmem %s6050_s4, 32  ;;  %p6052_p0 = scmp.lt.s32.totalorder %s4910_s28, %s6050_s4 }
0x1e8e   : > { %6035 = vrsqrt.f32 %v4549_v4  ;;  %p6053_p1 = scmp.lt.s32.totalorder %s6051_s5, %s6045_s1 }
0x1e8f   : > { %v2806_v57 = vmul.f32 0.70710677, %v2802_v52  ;;  %v2805_v11 = vmul.f32 0.5, %v2802_v52 }
0x1e90   : > { %p6054_p2 = por %p6053_p1, %p6052_p0 }
0x1e91   : > { %6037 = verf.f32 %v2806_v57  ;;  %v4787_v57 = vrot.slane %v4783_v61, 7 }
0x1e92   : > { %p6055_p3 = pnand %p6054_p2, %p6048_p13 }
0x1e97   : > { %v6032_v58 = vpop.eup %6031 }
0x1e98   : > { %v6034_v5 = vpop.eup %6033  ;;  %v4553_v59 = vmul.f32 %v6032_v58, %v4529_v26  ;;  %v5163_v26 = vld [vmem:[%s7291_s10 + $0xc0] sm:$0xff] }
0x1e99   : > { %v4554_v8 = vmul.f32 %v6034_v5, %v4530_v27  ;;  %5824 = vmatprep.subr.mxu0 %v5163_v26  ;;  %v5160_v27 = vld [vmem:[%s7292_s11 + $0x3] ss:$0 sm:$0xff] }
0x1e9a   : > { %v4560_v2 = vmul.f32 %v4559_v62, %v4553_v59  ;;  %5825 = vmatpush3.msra.mxu0 %v5163_v26 }
0x1e9b   : > { %v6036_v3 = vpop.eup %6035  ;;  %v4561_v13 = vmul.f32 %v4559_v62, %v4554_v8 }
0x1e9c   : > { %v4567_v34 = vadd.f32 %v4566_v60, %v4560_v2  ;;  %v4555_v32 = vmul.f32 %v6036_v3, %v4531_v44 }
0x1e9d   : > { %v4568_v0 = vadd.f32 %v4566_v60, %v4561_v13 }
0x1e9e   : > { %v6038_v12 = vpop.eup %6037  ;;  %v4584_v7 = vrot.slane %v4567_v34, 1  ;;  %v4562_v9 = vmul.f32 %v4559_v62, %v4555_v32  ;;  %v4788_v62 = vrot.slane %v4784_v53, 7 }
0x1e9f   : > { %v2808_v16 = vadd.f32 1.0, %v6038_v12  ;;  %v4585_v39 = vrot.slane %v4568_v0, 1 }
0x1ea0   : > { %v4569_v18 = vadd.f32 %v4566_v60, %v4562_v9  ;;  %v4789_v59 = vsel %vm3537_vm7, %v4787_v57, %v4788_v62 }
0x1ea1   : > { %v2809_v10 = vmul.f32 %v2808_v16, %v2805_v11  ;;  %v4586_v14 = vsel %vm2721_vm5, %v4584_v7, %v4585_v39 }
0x1ea2   : > { %5807 = vmatprep.mubr.msk.f32.mxu1 %vm487_vm1, %v4586_v14  ;;  %v4587_v17 = vrot.slane %v4569_v18, 1 }
0x1ea3   : > { %2810 = vst.msk [vmem:[%s7179_s26] sm:$0x1] %vm2692_vm6, %v2809_v10 }
0x1ea4   : > { %v4588_v31 = vsel %vm2721_vm5, %v4585_v39, %v4587_v17 }
0x1ea5   : > { %5808 = vmatmul.mubr.msk.f32.vlgmr.msra.gmra.mxu1 %vm487_vm1, %v4588_v31 }
0x1ea6   : > { %5830 = vmatpush3.msra.mxu1 %v4797_v46 }
0x1ea7   : > { %5831 = vmatprep.subr.mxu1 %v4796_v47 }
0x1ea8   : > { %5832 = vmatpush3.msra.mxu1 %v4796_v47 }
0x1f65   : > { %v5809_v28 = vpop.f32.mrf.mxu1 }
0x1f66   : > { %v4665_v30 = vadd.f32 %v5809_v28, %v5160_v27 }
0x1f67   : > { %v4659_v33 = vpop.f32.mrf.mxu1 }
0x1f68   : > { %v4671_v35 = vmul.f32 0.70710677, %v4665_v30  ;;  %v4660_v44 = vadd.f32 %v5160_v27, %v4659_v33  ;;  %v4669_v42 = vmul.f32 0.5, %v4665_v30 }
0x1f6a   : > { %6039 = verf.f32 %v4671_v35  ;;  %v4670_v29 = vmul.f32 0.70710677, %v4660_v44  ;;  %v4668_v37 = vmul.f32 0.5, %v4660_v44 }
0x1f6c   : > { %6041 = verf.f32 %v4670_v29 }
0x1f77   : > { %v6040_v36 = vpop.eup %6039 }
0x1f78   : > { %v4675_v40 = vadd.f32 1.0, %v6040_v36 }
0x1f79   : > { %v6042_v56 = vpop.eup %6041 }
0x1f7a   : > { %v4674_v63 = vadd.f32 1.0, %v6042_v56  ;;  %v4677_v43 = vmul.f32 %v4675_v40, %v4669_v42 }
0x1f7c   : > { %v4676_v54 = vmul.f32 %v4674_v63, %v4668_v37 }
0x1f7e   : > { %5826 = vmatprep.mubr.msk.f32.mxu0 %vm1536_vm3, %v4676_v54 }
0x1f7f   : > { %5827 = vmatmul.mubr.msk.f32.vlgmr.msra.gmra.mxu0 %vm1536_vm3, %v4677_v43 }
0x203f   : > { %v5828_v50 = vpop.f32.mrf.mxu0 }
0x2040   : > { %v4769_v6 = vadd.f32 %v5828_v50, %v4690_v48 }
0x2041   : > { %v4763_v45 = vpop.f32.mrf.mxu0 }
0x2042   : > { %v4775_v4 = vrot.slane %v4769_v6, 7  ;;  %v4764_v52 = vadd.f32 %v4763_v45, %v4690_v48 }
0x2044   : > { %v4782_v58 = vadd.f32 %v4775_v4, %v7143_v20  ;;  %v4774_v5 = vrot.slane %v4764_v52, 7 }
0x2046   : > { %v4776_v38 = vsel %vm3537_vm7, %v4774_v5, %v4775_v4  ;;  %v4780_v23 = vadd.f32 %v4774_v5, %v7137_v22  ;;  %v4795_v60 = vadd.f32 %v4788_v62, %v4782_v58 }
0x2047   : > { %v4781_v8 = vadd.f32 %v4776_v38, %v7140_v15 }
0x2048   : > { %v4793_v2 = vadd.f32 %v4787_v57, %v4780_v23  ;;  %v4808_v34 = vrot.slane %v4795_v60, 1 }
0x2049   : > { %v4794_v3 = vadd.f32 %v4789_v59, %v4781_v8 }
0x204a   : > { %v4805_v13 = vrot.slane %v4793_v2, 1 }
0x204b   : > { %v4806_v32 = vrot.slane %v4794_v3, 1 }
0x204d   : > { %v4807_v20 = vsel %vm2721_vm5, %v4805_v13, %v4806_v32  ;;  %v4809_v0 = vsel %vm2721_vm5, %v4806_v32, %v4808_v34 }
0x204e   : > { %5833 = vmatprep.mubr.msk.f32.mxu1 %vm487_vm1, %v4807_v20 }
0x204f   : > { %5834 = vmatmul.mubr.msk.f32.vlgmr.msra.gmra.mxu1 %vm487_vm1, %v4809_v0 }
0x2050   : > { %6058 = shalt.err (!%p6055_p3)
}
0x2051   : > { %s6059_s17 = scalar_lea.hbm %s4907_s2, 16  ;;  %s6063_s20 = scalar_lea.hbm %s7294_s13, 32 }
0x2052   : > { %p6060_p4 = scmp.ne.s32.totalorder %s4907_s2, %s6059_s17  ;;  %p6064_p9 = scmp.lt.s32.totalorder %s4907_s2, %s7294_s13 }
0x2053   : > { %p6065_p10 = scmp.lt.s32.totalorder %s6063_s20, %s6059_s17 }
0x2054   : > { %p6061_p7 = pnand %p6060_p4, %p6224_p5 }
0x2055   : > { %p6066_p11 = por %p6065_p10, %p6064_p9 }
0x2056   : > { %p6062_p8 = pneg %p6061_p7 }
0x2058   : > { %p6067_p12 = pnand %p6066_p11, %p6062_p8 }
0x205a   : > { %6070 = shalt.err (!%p6067_p12)
}
0x205b   : > { %5837 = dma.vmem_to_hbm [thread:$0]  (%p6224_p5), %s4910_s28, 16, %s4907_s2, %s4892_s0   ;;  %v4801_v22 = vrot.slane %v7160_v41, %v6311_v51 }
0x205c   : > { %s5178_s3 = sshll.u32 %s6245_s18, 4 }
0x205d   : > { %s477_s1 = scalar_lea.vmem %s7295_s14, %s5178_s3 }
0x210f   : > { %v5835_v15 = vpop.f32.mrf.mxu1 }
0x2110   : > { %v4886_v12 = vadd.f32 %v5835_v15, %v4801_v22 }
0x2111   : > { %v4880_v7 = vpop.f32.mrf.mxu1 }
0x2112   : > { %4890 = vst.msk [vmem:[%s477_s1 + $0x8] sm:$0xff] %vm487_vm1, %v4886_v12  ;;  %v4881_v9 = vadd.f32 %v4880_v7, %v4801_v22 }
0x2114   : > { %4889 = vst.msk [vmem:[%s477_s1] sm:$0xff] %vm487_vm1, %v4881_v9 }
0x2115 PF: > { %p5843_p5 = scmp.ge.s32.totalorder %s6105_s16, 2  ;;  %s4924_s23 = sand.u32 1, %s6093_s29  }
0x2116   : > { %s4925_s18 = scalar_lea.sflag [#allocation3], %s4924_s23 }
0x2117   : > { %p5840_p13 = pnand %p5843_p5, %p6228_p6 }
0x2119   : > { %p5841_p0 = pneg %p5840_p13 }
0x211b   : > { %6088 = dma.done.wait (%p5841_p0), %s4925_s18, 16  }
0x211c   : > { %6090 = vsyncadd (%p5841_p0), %s4925_s18, 4294967280  ;;  %p25_p1 = scmp.ge.s32.totalorder %s6211_s19, 4   ;;  %s7312_s29 = smov %s6097_s30 }
0x211d   : > { %s7313_s30 = smov %s6101_s15  ;;  %s7314_s15 = smov %s6222_s22 }
0x211e   : > { %s7315_s16 = smov %s6211_s19  ;;  %27 = sbr.rel (!%p25_p1) target bundleno = 10 (0xa), region = 134 }
0x2123   :  { %4937 = vsyncpa [#allocation3], 1 }
0x2124   :  { %4939 = vsyncpa [#allocation3 + $0x1], 1 }

</bundles_post_ra>
